<compile_context>
chip_gen: v7x
topology: tpu7x:2x2x1
jax: 0.10.0
libtpu: 0.0.40
codegen_flags: <defaults>
</compile_context>

<pallas_src>
import math
import jax
import jax.numpy as jnp
from jax import lax
from jax.experimental import pallas as pl
from jax.experimental.pallas import tpu as pltpu


# ----------------------------- Pallas kernel -----------------------------

def _make_inception_kernel(H, W, Cin, Cout, K, Bt):
    """Fused 'same' KxK conv via transposed im2col + one deep MXU matmul."""
    P = K // 2
    HW = H * W
    G = P * W + P                       # per-image zero halo in the flattened axis

    def kernel(x_ref, w_ref, b_ref, m_ref, o_ref, pm_ref):
        # x_ref : (Bt, Cin, HW + 2G)  bf16  zero-haloed, channel-major, flattened images
        # w_ref : (Cout, K*K*Cin)     bf16  folded weight (transposed GEMM orientation)
        # b_ref : (Cout, 1)           f32   folded bias
        # m_ref : (K, HW)             bf16  per-dx width-wrap masks
        # o_ref : (Cout, Bt*HW)       f32   lane-dense output block
        # pm_ref: (K*K*Cin, Bt*HW)    bf16  transposed im2col scratch
        mrows = [m_ref[kx:kx + 1, :] for kx in range(K)]   # hoist mask-row loads

        for i in range(Bt):
            for ky in range(K):
                for kx in range(K):
                    idx = ky * K + kx
                    # source lane offset for tap (ky,kx): p + (ky-P)*W + (kx-P) + G
                    start = G + (ky - P) * W + (kx - P)
                    tap = x_ref[i, :, start:start + HW]      # (Cin, HW) lane slice
                    if kx != P:                               # zero the W-wrapped columns
                        tap = tap * mrows[kx]
                    # aligned Cin-sublane x HW-lane slab store (sublane off idx*Cin,
                    # lane off i*HW — both tile-aligned, unmasked).
                    pm_ref[idx * Cin:(idx + 1) * Cin, i * HW:(i + 1) * HW] = tap

        # ONE deep matmul: (Cout, K*K*Cin) @ (K*K*Cin, Bt*HW), f32 accumulation.
        acc = jnp.dot(w_ref[...], pm_ref[...], preferred_element_type=jnp.float32)
        o_ref[...] = acc + b_ref[...]                         # lane-dense f32 store

    return kernel


# ----------------------------- host-side wrappers -----------------------------

def fold_inception_weights(weights_oihw, biases):
    """Exact fold: mean of zero-padded sub-kernels -> (K,K,Cin,Cout) f32 and
    the bf16 (Cout, K*K*Cin) matrix used by the kernel (transposed GEMM)."""
    num_kernels = len(weights_oihw)
    K = 2 * num_kernels - 1
    cout, cin = weights_oihw[0].shape[0], weights_oihw[0].shape[1]
    w = jnp.zeros((K, K, cin, cout), jnp.float32)
    for wi in weights_oihw:                        # wi: (Cout, Cin, ks, ks) OIHW
        ks = wi.shape[-1]
        pd = (K - ks) // 2
        w = w.at[pd:pd + ks, pd:pd + ks].add(jnp.transpose(wi, (2, 3, 1, 0)))
    w = w / num_kernels                            # (K, K, Cin, Cout) f32, exact
    b = sum(biases) / num_kernels
    w_t = jnp.transpose(w.reshape(K * K * cin, cout)).astype(jnp.bfloat16)  # (Cout, KKC)
    return w, w_t, b.astype(jnp.float32)


def inception_block_v1(x_nchw, w_t_bf16, bias_f32, num_kernels, batch_tile=2):
    """PyTorch-equivalent forward: x (B, Cin, H, W) -> (B, Cout, H, W)."""
    B, Cin, H, W = x_nchw.shape
    K = 2 * num_kernels - 1
    P = K // 2
    HW = H * W
    G = P * W + P
    Lp = HW + 2 * G
    Cout = w_t_bf16.shape[0]
    KKC = K * K * Cin
    Bt = batch_tile if (B % batch_tile == 0) else 1

    # Host-side layout plumbing (done once): bf16 cast, channel-major flatten,
    # zero halo of G elements per image (covers the 'same' padding in H).
    xb = x_nchw.astype(jnp.bfloat16)
    xp = jnp.pad(xb, ((0, 0), (0, 0), (P, P), (0, 0))).reshape(B, Cin, (H + 2 * P) * W)
    xp = jnp.pad(xp, ((0, 0), (0, 0), (P, P)))                 # (B, Cin, Lp)

    # Per-dx width-wrap masks (K, HW), bf16, built once on the host.
    wpos = jnp.arange(W)
    mask = jnp.stack([
        jnp.tile(((wpos + (kx - P) >= 0) & (wpos + (kx - P) < W)).astype(jnp.bfloat16), H)
        for kx in range(K)])                                   # (K, HW)

    out = pl.pallas_call(
        _make_inception_kernel(H, W, Cin, Cout, K, Bt),
        out_shape=jax.ShapeDtypeStruct((Cout, B * HW), jnp.float32),
        grid=(B // Bt,),
        in_specs=[
            pl.BlockSpec((Bt, Cin, Lp), lambda b: (b, 0, 0)),   # activations (bf16)
            pl.BlockSpec((Cout, KKC), lambda b: (0, 0)),        # folded weight (bf16)
            pl.BlockSpec((Cout, 1), lambda b: (0, 0)),          # folded bias (f32)
            pl.BlockSpec((K, HW), lambda b: (0, 0)),            # width-wrap masks
        ],
        out_specs=pl.BlockSpec((Cout, Bt * HW), lambda b: (0, b)),
        scratch_shapes=[pltpu.VMEM((KKC, Bt * HW), jnp.bfloat16)],   # transposed im2col
        compiler_params=pltpu.CompilerParams(
            dimension_semantics=("parallel",),                  # dual-TC split on v7x
            vmem_limit_bytes=32 * 1024 * 1024),
    )(xp, w_t_bf16, bias_f32.reshape(Cout, 1), mask)

    # (Cout, B*HW) -> (B, Cout, H, W): layout plumbing only.
    return jnp.transpose(out.reshape(Cout, B, H, W), (1, 0, 2, 3))


# ----------------------------- references -----------------------------

def reference_per_conv(x, weights, biases):
    """Original module semantics: per-sub-conv in f32, then mean."""
    outs = []
    for wi, bi in zip(weights, biases):
        ks = wi.shape[-1]
        pad = ks // 2
        o = lax.conv_general_dilated(
            x, wi, window_strides=(1, 1), padding=[(pad, pad), (pad, pad)],
            dimension_numbers=("NCHW", "OIHW", "NCHW"),
            precision=lax.Precision.HIGHEST)
        outs.append(o + bi[None, :, None, None])
    return jnp.stack(outs, axis=-1).mean(-1)


def reference_folded_bf16(x, w_fold_f32, bias_f32):
    """Same folded weights + bf16 operand quantisation as the kernel, f32 accumulation.
    Differences vs. the Pallas kernel are accumulation-order only -> tight tolerance."""
    K = w_fold_f32.shape[0]
    P = K // 2
    xq = x.astype(jnp.bfloat16).astype(jnp.float32)
    wq = w_fold_f32.astype(jnp.bfloat16).astype(jnp.float32)       # (K, K, Cin, Cout)
    w_oihw = jnp.transpose(wq, (3, 2, 0, 1))
    o = lax.conv_general_dilated(
        xq, w_oihw, window_strides=(1, 1), padding=[(P, P), (P, P)],
        dimension_numbers=("NCHW", "OIHW", "NCHW"),
        precision=lax.Precision.HIGHEST)
    return o + bias_f32[None, :, None, None]


# ----------------------------- main -----------------------------

if __name__ == "__main__":
    B, Cin, Cout, H, W = 4, 32, 32, 16, 16   # d_model-like channels, 16x16 "period image"
    num_kernels = 3                           # kernel sizes 1, 3, 5 -> folded K = 5

    key = jax.random.PRNGKey(0)
    kx_, kw_ = jax.random.split(key)
    x = jax.random.normal(kx_, (B, Cin, H, W), jnp.float32)

    # Per-sub-conv params exactly like Inception_Block_V1._initialize_weights:
    # kaiming_normal_(mode='fan_out', nonlinearity='relu'), bias = 0.
    weights, biases = [], []
    for i, ki in enumerate(jax.random.split(kw_, num_kernels)):
        ks = 2 * i + 1
        std = math.sqrt(2.0 / (Cout * ks * ks))
        weights.append(std * jax.random.normal(ki, (Cout, Cin, ks, ks), jnp.float32))
        biases.append(jnp.zeros((Cout,), jnp.float32))

    w_fold, w_t, bias = fold_inception_weights(weights, biases)

    out = inception_block_v1(x, w_t, bias, num_kernels, batch_tile=2)
    jax.block_until_ready(out)
    assert out.shape == (B, Cout, H, W)

    # Tight check: identical fold + bf16 operand quantisation -> catches indexing bugs.
    ref_tight = reference_folded_bf16(x, w_fold, bias)
    err_tight = float(jnp.max(jnp.abs(out - ref_tight)))
    assert err_tight < 1e-3, f"tight max abs err {err_tight}"

    # Fold/end-to-end check vs. the per-sub-conv f32 reference; tolerance only needs to
    # cover bf16 operand quantisation (accumulation is f32 in both).
    ref_f32 = reference_per_conv(x, weights, biases)
    err_f32 = float(jnp.max(jnp.abs(out - ref_f32)))
    assert err_f32 < 5e-2, f"f32 max abs err {err_f32}"

    print("KERNEL_OK")
</pallas_src>

<mosaic_0001>
module attributes {stable_mosaic.version = 11 : i64} {
  func.func @kernel(%arg0: i32, %arg1: memref<2x32x324xbf16, #tpu.memory_space<vmem>>, %arg2: memref<32x800xbf16, #tpu.memory_space<vmem>>, %arg3: memref<32x1xf32, #tpu.memory_space<vmem>>, %arg4: memref<5x256xbf16, #tpu.memory_space<vmem>>, %arg5: memref<32x512xf32, #tpu.memory_space<vmem>>, %arg6: memref<800x512xbf16, #tpu.memory_space<vmem>>) attributes {dimension_semantics = [#tpu.dimension_semantics<parallel>], iteration_bounds = array<i64: 2>, scalar_prefetch = 0 : i64, scratch_operands = 1 : i64, tpu.core_type = #tpu.core_type<tc>, window_params = [{transform_indices = @transform_0, window_bounds = array<i64: 2, 32, 324>}, {pipeline_mode = #tpu.pipeline_mode<synchronous>, transform_indices = @transform_1, window_bounds = array<i64: 32, 800>}, {pipeline_mode = #tpu.pipeline_mode<synchronous>, transform_indices = @transform_2, window_bounds = array<i64: 32, 1>}, {pipeline_mode = #tpu.pipeline_mode<synchronous>, transform_indices = @transform_3, window_bounds = array<i64: 5, 256>}, {transform_indices = @transform_4, window_bounds = array<i64: 32, 512>}]} {
    %c0 = arith.constant 0 : index
    %c0_0 = arith.constant 0 : index
    %0 = vector.load %arg4[%c0, %c0_0] : memref<5x256xbf16, #tpu.memory_space<vmem>>, vector<1x256xbf16>
    %c1 = arith.constant 1 : index
    %c0_1 = arith.constant 0 : index
    %1 = vector.load %arg4[%c1, %c0_1] : memref<5x256xbf16, #tpu.memory_space<vmem>>, vector<1x256xbf16>
    %c3 = arith.constant 3 : index
    %c0_2 = arith.constant 0 : index
    %2 = vector.load %arg4[%c3, %c0_2] : memref<5x256xbf16, #tpu.memory_space<vmem>>, vector<1x256xbf16>
    %c4 = arith.constant 4 : index
    %c0_3 = arith.constant 0 : index
    %3 = vector.load %arg4[%c4, %c0_3] : memref<5x256xbf16, #tpu.memory_space<vmem>>, vector<1x256xbf16>
    %c0_4 = arith.constant 0 : index
    %c0_5 = arith.constant 0 : index
    %c0_6 = arith.constant 0 : index
    %4 = vector.load %arg1[%c0_4, %c0_5, %c0_6] : memref<2x32x324xbf16, #tpu.memory_space<vmem>>, vector<1x32x256xbf16>
    %5 = vector.shape_cast %4 : vector<1x32x256xbf16> to vector<32x256xbf16>
    %6 = vector.broadcast %0 : vector<1x256xbf16> to vector<32x256xbf16>
    %7 = arith.mulf %5, %6 : vector<32x256xbf16>
    %c0_7 = arith.constant 0 : index
    %c0_8 = arith.constant 0 : index
    %8 = vector.load %arg6[%c0_7, %c0_8] : memref<800x512xbf16, #tpu.memory_space<vmem>>, vector<32x256xbf16>
    tpu.vector_store %arg6[%c0_7, %c0_8], %7 {strides = array<i32>} : memref<800x512xbf16, #tpu.memory_space<vmem>>, vector<32x256xbf16>,
    %c0_9 = arith.constant 0 : index
    %c0_10 = arith.constant 0 : index
    %c1_11 = arith.constant 1 : index
    %9 = vector.load %arg1[%c0_9, %c0_10, %c1_11] : memref<2x32x324xbf16, #tpu.memory_space<vmem>>, vector<1x32x256xbf16>
    %10 = vector.shape_cast %9 : vector<1x32x256xbf16> to vector<32x256xbf16>
    %11 = vector.broadcast %1 : vector<1x256xbf16> to vector<32x256xbf16>
    %12 = arith.mulf %10, %11 : vector<32x256xbf16>
    %c32 = arith.constant 32 : index
    %c0_12 = arith.constant 0 : index
    %13 = vector.load %arg6[%c32, %c0_12] : memref<800x512xbf16, #tpu.memory_space<vmem>>, vector<32x256xbf16>
    tpu.vector_store %arg6[%c32, %c0_12], %12 {strides = array<i32>} : memref<800x512xbf16, #tpu.memory_space<vmem>>, vector<32x256xbf16>,
    %c0_13 = arith.constant 0 : index
    %c0_14 = arith.constant 0 : index
    %c2 = arith.constant 2 : index
    %14 = vector.load %arg1[%c0_13, %c0_14, %c2] : memref<2x32x324xbf16, #tpu.memory_space<vmem>>, vector<1x32x256xbf16>
    %15 = vector.shape_cast %14 : vector<1x32x256xbf16> to vector<32x256xbf16>
    %c64 = arith.constant 64 : index
    %c0_15 = arith.constant 0 : index
    %16 = vector.load %arg6[%c64, %c0_15] : memref<800x512xbf16, #tpu.memory_space<vmem>>, vector<32x256xbf16>
    tpu.vector_store %arg6[%c64, %c0_15], %15 {strides = array<i32>} : memref<800x512xbf16, #tpu.memory_space<vmem>>, vector<32x256xbf16>,
    %c0_16 = arith.constant 0 : index
    %c0_17 = arith.constant 0 : index
    %c3_18 = arith.constant 3 : index
    %17 = vector.load %arg1[%c0_16, %c0_17, %c3_18] : memref<2x32x324xbf16, #tpu.memory_space<vmem>>, vector<1x32x256xbf16>
    %18 = vector.shape_cast %17 : vector<1x32x256xbf16> to vector<32x256xbf16>
    %19 = vector.broadcast %2 : vector<1x256xbf16> to vector<32x256xbf16>
    %20 = arith.mulf %18, %19 : vector<32x256xbf16>
    %c96 = arith.constant 96 : index
    %c0_19 = arith.constant 0 : index
    %21 = vector.load %arg6[%c96, %c0_19] : memref<800x512xbf16, #tpu.memory_space<vmem>>, vector<32x256xbf16>
    tpu.vector_store %arg6[%c96, %c0_19], %20 {strides = array<i32>} : memref<800x512xbf16, #tpu.memory_space<vmem>>, vector<32x256xbf16>,
    %c0_20 = arith.constant 0 : index
    %c0_21 = arith.constant 0 : index
    %c4_22 = arith.constant 4 : index
    %22 = vector.load %arg1[%c0_20, %c0_21, %c4_22] : memref<2x32x324xbf16, #tpu.memory_space<vmem>>, vector<1x32x256xbf16>
    %23 = vector.shape_cast %22 : vector<1x32x256xbf16> to vector<32x256xbf16>
    %24 = vector.broadcast %3 : vector<1x256xbf16> to vector<32x256xbf16>
    %25 = arith.mulf %23, %24 : vector<32x256xbf16>
    %c128 = arith.constant 128 : index
    %c0_23 = arith.constant 0 : index
    %26 = vector.load %arg6[%c128, %c0_23] : memref<800x512xbf16, #tpu.memory_space<vmem>>, vector<32x256xbf16>
    tpu.vector_store %arg6[%c128, %c0_23], %25 {strides = array<i32>} : memref<800x512xbf16, #tpu.memory_space<vmem>>, vector<32x256xbf16>,
    %c0_24 = arith.constant 0 : index
    %c0_25 = arith.constant 0 : index
    %c16 = arith.constant 16 : index
    %27 = vector.load %arg1[%c0_24, %c0_25, %c16] : memref<2x32x324xbf16, #tpu.memory_space<vmem>>, vector<1x32x256xbf16>
    %28 = vector.shape_cast %27 : vector<1x32x256xbf16> to vector<32x256xbf16>
    %29 = vector.broadcast %0 : vector<1x256xbf16> to vector<32x256xbf16>
    %30 = arith.mulf %28, %29 : vector<32x256xbf16>
    %c160 = arith.constant 160 : index
    %c0_26 = arith.constant 0 : index
    %31 = vector.load %arg6[%c160, %c0_26] : memref<800x512xbf16, #tpu.memory_space<vmem>>, vector<32x256xbf16>
    tpu.vector_store %arg6[%c160, %c0_26], %30 {strides = array<i32>} : memref<800x512xbf16, #tpu.memory_space<vmem>>, vector<32x256xbf16>,
    %c0_27 = arith.constant 0 : index
    %c0_28 = arith.constant 0 : index
    %c17 = arith.constant 17 : index
    %32 = vector.load %arg1[%c0_27, %c0_28, %c17] : memref<2x32x324xbf16, #tpu.memory_space<vmem>>, vector<1x32x256xbf16>
    %33 = vector.shape_cast %32 : vector<1x32x256xbf16> to vector<32x256xbf16>
    %34 = vector.broadcast %1 : vector<1x256xbf16> to vector<32x256xbf16>
    %35 = arith.mulf %33, %34 : vector<32x256xbf16>
    %c192 = arith.constant 192 : index
    %c0_29 = arith.constant 0 : index
    %36 = vector.load %arg6[%c192, %c0_29] : memref<800x512xbf16, #tpu.memory_space<vmem>>, vector<32x256xbf16>
    tpu.vector_store %arg6[%c192, %c0_29], %35 {strides = array<i32>} : memref<800x512xbf16, #tpu.memory_space<vmem>>, vector<32x256xbf16>,
    %c0_30 = arith.constant 0 : index
    %c0_31 = arith.constant 0 : index
    %c18 = arith.constant 18 : index
    %37 = vector.load %arg1[%c0_30, %c0_31, %c18] : memref<2x32x324xbf16, #tpu.memory_space<vmem>>, vector<1x32x256xbf16>
    %38 = vector.shape_cast %37 : vector<1x32x256xbf16> to vector<32x256xbf16>
    %c224 = arith.constant 224 : index
    %c0_32 = arith.constant 0 : index
    %39 = vector.load %arg6[%c224, %c0_32] : memref<800x512xbf16, #tpu.memory_space<vmem>>, vector<32x256xbf16>
    tpu.vector_store %arg6[%c224, %c0_32], %38 {strides = array<i32>} : memref<800x512xbf16, #tpu.memory_space<vmem>>, vector<32x256xbf16>,
    %c0_33 = arith.constant 0 : index
    %c0_34 = arith.constant 0 : index
    %c19 = arith.constant 19 : index
    %40 = vector.load %arg1[%c0_33, %c0_34, %c19] : memref<2x32x324xbf16, #tpu.memory_space<vmem>>, vector<1x32x256xbf16>
    %41 = vector.shape_cast %40 : vector<1x32x256xbf16> to vector<32x256xbf16>
    %42 = vector.broadcast %2 : vector<1x256xbf16> to vector<32x256xbf16>
    %43 = arith.mulf %41, %42 : vector<32x256xbf16>
    %c256 = arith.constant 256 : index
    %c0_35 = arith.constant 0 : index
    %44 = vector.load %arg6[%c256, %c0_35] : memref<800x512xbf16, #tpu.memory_space<vmem>>, vector<32x256xbf16>
    tpu.vector_store %arg6[%c256, %c0_35], %43 {strides = array<i32>} : memref<800x512xbf16, #tpu.memory_space<vmem>>, vector<32x256xbf16>,
    %c0_36 = arith.constant 0 : index
    %c0_37 = arith.constant 0 : index
    %c20 = arith.constant 20 : index
    %45 = vector.load %arg1[%c0_36, %c0_37, %c20] : memref<2x32x324xbf16, #tpu.memory_space<vmem>>, vector<1x32x256xbf16>
    %46 = vector.shape_cast %45 : vector<1x32x256xbf16> to vector<32x256xbf16>
    %47 = vector.broadcast %3 : vector<1x256xbf16> to vector<32x256xbf16>
    %48 = arith.mulf %46, %47 : vector<32x256xbf16>
    %c288 = arith.constant 288 : index
    %c0_38 = arith.constant 0 : index
    %49 = vector.load %arg6[%c288, %c0_38] : memref<800x512xbf16, #tpu.memory_space<vmem>>, vector<32x256xbf16>
    tpu.vector_store %arg6[%c288, %c0_38], %48 {strides = array<i32>} : memref<800x512xbf16, #tpu.memory_space<vmem>>, vector<32x256xbf16>,
    %c0_39 = arith.constant 0 : index
    %c0_40 = arith.constant 0 : index
    %c32_41 = arith.constant 32 : index
    %50 = vector.load %arg1[%c0_39, %c0_40, %c32_41] : memref<2x32x324xbf16, #tpu.memory_space<vmem>>, vector<1x32x256xbf16>
    %51 = vector.shape_cast %50 : vector<1x32x256xbf16> to vector<32x256xbf16>
    %52 = vector.broadcast %0 : vector<1x256xbf16> to vector<32x256xbf16>
    %53 = arith.mulf %51, %52 : vector<32x256xbf16>
    %c320 = arith.constant 320 : index
    %c0_42 = arith.constant 0 : index
    %54 = vector.load %arg6[%c320, %c0_42] : memref<800x512xbf16, #tpu.memory_space<vmem>>, vector<32x256xbf16>
    tpu.vector_store %arg6[%c320, %c0_42], %53 {strides = array<i32>} : memref<800x512xbf16, #tpu.memory_space<vmem>>, vector<32x256xbf16>,
    %c0_43 = arith.constant 0 : index
    %c0_44 = arith.constant 0 : index
    %c33 = arith.constant 33 : index
    %55 = vector.load %arg1[%c0_43, %c0_44, %c33] : memref<2x32x324xbf16, #tpu.memory_space<vmem>>, vector<1x32x256xbf16>
    %56 = vector.shape_cast %55 : vector<1x32x256xbf16> to vector<32x256xbf16>
    %57 = vector.broadcast %1 : vector<1x256xbf16> to vector<32x256xbf16>
    %58 = arith.mulf %56, %57 : vector<32x256xbf16>
    %c352 = arith.constant 352 : index
    %c0_45 = arith.constant 0 : index
    %59 = vector.load %arg6[%c352, %c0_45] : memref<800x512xbf16, #tpu.memory_space<vmem>>, vector<32x256xbf16>
    tpu.vector_store %arg6[%c352, %c0_45], %58 {strides = array<i32>} : memref<800x512xbf16, #tpu.memory_space<vmem>>, vector<32x256xbf16>,
    %c0_46 = arith.constant 0 : index
    %c0_47 = arith.constant 0 : index
    %c34 = arith.constant 34 : index
    %60 = vector.load %arg1[%c0_46, %c0_47, %c34] : memref<2x32x324xbf16, #tpu.memory_space<vmem>>, vector<1x32x256xbf16>
    %61 = vector.shape_cast %60 : vector<1x32x256xbf16> to vector<32x256xbf16>
    %c384 = arith.constant 384 : index
    %c0_48 = arith.constant 0 : index
    %62 = vector.load %arg6[%c384, %c0_48] : memref<800x512xbf16, #tpu.memory_space<vmem>>, vector<32x256xbf16>
    tpu.vector_store %arg6[%c384, %c0_48], %61 {strides = array<i32>} : memref<800x512xbf16, #tpu.memory_space<vmem>>, vector<32x256xbf16>,
    %c0_49 = arith.constant 0 : index
    %c0_50 = arith.constant 0 : index
    %c35 = arith.constant 35 : index
    %63 = vector.load %arg1[%c0_49, %c0_50, %c35] : memref<2x32x324xbf16, #tpu.memory_space<vmem>>, vector<1x32x256xbf16>
    %64 = vector.shape_cast %63 : vector<1x32x256xbf16> to vector<32x256xbf16>
    %65 = vector.broadcast %2 : vector<1x256xbf16> to vector<32x256xbf16>
    %66 = arith.mulf %64, %65 : vector<32x256xbf16>
    %c416 = arith.constant 416 : index
    %c0_51 = arith.constant 0 : index
    %67 = vector.load %arg6[%c416, %c0_51] : memref<800x512xbf16, #tpu.memory_space<vmem>>, vector<32x256xbf16>
    tpu.vector_store %arg6[%c416, %c0_51], %66 {strides = array<i32>} : memref<800x512xbf16, #tpu.memory_space<vmem>>, vector<32x256xbf16>,
    %c0_52 = arith.constant 0 : index
    %c0_53 = arith.constant 0 : index
    %c36 = arith.constant 36 : index
    %68 = vector.load %arg1[%c0_52, %c0_53, %c36] : memref<2x32x324xbf16, #tpu.memory_space<vmem>>, vector<1x32x256xbf16>
    %69 = vector.shape_cast %68 : vector<1x32x256xbf16> to vector<32x256xbf16>
    %70 = vector.broadcast %3 : vector<1x256xbf16> to vector<32x256xbf16>
    %71 = arith.mulf %69, %70 : vector<32x256xbf16>
    %c448 = arith.constant 448 : index
    %c0_54 = arith.constant 0 : index
    %72 = vector.load %arg6[%c448, %c0_54] : memref<800x512xbf16, #tpu.memory_space<vmem>>, vector<32x256xbf16>
    tpu.vector_store %arg6[%c448, %c0_54], %71 {strides = array<i32>} : memref<800x512xbf16, #tpu.memory_space<vmem>>, vector<32x256xbf16>,
    %c0_55 = arith.constant 0 : index
    %c0_56 = arith.constant 0 : index
    %c48 = arith.constant 48 : index
    %73 = vector.load %arg1[%c0_55, %c0_56, %c48] : memref<2x32x324xbf16, #tpu.memory_space<vmem>>, vector<1x32x256xbf16>
    %74 = vector.shape_cast %73 : vector<1x32x256xbf16> to vector<32x256xbf16>
    %75 = vector.broadcast %0 : vector<1x256xbf16> to vector<32x256xbf16>
    %76 = arith.mulf %74, %75 : vector<32x256xbf16>
    %c480 = arith.constant 480 : index
    %c0_57 = arith.constant 0 : index
    %77 = vector.load %arg6[%c480, %c0_57] : memref<800x512xbf16, #tpu.memory_space<vmem>>, vector<32x256xbf16>
    tpu.vector_store %arg6[%c480, %c0_57], %76 {strides = array<i32>} : memref<800x512xbf16, #tpu.memory_space<vmem>>, vector<32x256xbf16>,
    %c0_58 = arith.constant 0 : index
    %c0_59 = arith.constant 0 : index
    %c49 = arith.constant 49 : index
    %78 = vector.load %arg1[%c0_58, %c0_59, %c49] : memref<2x32x324xbf16, #tpu.memory_space<vmem>>, vector<1x32x256xbf16>
    %79 = vector.shape_cast %78 : vector<1x32x256xbf16> to vector<32x256xbf16>
    %80 = vector.broadcast %1 : vector<1x256xbf16> to vector<32x256xbf16>
    %81 = arith.mulf %79, %80 : vector<32x256xbf16>
    %c512 = arith.constant 512 : index
    %c0_60 = arith.constant 0 : index
    %82 = vector.load %arg6[%c512, %c0_60] : memref<800x512xbf16, #tpu.memory_space<vmem>>, vector<32x256xbf16>
    tpu.vector_store %arg6[%c512, %c0_60], %81 {strides = array<i32>} : memref<800x512xbf16, #tpu.memory_space<vmem>>, vector<32x256xbf16>,
    %c0_61 = arith.constant 0 : index
    %c0_62 = arith.constant 0 : index
    %c50 = arith.constant 50 : index
    %83 = vector.load %arg1[%c0_61, %c0_62, %c50] : memref<2x32x324xbf16, #tpu.memory_space<vmem>>, vector<1x32x256xbf16>
    %84 = vector.shape_cast %83 : vector<1x32x256xbf16> to vector<32x256xbf16>
    %c544 = arith.constant 544 : index
    %c0_63 = arith.constant 0 : index
    %85 = vector.load %arg6[%c544, %c0_63] : memref<800x512xbf16, #tpu.memory_space<vmem>>, vector<32x256xbf16>
    tpu.vector_store %arg6[%c544, %c0_63], %84 {strides = array<i32>} : memref<800x512xbf16, #tpu.memory_space<vmem>>, vector<32x256xbf16>,
    %c0_64 = arith.constant 0 : index
    %c0_65 = arith.constant 0 : index
    %c51 = arith.constant 51 : index
    %86 = vector.load %arg1[%c0_64, %c0_65, %c51] : memref<2x32x324xbf16, #tpu.memory_space<vmem>>, vector<1x32x256xbf16>
    %87 = vector.shape_cast %86 : vector<1x32x256xbf16> to vector<32x256xbf16>
    %88 = vector.broadcast %2 : vector<1x256xbf16> to vector<32x256xbf16>
    %89 = arith.mulf %87, %88 : vector<32x256xbf16>
    %c576 = arith.constant 576 : index
    %c0_66 = arith.constant 0 : index
    %90 = vector.load %arg6[%c576, %c0_66] : memref<800x512xbf16, #tpu.memory_space<vmem>>, vector<32x256xbf16>
    tpu.vector_store %arg6[%c576, %c0_66], %89 {strides = array<i32>} : memref<800x512xbf16, #tpu.memory_space<vmem>>, vector<32x256xbf16>,
    %c0_67 = arith.constant 0 : index
    %c0_68 = arith.constant 0 : index
    %c52 = arith.constant 52 : index
    %91 = vector.load %arg1[%c0_67, %c0_68, %c52] : memref<2x32x324xbf16, #tpu.memory_space<vmem>>, vector<1x32x256xbf16>
    %92 = vector.shape_cast %91 : vector<1x32x256xbf16> to vector<32x256xbf16>
    %93 = vector.broadcast %3 : vector<1x256xbf16> to vector<32x256xbf16>
    %94 = arith.mulf %92, %93 : vector<32x256xbf16>
    %c608 = arith.constant 608 : index
    %c0_69 = arith.constant 0 : index
    %95 = vector.load %arg6[%c608, %c0_69] : memref<800x512xbf16, #tpu.memory_space<vmem>>, vector<32x256xbf16>
    tpu.vector_store %arg6[%c608, %c0_69], %94 {strides = array<i32>} : memref<800x512xbf16, #tpu.memory_space<vmem>>, vector<32x256xbf16>,
    %c0_70 = arith.constant 0 : index
    %c0_71 = arith.constant 0 : index
    %c64_72 = arith.constant 64 : index
    %96 = vector.load %arg1[%c0_70, %c0_71, %c64_72] : memref<2x32x324xbf16, #tpu.memory_space<vmem>>, vector<1x32x256xbf16>
    %97 = vector.shape_cast %96 : vector<1x32x256xbf16> to vector<32x256xbf16>
    %98 = vector.broadcast %0 : vector<1x256xbf16> to vector<32x256xbf16>
    %99 = arith.mulf %97, %98 : vector<32x256xbf16>
    %c640 = arith.constant 640 : index
    %c0_73 = arith.constant 0 : index
    %100 = vector.load %arg6[%c640, %c0_73] : memref<800x512xbf16, #tpu.memory_space<vmem>>, vector<32x256xbf16>
    tpu.vector_store %arg6[%c640, %c0_73], %99 {strides = array<i32>} : memref<800x512xbf16, #tpu.memory_space<vmem>>, vector<32x256xbf16>,
    %c0_74 = arith.constant 0 : index
    %c0_75 = arith.constant 0 : index
    %c65 = arith.constant 65 : index
    %101 = vector.load %arg1[%c0_74, %c0_75, %c65] : memref<2x32x324xbf16, #tpu.memory_space<vmem>>, vector<1x32x256xbf16>
    %102 = vector.shape_cast %101 : vector<1x32x256xbf16> to vector<32x256xbf16>
    %103 = vector.broadcast %1 : vector<1x256xbf16> to vector<32x256xbf16>
    %104 = arith.mulf %102, %103 : vector<32x256xbf16>
    %c672 = arith.constant 672 : index
    %c0_76 = arith.constant 0 : index
    %105 = vector.load %arg6[%c672, %c0_76] : memref<800x512xbf16, #tpu.memory_space<vmem>>, vector<32x256xbf16>
    tpu.vector_store %arg6[%c672, %c0_76], %104 {strides = array<i32>} : memref<800x512xbf16, #tpu.memory_space<vmem>>, vector<32x256xbf16>,
    %c0_77 = arith.constant 0 : index
    %c0_78 = arith.constant 0 : index
    %c66 = arith.constant 66 : index
    %106 = vector.load %arg1[%c0_77, %c0_78, %c66] : memref<2x32x324xbf16, #tpu.memory_space<vmem>>, vector<1x32x256xbf16>
    %107 = vector.shape_cast %106 : vector<1x32x256xbf16> to vector<32x256xbf16>
    %c704 = arith.constant 704 : index
    %c0_79 = arith.constant 0 : index
    %108 = vector.load %arg6[%c704, %c0_79] : memref<800x512xbf16, #tpu.memory_space<vmem>>, vector<32x256xbf16>
    tpu.vector_store %arg6[%c704, %c0_79], %107 {strides = array<i32>} : memref<800x512xbf16, #tpu.memory_space<vmem>>, vector<32x256xbf16>,
    %c0_80 = arith.constant 0 : index
    %c0_81 = arith.constant 0 : index
    %c67 = arith.constant 67 : index
    %109 = vector.load %arg1[%c0_80, %c0_81, %c67] : memref<2x32x324xbf16, #tpu.memory_space<vmem>>, vector<1x32x256xbf16>
    %110 = vector.shape_cast %109 : vector<1x32x256xbf16> to vector<32x256xbf16>
    %111 = vector.broadcast %2 : vector<1x256xbf16> to vector<32x256xbf16>
    %112 = arith.mulf %110, %111 : vector<32x256xbf16>
    %c736 = arith.constant 736 : index
    %c0_82 = arith.constant 0 : index
    %113 = vector.load %arg6[%c736, %c0_82] : memref<800x512xbf16, #tpu.memory_space<vmem>>, vector<32x256xbf16>
    tpu.vector_store %arg6[%c736, %c0_82], %112 {strides = array<i32>} : memref<800x512xbf16, #tpu.memory_space<vmem>>, vector<32x256xbf16>,
    %c0_83 = arith.constant 0 : index
    %c0_84 = arith.constant 0 : index
    %c68 = arith.constant 68 : index
    %114 = vector.load %arg1[%c0_83, %c0_84, %c68] : memref<2x32x324xbf16, #tpu.memory_space<vmem>>, vector<1x32x256xbf16>
    %115 = vector.shape_cast %114 : vector<1x32x256xbf16> to vector<32x256xbf16>
    %116 = vector.broadcast %3 : vector<1x256xbf16> to vector<32x256xbf16>
    %117 = arith.mulf %115, %116 : vector<32x256xbf16>
    %c768 = arith.constant 768 : index
    %c0_85 = arith.constant 0 : index
    %118 = vector.load %arg6[%c768, %c0_85] : memref<800x512xbf16, #tpu.memory_space<vmem>>, vector<32x256xbf16>
    tpu.vector_store %arg6[%c768, %c0_85], %117 {strides = array<i32>} : memref<800x512xbf16, #tpu.memory_space<vmem>>, vector<32x256xbf16>,
    %c1_86 = arith.constant 1 : index
    %c0_87 = arith.constant 0 : index
    %c0_88 = arith.constant 0 : index
    %119 = vector.load %arg1[%c1_86, %c0_87, %c0_88] : memref<2x32x324xbf16, #tpu.memory_space<vmem>>, vector<1x32x256xbf16>
    %120 = vector.shape_cast %119 : vector<1x32x256xbf16> to vector<32x256xbf16>
    %121 = vector.broadcast %0 : vector<1x256xbf16> to vector<32x256xbf16>
    %122 = arith.mulf %120, %121 : vector<32x256xbf16>
    %c0_89 = arith.constant 0 : index
    %c256_90 = arith.constant 256 : index
    %123 = vector.load %arg6[%c0_89, %c256_90] : memref<800x512xbf16, #tpu.memory_space<vmem>>, vector<32x256xbf16>
    tpu.vector_store %arg6[%c0_89, %c256_90], %122 {strides = array<i32>} : memref<800x512xbf16, #tpu.memory_space<vmem>>, vector<32x256xbf16>,
    %c1_91 = arith.constant 1 : index
    %c0_92 = arith.constant 0 : index
    %c1_93 = arith.constant 1 : index
    %124 = vector.load %arg1[%c1_91, %c0_92, %c1_93] : memref<2x32x324xbf16, #tpu.memory_space<vmem>>, vector<1x32x256xbf16>
    %125 = vector.shape_cast %124 : vector<1x32x256xbf16> to vector<32x256xbf16>
    %126 = vector.broadcast %1 : vector<1x256xbf16> to vector<32x256xbf16>
    %127 = arith.mulf %125, %126 : vector<32x256xbf16>
    %c32_94 = arith.constant 32 : index
    %c256_95 = arith.constant 256 : index
    %128 = vector.load %arg6[%c32_94, %c256_95] : memref<800x512xbf16, #tpu.memory_space<vmem>>, vector<32x256xbf16>
    tpu.vector_store %arg6[%c32_94, %c256_95], %127 {strides = array<i32>} : memref<800x512xbf16, #tpu.memory_space<vmem>>, vector<32x256xbf16>,
    %c1_96 = arith.constant 1 : index
    %c0_97 = arith.constant 0 : index
    %c2_98 = arith.constant 2 : index
    %129 = vector.load %arg1[%c1_96, %c0_97, %c2_98] : memref<2x32x324xbf16, #tpu.memory_space<vmem>>, vector<1x32x256xbf16>
    %130 = vector.shape_cast %129 : vector<1x32x256xbf16> to vector<32x256xbf16>
    %c64_99 = arith.constant 64 : index
    %c256_100 = arith.constant 256 : index
    %131 = vector.load %arg6[%c64_99, %c256_100] : memref<800x512xbf16, #tpu.memory_space<vmem>>, vector<32x256xbf16>
    tpu.vector_store %arg6[%c64_99, %c256_100], %130 {strides = array<i32>} : memref<800x512xbf16, #tpu.memory_space<vmem>>, vector<32x256xbf16>,
    %c1_101 = arith.constant 1 : index
    %c0_102 = arith.constant 0 : index
    %c3_103 = arith.constant 3 : index
    %132 = vector.load %arg1[%c1_101, %c0_102, %c3_103] : memref<2x32x324xbf16, #tpu.memory_space<vmem>>, vector<1x32x256xbf16>
    %133 = vector.shape_cast %132 : vector<1x32x256xbf16> to vector<32x256xbf16>
    %134 = vector.broadcast %2 : vector<1x256xbf16> to vector<32x256xbf16>
    %135 = arith.mulf %133, %134 : vector<32x256xbf16>
    %c96_104 = arith.constant 96 : index
    %c256_105 = arith.constant 256 : index
    %136 = vector.load %arg6[%c96_104, %c256_105] : memref<800x512xbf16, #tpu.memory_space<vmem>>, vector<32x256xbf16>
    tpu.vector_store %arg6[%c96_104, %c256_105], %135 {strides = array<i32>} : memref<800x512xbf16, #tpu.memory_space<vmem>>, vector<32x256xbf16>,
    %c1_106 = arith.constant 1 : index
    %c0_107 = arith.constant 0 : index
    %c4_108 = arith.constant 4 : index
    %137 = vector.load %arg1[%c1_106, %c0_107, %c4_108] : memref<2x32x324xbf16, #tpu.memory_space<vmem>>, vector<1x32x256xbf16>
    %138 = vector.shape_cast %137 : vector<1x32x256xbf16> to vector<32x256xbf16>
    %139 = vector.broadcast %3 : vector<1x256xbf16> to vector<32x256xbf16>
    %140 = arith.mulf %138, %139 : vector<32x256xbf16>
    %c128_109 = arith.constant 128 : index
    %c256_110 = arith.constant 256 : index
    %141 = vector.load %arg6[%c128_109, %c256_110] : memref<800x512xbf16, #tpu.memory_space<vmem>>, vector<32x256xbf16>
    tpu.vector_store %arg6[%c128_109, %c256_110], %140 {strides = array<i32>} : memref<800x512xbf16, #tpu.memory_space<vmem>>, vector<32x256xbf16>,
    %c1_111 = arith.constant 1 : index
    %c0_112 = arith.constant 0 : index
    %c16_113 = arith.constant 16 : index
    %142 = vector.load %arg1[%c1_111, %c0_112, %c16_113] : memref<2x32x324xbf16, #tpu.memory_space<vmem>>, vector<1x32x256xbf16>
    %143 = vector.shape_cast %142 : vector<1x32x256xbf16> to vector<32x256xbf16>
    %144 = vector.broadcast %0 : vector<1x256xbf16> to vector<32x256xbf16>
    %145 = arith.mulf %143, %144 : vector<32x256xbf16>
    %c160_114 = arith.constant 160 : index
    %c256_115 = arith.constant 256 : index
    %146 = vector.load %arg6[%c160_114, %c256_115] : memref<800x512xbf16, #tpu.memory_space<vmem>>, vector<32x256xbf16>
    tpu.vector_store %arg6[%c160_114, %c256_115], %145 {strides = array<i32>} : memref<800x512xbf16, #tpu.memory_space<vmem>>, vector<32x256xbf16>,
    %c1_116 = arith.constant 1 : index
    %c0_117 = arith.constant 0 : index
    %c17_118 = arith.constant 17 : index
    %147 = vector.load %arg1[%c1_116, %c0_117, %c17_118] : memref<2x32x324xbf16, #tpu.memory_space<vmem>>, vector<1x32x256xbf16>
    %148 = vector.shape_cast %147 : vector<1x32x256xbf16> to vector<32x256xbf16>
    %149 = vector.broadcast %1 : vector<1x256xbf16> to vector<32x256xbf16>
    %150 = arith.mulf %148, %149 : vector<32x256xbf16>
    %c192_119 = arith.constant 192 : index
    %c256_120 = arith.constant 256 : index
    %151 = vector.load %arg6[%c192_119, %c256_120] : memref<800x512xbf16, #tpu.memory_space<vmem>>, vector<32x256xbf16>
    tpu.vector_store %arg6[%c192_119, %c256_120], %150 {strides = array<i32>} : memref<800x512xbf16, #tpu.memory_space<vmem>>, vector<32x256xbf16>,
    %c1_121 = arith.constant 1 : index
    %c0_122 = arith.constant 0 : index
    %c18_123 = arith.constant 18 : index
    %152 = vector.load %arg1[%c1_121, %c0_122, %c18_123] : memref<2x32x324xbf16, #tpu.memory_space<vmem>>, vector<1x32x256xbf16>
    %153 = vector.shape_cast %152 : vector<1x32x256xbf16> to vector<32x256xbf16>
    %c224_124 = arith.constant 224 : index
    %c256_125 = arith.constant 256 : index
    %154 = vector.load %arg6[%c224_124, %c256_125] : memref<800x512xbf16, #tpu.memory_space<vmem>>, vector<32x256xbf16>
    tpu.vector_store %arg6[%c224_124, %c256_125], %153 {strides = array<i32>} : memref<800x512xbf16, #tpu.memory_space<vmem>>, vector<32x256xbf16>,
    %c1_126 = arith.constant 1 : index
    %c0_127 = arith.constant 0 : index
    %c19_128 = arith.constant 19 : index
    %155 = vector.load %arg1[%c1_126, %c0_127, %c19_128] : memref<2x32x324xbf16, #tpu.memory_space<vmem>>, vector<1x32x256xbf16>
    %156 = vector.shape_cast %155 : vector<1x32x256xbf16> to vector<32x256xbf16>
    %157 = vector.broadcast %2 : vector<1x256xbf16> to vector<32x256xbf16>
    %158 = arith.mulf %156, %157 : vector<32x256xbf16>
    %c256_129 = arith.constant 256 : index
    %c256_130 = arith.constant 256 : index
    %159 = vector.load %arg6[%c256_129, %c256_130] : memref<800x512xbf16, #tpu.memory_space<vmem>>, vector<32x256xbf16>
    tpu.vector_store %arg6[%c256_129, %c256_130], %158 {strides = array<i32>} : memref<800x512xbf16, #tpu.memory_space<vmem>>, vector<32x256xbf16>,
    %c1_131 = arith.constant 1 : index
    %c0_132 = arith.constant 0 : index
    %c20_133 = arith.constant 20 : index
    %160 = vector.load %arg1[%c1_131, %c0_132, %c20_133] : memref<2x32x324xbf16, #tpu.memory_space<vmem>>, vector<1x32x256xbf16>
    %161 = vector.shape_cast %160 : vector<1x32x256xbf16> to vector<32x256xbf16>
    %162 = vector.broadcast %3 : vector<1x256xbf16> to vector<32x256xbf16>
    %163 = arith.mulf %161, %162 : vector<32x256xbf16>
    %c288_134 = arith.constant 288 : index
    %c256_135 = arith.constant 256 : index
    %164 = vector.load %arg6[%c288_134, %c256_135] : memref<800x512xbf16, #tpu.memory_space<vmem>>, vector<32x256xbf16>
    tpu.vector_store %arg6[%c288_134, %c256_135], %163 {strides = array<i32>} : memref<800x512xbf16, #tpu.memory_space<vmem>>, vector<32x256xbf16>,
    %c1_136 = arith.constant 1 : index
    %c0_137 = arith.constant 0 : index
    %c32_138 = arith.constant 32 : index
    %165 = vector.load %arg1[%c1_136, %c0_137, %c32_138] : memref<2x32x324xbf16, #tpu.memory_space<vmem>>, vector<1x32x256xbf16>
    %166 = vector.shape_cast %165 : vector<1x32x256xbf16> to vector<32x256xbf16>
    %167 = vector.broadcast %0 : vector<1x256xbf16> to vector<32x256xbf16>
    %168 = arith.mulf %166, %167 : vector<32x256xbf16>
    %c320_139 = arith.constant 320 : index
    %c256_140 = arith.constant 256 : index
    %169 = vector.load %arg6[%c320_139, %c256_140] : memref<800x512xbf16, #tpu.memory_space<vmem>>, vector<32x256xbf16>
    tpu.vector_store %arg6[%c320_139, %c256_140], %168 {strides = array<i32>} : memref<800x512xbf16, #tpu.memory_space<vmem>>, vector<32x256xbf16>,
    %c1_141 = arith.constant 1 : index
    %c0_142 = arith.constant 0 : index
    %c33_143 = arith.constant 33 : index
    %170 = vector.load %arg1[%c1_141, %c0_142, %c33_143] : memref<2x32x324xbf16, #tpu.memory_space<vmem>>, vector<1x32x256xbf16>
    %171 = vector.shape_cast %170 : vector<1x32x256xbf16> to vector<32x256xbf16>
    %172 = vector.broadcast %1 : vector<1x256xbf16> to vector<32x256xbf16>
    %173 = arith.mulf %171, %172 : vector<32x256xbf16>
    %c352_144 = arith.constant 352 : index
    %c256_145 = arith.constant 256 : index
    %174 = vector.load %arg6[%c352_144, %c256_145] : memref<800x512xbf16, #tpu.memory_space<vmem>>, vector<32x256xbf16>
    tpu.vector_store %arg6[%c352_144, %c256_145], %173 {strides = array<i32>} : memref<800x512xbf16, #tpu.memory_space<vmem>>, vector<32x256xbf16>,
    %c1_146 = arith.constant 1 : index
    %c0_147 = arith.constant 0 : index
    %c34_148 = arith.constant 34 : index
    %175 = vector.load %arg1[%c1_146, %c0_147, %c34_148] : memref<2x32x324xbf16, #tpu.memory_space<vmem>>, vector<1x32x256xbf16>
    %176 = vector.shape_cast %175 : vector<1x32x256xbf16> to vector<32x256xbf16>
    %c384_149 = arith.constant 384 : index
    %c256_150 = arith.constant 256 : index
    %177 = vector.load %arg6[%c384_149, %c256_150] : memref<800x512xbf16, #tpu.memory_space<vmem>>, vector<32x256xbf16>
    tpu.vector_store %arg6[%c384_149, %c256_150], %176 {strides = array<i32>} : memref<800x512xbf16, #tpu.memory_space<vmem>>, vector<32x256xbf16>,
    %c1_151 = arith.constant 1 : index
    %c0_152 = arith.constant 0 : index
    %c35_153 = arith.constant 35 : index
    %178 = vector.load %arg1[%c1_151, %c0_152, %c35_153] : memref<2x32x324xbf16, #tpu.memory_space<vmem>>, vector<1x32x256xbf16>
    %179 = vector.shape_cast %178 : vector<1x32x256xbf16> to vector<32x256xbf16>
    %180 = vector.broadcast %2 : vector<1x256xbf16> to vector<32x256xbf16>
    %181 = arith.mulf %179, %180 : vector<32x256xbf16>
    %c416_154 = arith.constant 416 : index
    %c256_155 = arith.constant 256 : index
    %182 = vector.load %arg6[%c416_154, %c256_155] : memref<800x512xbf16, #tpu.memory_space<vmem>>, vector<32x256xbf16>
    tpu.vector_store %arg6[%c416_154, %c256_155], %181 {strides = array<i32>} : memref<800x512xbf16, #tpu.memory_space<vmem>>, vector<32x256xbf16>,
    %c1_156 = arith.constant 1 : index
    %c0_157 = arith.constant 0 : index
    %c36_158 = arith.constant 36 : index
    %183 = vector.load %arg1[%c1_156, %c0_157, %c36_158] : memref<2x32x324xbf16, #tpu.memory_space<vmem>>, vector<1x32x256xbf16>
    %184 = vector.shape_cast %183 : vector<1x32x256xbf16> to vector<32x256xbf16>
    %185 = vector.broadcast %3 : vector<1x256xbf16> to vector<32x256xbf16>
    %186 = arith.mulf %184, %185 : vector<32x256xbf16>
    %c448_159 = arith.constant 448 : index
    %c256_160 = arith.constant 256 : index
    %187 = vector.load %arg6[%c448_159, %c256_160] : memref<800x512xbf16, #tpu.memory_space<vmem>>, vector<32x256xbf16>
    tpu.vector_store %arg6[%c448_159, %c256_160], %186 {strides = array<i32>} : memref<800x512xbf16, #tpu.memory_space<vmem>>, vector<32x256xbf16>,
    %c1_161 = arith.constant 1 : index
    %c0_162 = arith.constant 0 : index
    %c48_163 = arith.constant 48 : index
    %188 = vector.load %arg1[%c1_161, %c0_162, %c48_163] : memref<2x32x324xbf16, #tpu.memory_space<vmem>>, vector<1x32x256xbf16>
    %189 = vector.shape_cast %188 : vector<1x32x256xbf16> to vector<32x256xbf16>
    %190 = vector.broadcast %0 : vector<1x256xbf16> to vector<32x256xbf16>
    %191 = arith.mulf %189, %190 : vector<32x256xbf16>
    %c480_164 = arith.constant 480 : index
    %c256_165 = arith.constant 256 : index
    %192 = vector.load %arg6[%c480_164, %c256_165] : memref<800x512xbf16, #tpu.memory_space<vmem>>, vector<32x256xbf16>
    tpu.vector_store %arg6[%c480_164, %c256_165], %191 {strides = array<i32>} : memref<800x512xbf16, #tpu.memory_space<vmem>>, vector<32x256xbf16>,
    %c1_166 = arith.constant 1 : index
    %c0_167 = arith.constant 0 : index
    %c49_168 = arith.constant 49 : index
    %193 = vector.load %arg1[%c1_166, %c0_167, %c49_168] : memref<2x32x324xbf16, #tpu.memory_space<vmem>>, vector<1x32x256xbf16>
    %194 = vector.shape_cast %193 : vector<1x32x256xbf16> to vector<32x256xbf16>
    %195 = vector.broadcast %1 : vector<1x256xbf16> to vector<32x256xbf16>
    %196 = arith.mulf %194, %195 : vector<32x256xbf16>
    %c512_169 = arith.constant 512 : index
    %c256_170 = arith.constant 256 : index
    %197 = vector.load %arg6[%c512_169, %c256_170] : memref<800x512xbf16, #tpu.memory_space<vmem>>, vector<32x256xbf16>
    tpu.vector_store %arg6[%c512_169, %c256_170], %196 {strides = array<i32>} : memref<800x512xbf16, #tpu.memory_space<vmem>>, vector<32x256xbf16>,
    %c1_171 = arith.constant 1 : index
    %c0_172 = arith.constant 0 : index
    %c50_173 = arith.constant 50 : index
    %198 = vector.load %arg1[%c1_171, %c0_172, %c50_173] : memref<2x32x324xbf16, #tpu.memory_space<vmem>>, vector<1x32x256xbf16>
    %199 = vector.shape_cast %198 : vector<1x32x256xbf16> to vector<32x256xbf16>
    %c544_174 = arith.constant 544 : index
    %c256_175 = arith.constant 256 : index
    %200 = vector.load %arg6[%c544_174, %c256_175] : memref<800x512xbf16, #tpu.memory_space<vmem>>, vector<32x256xbf16>
    tpu.vector_store %arg6[%c544_174, %c256_175], %199 {strides = array<i32>} : memref<800x512xbf16, #tpu.memory_space<vmem>>, vector<32x256xbf16>,
    %c1_176 = arith.constant 1 : index
    %c0_177 = arith.constant 0 : index
    %c51_178 = arith.constant 51 : index
    %201 = vector.load %arg1[%c1_176, %c0_177, %c51_178] : memref<2x32x324xbf16, #tpu.memory_space<vmem>>, vector<1x32x256xbf16>
    %202 = vector.shape_cast %201 : vector<1x32x256xbf16> to vector<32x256xbf16>
    %203 = vector.broadcast %2 : vector<1x256xbf16> to vector<32x256xbf16>
    %204 = arith.mulf %202, %203 : vector<32x256xbf16>
    %c576_179 = arith.constant 576 : index
    %c256_180 = arith.constant 256 : index
    %205 = vector.load %arg6[%c576_179, %c256_180] : memref<800x512xbf16, #tpu.memory_space<vmem>>, vector<32x256xbf16>
    tpu.vector_store %arg6[%c576_179, %c256_180], %204 {strides = array<i32>} : memref<800x512xbf16, #tpu.memory_space<vmem>>, vector<32x256xbf16>,
    %c1_181 = arith.constant 1 : index
    %c0_182 = arith.constant 0 : index
    %c52_183 = arith.constant 52 : index
    %206 = vector.load %arg1[%c1_181, %c0_182, %c52_183] : memref<2x32x324xbf16, #tpu.memory_space<vmem>>, vector<1x32x256xbf16>
    %207 = vector.shape_cast %206 : vector<1x32x256xbf16> to vector<32x256xbf16>
    %208 = vector.broadcast %3 : vector<1x256xbf16> to vector<32x256xbf16>
    %209 = arith.mulf %207, %208 : vector<32x256xbf16>
    %c608_184 = arith.constant 608 : index
    %c256_185 = arith.constant 256 : index
    %210 = vector.load %arg6[%c608_184, %c256_185] : memref<800x512xbf16, #tpu.memory_space<vmem>>, vector<32x256xbf16>
    tpu.vector_store %arg6[%c608_184, %c256_185], %209 {strides = array<i32>} : memref<800x512xbf16, #tpu.memory_space<vmem>>, vector<32x256xbf16>,
    %c1_186 = arith.constant 1 : index
    %c0_187 = arith.constant 0 : index
    %c64_188 = arith.constant 64 : index
    %211 = vector.load %arg1[%c1_186, %c0_187, %c64_188] : memref<2x32x324xbf16, #tpu.memory_space<vmem>>, vector<1x32x256xbf16>
    %212 = vector.shape_cast %211 : vector<1x32x256xbf16> to vector<32x256xbf16>
    %213 = vector.broadcast %0 : vector<1x256xbf16> to vector<32x256xbf16>
    %214 = arith.mulf %212, %213 : vector<32x256xbf16>
    %c640_189 = arith.constant 640 : index
    %c256_190 = arith.constant 256 : index
    %215 = vector.load %arg6[%c640_189, %c256_190] : memref<800x512xbf16, #tpu.memory_space<vmem>>, vector<32x256xbf16>
    tpu.vector_store %arg6[%c640_189, %c256_190], %214 {strides = array<i32>} : memref<800x512xbf16, #tpu.memory_space<vmem>>, vector<32x256xbf16>,
    %c1_191 = arith.constant 1 : index
    %c0_192 = arith.constant 0 : index
    %c65_193 = arith.constant 65 : index
    %216 = vector.load %arg1[%c1_191, %c0_192, %c65_193] : memref<2x32x324xbf16, #tpu.memory_space<vmem>>, vector<1x32x256xbf16>
    %217 = vector.shape_cast %216 : vector<1x32x256xbf16> to vector<32x256xbf16>
    %218 = vector.broadcast %1 : vector<1x256xbf16> to vector<32x256xbf16>
    %219 = arith.mulf %217, %218 : vector<32x256xbf16>
    %c672_194 = arith.constant 672 : index
    %c256_195 = arith.constant 256 : index
    %220 = vector.load %arg6[%c672_194, %c256_195] : memref<800x512xbf16, #tpu.memory_space<vmem>>, vector<32x256xbf16>
    tpu.vector_store %arg6[%c672_194, %c256_195], %219 {strides = array<i32>} : memref<800x512xbf16, #tpu.memory_space<vmem>>, vector<32x256xbf16>,
    %c1_196 = arith.constant 1 : index
    %c0_197 = arith.constant 0 : index
    %c66_198 = arith.constant 66 : index
    %221 = vector.load %arg1[%c1_196, %c0_197, %c66_198] : memref<2x32x324xbf16, #tpu.memory_space<vmem>>, vector<1x32x256xbf16>
    %222 = vector.shape_cast %221 : vector<1x32x256xbf16> to vector<32x256xbf16>
    %c704_199 = arith.constant 704 : index
    %c256_200 = arith.constant 256 : index
    %223 = vector.load %arg6[%c704_199, %c256_200] : memref<800x512xbf16, #tpu.memory_space<vmem>>, vector<32x256xbf16>
    tpu.vector_store %arg6[%c704_199, %c256_200], %222 {strides = array<i32>} : memref<800x512xbf16, #tpu.memory_space<vmem>>, vector<32x256xbf16>,
    %c1_201 = arith.constant 1 : index
    %c0_202 = arith.constant 0 : index
    %c67_203 = arith.constant 67 : index
    %224 = vector.load %arg1[%c1_201, %c0_202, %c67_203] : memref<2x32x324xbf16, #tpu.memory_space<vmem>>, vector<1x32x256xbf16>
    %225 = vector.shape_cast %224 : vector<1x32x256xbf16> to vector<32x256xbf16>
    %226 = vector.broadcast %2 : vector<1x256xbf16> to vector<32x256xbf16>
    %227 = arith.mulf %225, %226 : vector<32x256xbf16>
    %c736_204 = arith.constant 736 : index
    %c256_205 = arith.constant 256 : index
    %228 = vector.load %arg6[%c736_204, %c256_205] : memref<800x512xbf16, #tpu.memory_space<vmem>>, vector<32x256xbf16>
    tpu.vector_store %arg6[%c736_204, %c256_205], %227 {strides = array<i32>} : memref<800x512xbf16, #tpu.memory_space<vmem>>, vector<32x256xbf16>,
    %c1_206 = arith.constant 1 : index
    %c0_207 = arith.constant 0 : index
    %c68_208 = arith.constant 68 : index
    %229 = vector.load %arg1[%c1_206, %c0_207, %c68_208] : memref<2x32x324xbf16, #tpu.memory_space<vmem>>, vector<1x32x256xbf16>
    %230 = vector.shape_cast %229 : vector<1x32x256xbf16> to vector<32x256xbf16>
    %231 = vector.broadcast %3 : vector<1x256xbf16> to vector<32x256xbf16>
    %232 = arith.mulf %230, %231 : vector<32x256xbf16>
    %c768_209 = arith.constant 768 : index
    %c256_210 = arith.constant 256 : index
    %233 = vector.load %arg6[%c768_209, %c256_210] : memref<800x512xbf16, #tpu.memory_space<vmem>>, vector<32x256xbf16>
    tpu.vector_store %arg6[%c768_209, %c256_210], %232 {strides = array<i32>} : memref<800x512xbf16, #tpu.memory_space<vmem>>, vector<32x256xbf16>,
    %c0_211 = arith.constant 0 : index
    %c0_212 = arith.constant 0 : index
    %234 = vector.load %arg2[%c0_211, %c0_212] : memref<32x800xbf16, #tpu.memory_space<vmem>>, vector<32x800xbf16>
    %c0_213 = arith.constant 0 : index
    %c0_214 = arith.constant 0 : index
    %235 = vector.load %arg6[%c0_213, %c0_214] : memref<800x512xbf16, #tpu.memory_space<vmem>>, vector<800x512xbf16>
    %cst = arith.constant dense<0.000000e+00> : vector<32x512xf32>
    %236 = tpu.matmul %234, %235, %cst {dimension_numbers = #tpu.dot_dimension_numbers<[1], [0], [0], [1], [0, 0, 1, 1], [], []>} : vector<32x800xbf16>, vector<800x512xbf16>, vector<32x512xf32> -> vector<32x512xf32>
    %c0_215 = arith.constant 0 : index
    %c0_216 = arith.constant 0 : index
    %237 = vector.load %arg3[%c0_215, %c0_216] : memref<32x1xf32, #tpu.memory_space<vmem>>, vector<32x1xf32>
    %238 = vector.broadcast %237 : vector<32x1xf32> to vector<32x512xf32>
    %239 = arith.addf %236, %238 : vector<32x512xf32>
    %c0_217 = arith.constant 0 : index
    %c0_218 = arith.constant 0 : index
    %240 = vector.load %arg5[%c0_217, %c0_218] : memref<32x512xf32, #tpu.memory_space<vmem>>, vector<32x512xf32>
    tpu.vector_store %arg5[%c0_217, %c0_218], %239 {strides = array<i32>} : memref<32x512xf32, #tpu.memory_space<vmem>>, vector<32x512xf32>,
    return
  }
  func.func @transform_0(%arg0: i32) -> (i32, i32, i32) {
    %c0_i32 = arith.constant 0 : i32
    %c0_i32_0 = arith.constant 0 : i32
    %c0_i32_1 = arith.constant 0 : i32
    return %arg0, %c0_i32, %c0_i32_0 : i32, i32, i32
  }
  func.func @transform_1(%arg0: i32) -> (i32, i32) {
    %c0_i32 = arith.constant 0 : i32
    %c0_i32_0 = arith.constant 0 : i32
    %c0_i32_1 = arith.constant 0 : i32
    return %c0_i32, %c0_i32_0 : i32, i32
  }
  func.func @transform_2(%arg0: i32) -> (i32, i32) {
    %c0_i32 = arith.constant 0 : i32
    %c0_i32_0 = arith.constant 0 : i32
    %c0_i32_1 = arith.constant 0 : i32
    return %c0_i32, %c0_i32_0 : i32, i32
  }
  func.func @transform_3(%arg0: i32) -> (i32, i32) {
    %c0_i32 = arith.constant 0 : i32
    %c0_i32_0 = arith.constant 0 : i32
    %c0_i32_1 = arith.constant 0 : i32
    return %c0_i32, %c0_i32_0 : i32, i32
  }
  func.func @transform_4(%arg0: i32) -> (i32, i32) {
    %c0_i32 = arith.constant 0 : i32
    %c0_i32_0 = arith.constant 0 : i32
    return %c0_i32, %arg0 : i32, i32
  }
}

</mosaic_0001>

<bundles_post_ra>
// kernel: tpu_custom_call.1
= control target key start
LH: loop header
LB: loop body
LE: loop exit
PB: predicated region body
PF: predicated region fallthrough
CT: control target
= control target key end

     0   :  { %9 = vsyncpa [#allocation4], 0  ;;  %s7423_s0 = inlined_call_operand.hbm [shape: bf16[4,32,324], index: 0, kind: input, shape index: {}]   ;;  %s7424_s1 = inlined_call_operand.hbm [shape: bf16[32,800], index: 1, kind: input, shape index: {}]   ;;  %s7425_s2 = inlined_call_operand.vmem [shape: f32[32,1], index: 2, kind: input, shape index: {}]   ;;  %s7426_s3 = inlined_call_operand.vmem [shape: bf16[5,256], index: 3, kind: input, shape index: {}]   ;;  %s7427_s4 = inlined_call_operand.hbm [shape: f32[32,1024], index: 4, kind: output, shape index: {}]  }
   0x1   :  { %11 = vsyncpa [#allocation4 + $0x1], 0 }
   0x2   :  { %12 = vsyncpa [#allocation7], 0 }
   0x3   :  { %13 = vsyncpa [#allocation5], 0 }
   0x4   :  { %15 = vsyncpa [#allocation5 + $0x1], 0  ;;  %s5491_s15 = smov 0   ;;  %s5493_s16 = smov 0  }
   0x5   :  { %s5495_s17 = smov 0   ;;  %s5497_s18 = smov 0  }
   0x6 LB: > { %s5512_s19 = sadd.s32 4294967295, %s5412_s18   ;;  %s4495_s20 = sadd.s32 4294967294, %s5412_s18   ;;  %s5412_s18 = sphi %s5497_s18, %s7484_s18   ;;  %s5408_s17 = sphi %s5495_s17, %s7483_s17   ;;  %s5404_s16 = sphi %s5493_s16, %s7482_s16   ;;  %s5400_s15 = sphi %s5491_s15, %s7481_s15  }
   0x7   : > { %p41_p0 = scmp.ne.s32.totalorder %s5404_s16, %s5400_s15  ;;  %p7428_p1 = scmp.eq.s32.totalorder %s5512_s19, 0 }
   0x8   : > { %p134_p3 = scmp.eq.s32.totalorder %s4495_s20, 1  ;;  %p4496_p5 = scmp.ge.s32.totalorder %s5412_s18, 1 }
   0x9   : > { %p5521_p4 = por %p7428_p1, %p41_p0  ;;  %p141_p7 = scmp.lt.s32.totalorder %s5412_s18, 3 }
   0xa   : > { %p5526_p6 = por %p134_p3, %p41_p0  ;;  %s5414_s24 = smov [#allocation6]  }
   0xb   : > { %s7437_s21 = scalar_select %p5521_p4, 1, 0 }
   0xc   : > { %s7438_s22 = scalar_select %p5526_p6, 1, 0 }
   0xd   : > { %p5531_p8 = pnand %p4496_p5, %p141_p7  ;;  %s153_s25 = sshll.u32 %s5414_s24, 4  ;;  %s5535_s25 = int_to_ptr.vmem [resolvable:$true] %s153_s25 }
   0xe   : > { %s5547_s27 = sadd.s32 1, %s5412_s18   ;;  %s28_s28 = sadd.s32 1, %s5408_s17 }
   0xf   : > { %s7439_s23 = scalar_select %p5531_p8, 1, 0 }
  0x10   : > { %p5106_p9 = pneg %p5531_p8  ;;  %s25_s29 = ssub.s32 %s5412_s18, %s5547_s27 }
  0x11   : > { %s5284_s6 = scalar_lea.hbm %s7424_s1, 1792 }
  0x12   : > { %p5542_p11 = pnand %p5106_p9, %p7428_p1  ;;  %p5285_p12 = scmp.ne.s32.totalorder %s7424_s1, %s5284_s6 }
  0x13   : > { %p5291_p5 = scmp.lt.u32.totalorder %s5284_s6, %s7424_s1 }
  0x14   : > { %p5286_p13 = pneg %p5542_p11 }
  0x16   : > { %p5287_p0 = pnand %p5286_p13, %p5285_p12 }
  0x18   : > { %p5288_p3 = pneg %p5287_p0 }
  0x1a   : > { %p5293_p7 = pnand %p5291_p5, %p5288_p3 }
  0x1c   : > { %5296 = shalt.err (!%p5293_p7)
}
  0x1d   : > { %s5297_s11 = scalar_lea.vmem %s5535_s25, 1792  ;;  %p5305_p2 = scmp.lt.s32.totalorder %s5535_s25, %s5535_s25 }
  0x1e   : > { %p5298_p9 = scmp.ne.s32.totalorder %s5535_s25, %s5297_s11  ;;  %p5306_p6 = scmp.lt.s32.totalorder %s5297_s11, %s5297_s11 }
  0x20   : > { %p5300_p10 = pnand %p5298_p9, %p5286_p13  ;;  %p5307_p4 = por %p5306_p6, %p5305_p2 }
  0x22   : > { %p5301_p1 = pneg %p5300_p10 }
  0x24   : > { %p5308_p8 = pnand %p5307_p4, %p5301_p1 }
  0x26   : > { %5311 = shalt.err (!%p5308_p8)
}
  0x27   : > { %s5415_s12 = smov 448   ;;  %s5416_s13 = smov 28  }
  0x28   : > { %5109 = dma.hbm_to_vmem [thread:$0]  (!%p5542_p11), %s7424_s1, 1792, %s5535_s25, [#allocation7], %s5415_s12, %s5415_s12, %s5416_s13  }
  0x29   : > { %p26_p2 = scmp.eq.s32.totalorder %s25_s29, 0  ;;  %p35_p1 = scmp.ne.s32.totalorder %s5408_s17, %s5404_s16 }
  0x2a   : > { %p36_p4 = scmp.eq.s32.totalorder %s5412_s18, 0  ;;  %p5119_p6 = scmp.lt.s32.totalorder %s5412_s18, 2 }
  0x2b   : > { %s5578_s24 = scalar_select %p26_p2, %s5408_s17, %s28_s28  }
  0x2c   : > { %p37_p8 = por %p36_p4, %p35_p1  ;;  %p7441_p10 = scmp.eq.s32.totalorder %s5512_s19, 1 }
  0x2d   : > { %s173_s5 = sand.u32 1, %s5408_s17   ;;  %s5096_s6 = smul.u32 1536, %s5412_s18 }
  0x2e   : > { %p5582_p12 = por %p7441_p10, %p35_p1  ;;  %s5095_s7 = smul.u32 96, %s173_s5 }
  0x2f   : > { %s5591_s9 = scalar_lea.hbm %s7423_s0, %s5096_s6  ;;  %p5593_p11 = pnand %p5119_p6, %p37_p8 }
  0x30   : > { %s177_s28 = scalar_lea.vmem [#allocation3], %s5095_s7  ;;  %s5599_s10 = scalar_lea.sflag [#allocation4], %s173_s5 }
  0x31   : > { %s185_s29 = sshll.u32 %s177_s28, 4  ;;  %s5312_s11 = scalar_lea.hbm %s5591_s9, 1536  ;;  %s5597_s29 = int_to_ptr.vmem [resolvable:$true] %s185_s29 }
  0x32   : > { %p5313_p13 = scmp.ne.s32.totalorder %s5591_s9, %s5312_s11  ;;  %p5314_p0 = pneg %p5593_p11 }
  0x33   : > { %s5317_s14 = scalar_lea.hbm %s7423_s0, 3072  ;;  %p5318_p7 = scmp.lt.u32.totalorder %s5591_s9, %s7423_s0 }
  0x34   : > { %p5315_p3 = pnand %p5314_p0, %p5313_p13  ;;  %p5319_p9 = scmp.lt.u32.totalorder %s5317_s14, %s5312_s11 }
  0x35   : > { %p5321_p1 = scmp.lt.u32.totalorder %s5312_s11, %s5591_s9 }
  0x36   : > { %p5316_p5 = pneg %p5315_p3  ;;  %p5320_p2 = por %p5319_p9, %p5318_p7 }
  0x38   : > { %p5322_p4 = por %p5321_p1, %p5320_p2 }
  0x3a   : > { %p5323_p6 = pnand %p5322_p4, %p5316_p5 }
  0x3c   : > { %5326 = shalt.err (!%p5323_p6)
}
  0x3d   : > { %s5327_s5 = scalar_lea.vmem %s5597_s29, 1536  ;;  %s5417_s7 = smov [#allocation3]  }
  0x3e   : > { %p5328_p8 = scmp.ne.s32.totalorder %s5597_s29, %s5327_s5  ;;  %s5332_s26 = sshll.u32 %s5417_s7, 4  ;;  %s5333_s26 = int_to_ptr.vmem [resolvable:$false] %s5332_s26 }
  0x3f   : > { %s5334_s8 = scalar_lea.vmem %s5333_s26, 3072  ;;  %p5335_p3 = scmp.lt.s32.totalorder %s5597_s29, %s5333_s26 }
  0x40   : > { %p5330_p10 = pnand %p5328_p8, %p5314_p0  ;;  %p5336_p7 = scmp.lt.s32.totalorder %s5334_s8, %s5327_s5 }
  0x42   : > { %p5331_p13 = pneg %p5330_p10  ;;  %p5337_p9 = por %p5336_p7, %p5335_p3 }
  0x44   : > { %p5338_p2 = pnand %p5337_p9, %p5331_p13 }
  0x46   : > { %5341 = shalt.err (!%p5338_p2)
}
  0x47   : > { %s5418_s28 = smov 192   ;;  %s5419_s11 = smov 12  }
  0x48   : > { %5113 = dma.hbm_to_vmem [thread:$0]  (!%p5593_p11), %s5591_s9, 1536, %s5597_s29, %s5599_s10, %s5418_s28, %s5418_s28, %s5419_s11  }
  0x49   : > { %p7444_p0 = scmp.ne.s32.totalorder %s7439_s23, 0 }
  0x4b   : > { %197 = sbr.rel (%p7444_p0) target bundleno = 1170 (0x492), region = 36 }
  0x52   : > { %s5630_s12 = sand.u32 1, %s5404_s16   ;;  %p7445_p5 = scmp.ne.s32.totalorder %s7437_s21, 0 }
  0x53   : > { %s5097_s13 = smul.u32 96, %s5630_s12  ;;  %s200_s14 = scalar_lea.sflag [#allocation4], %s5630_s12 }
  0x55   : > { %s5634_s20 = scalar_lea.vmem [#allocation3], %s5097_s13 }
  0x56   : > { %5387 = dma.done.wait (%p7445_p5), %s200_s14, 1536  }
  0x57   : > { %5389 = vsyncadd (%p7445_p5), %s200_s14, 4294965760  ;;  %p7446_p11 = scmp.eq.s32.totalorder %s5512_s19, 0 }
  0x59   : > { %5391 = dma.done.wait (%p7446_p11), [#allocation7], 1792   ;;  %p7447_p1 = pmov %p7446_p11 }
  0x5a   : > { %v250_v0 = vlaneseq  ;;  %v5645_v2 = vld [vmem:[%s5634_s20] sm:$0xff]  ;;  %v5648_v3 = vld [vmem:[%s5634_s20 + $0xc] sm:$0xff]  ;;  %v5651_v4 = vld [vmem:[%s5634_s20 + $0x18] sm:$0xff]  ;;  %s5420_s21 = smov 126   ;;  %s5421_s5 = smov 4   ;;  %vm582_vm0 = vcmask 31744  }
  0x5b   : > { %5393 = vsyncadd (%p7447_p1), [#allocation7], 4294965504  ;;  %v4520_v5 = vcombine.high %v5645_v2, %v5648_v3  ;;  %v4519_v6 = vcombine.low %v5645_v2, %v5648_v3  ;;  %v5658_v7 = vld [vmem:[%s5634_s20 + $0x24] sm:$0xff]  ;;  %v5210_v25 = vld [vmem:[%s5634_s20 + $0x20] ss:$12 sps:$4 sm:$0xff]   ;;  %s5422_s7 = smov 3  }
  0x5c   : > { %v251_v1 = vshrl.u32 %v250_v0, 7  ;;  %v4522_v9 = vcombine.low %v5651_v4, %v5658_v7  ;;  %v5209_v10 = vld [vmem:[%s5634_s20 + $0x8] ss:$12 sps:$4 sm:$0xff]   ;;  %v237_v11 = vld [vmem:[%s7426_s3] sm:$0x44]  ;;  %v4523_v21 = vcombine.high %v5651_v4, %v5658_v7  ;;  %s5423_s26 = smov 1  }
  0x5d   : > { %424 = vrot.lane.b32.xlu0 %v4520_v5, %s5420_s21  ;;  %422 = vrot.lane.b32.xlu1 %v4519_v6, %s5420_s21  ;;  %v4534_v13 = vcombine.low %v237_v11, %v237_v11  ;;  %v4535_v14 = vcombine.high %v237_v11, %v237_v11  ;;  %v236_v15 = vld [vmem:[%s7426_s3] sm:$0x22]  ;;  %v235_v16 = vld [vmem:[%s7426_s3] sm:$0x11]  ;;  %s5424_s8 = smov 16   ;;  %s5425_s28 = smov 17  }
  0x5e   : > { %v565_v8 = vsub.s32 2, %v251_v1  ;;  %v466_v12 = vsub.s32 1, %v251_v1  ;;  %v4525_v17 = vcombine.low %v236_v15, %v236_v15  ;;  %v4526_v18 = vcombine.high %v236_v15, %v236_v15  ;;  %s5426_s11 = smov 110   ;;  %v5218_v48 = vld [vmem:[%s5634_s20 + $0x8] ss:$12 sps:$4 sm:$0xff]   ;;  %s5427_s13 = smov 19  }
  0x5f   : > { %v4505_v19 = vcombine.low %v235_v16, %v235_v16  ;;  %v4506_v20 = vcombine.high %v235_v16, %v235_v16  ;;  %v561_v22 = vpack.i.b16 %v4534_v13, %v4534_v13  ;;  %v568_v23 = vpack.i.b16 %v4535_v14, %v4535_v14  ;;  %v5219_v49 = vld [vmem:[%s5634_s20 + $0x20] ss:$12 sps:$4 sm:$0xff]   ;;  %s5428_s14 = smov 20   ;;  %s5429_s23 = smov 32   ;;  %v548_v61 = vld [vmem:[%s5634_s20 + $0x8] sm:$0xf] }
  0x60   : > { %v252_v24 = vsub.s32 0, %v251_v1  ;;  %v461_v26 = vshrl.u32 %v4525_v17, 16  ;;  %v469_v27 = vshrl.u32 %v4526_v18, 16  ;;  %s5430_s9 = smov 33   ;;  %v552_v58 = vld [vmem:[%s5634_s20 + $0x20] sm:$0xf] }
  0x61   : > { %428 = vrot.lane.b32.xlu0 %v4522_v9, %s5420_s21  ;;  %426 = vrot.lane.b32.xlu1 %v5209_v10, %s5420_s21  ;;  %v255_v28 = vpack.i.b16 %v4506_v20, %v4506_v20  ;;  %v303_v29 = vshrl.u32 %v4505_v19, 16  ;;  %v566_v30 = vrot.slane %v561_v22, %v565_v8  ;;  %v573_v31 = vrot.slane %v568_v23, %v565_v8  ;;  %v554_v59 = vld [vmem:[%s5634_s20 + $0x2c] sm:$0xf]  ;;  %v550_v62 = vld [vmem:[%s5634_s20 + $0x14] sm:$0xf]  ;;  %s5431_s25 = smov 124  }
  0x62   : > { %v310_v32 = vshrl.u32 %v4506_v20, 16  ;;  %v248_v33 = vpack.i.b16 %v4505_v19, %v4505_v19  ;;  %v462_v34 = vpack.i.b16 %v461_v26, %v461_v26  ;;  %v470_v35 = vpack.i.b16 %v469_v27, %v469_v27  ;;  %v652_v10 = vld [vmem:[%s5634_s20 + $0x2c] sm:$0xf]  ;;  %v646_v13 = vld [vmem:[%s5634_s20 + $0x8] sm:$0xf]  ;;  %s5432_s29 = smov 112  }
  0x63   : > { %v304_v36 = vpack.i.b16 %v303_v29, %v303_v29  ;;  %v5679_v37 = vcombine.low %v566_v30, %v573_v31  ;;  %v260_v38 = vrot.slane %v255_v28, %v252_v24  ;;  %v648_v14 = vld [vmem:[%s5634_s20 + $0x14] sm:$0xf]  ;;  %v927_v30 = vld [vmem:[%s5634_s20 + $0x8] sm:$0xf]  ;;  %s5433_s10 = smov 108   ;;  %vm656_vm1 = vcmask 130048  }
  0x64   : > { %v311_v39 = vpack.i.b16 %v310_v32, %v310_v32  ;;  %v253_v40 = vrot.slane %v248_v33, %v252_v24  ;;  %v467_v41 = vrot.slane %v462_v34, %v466_v12  ;;  %v475_v42 = vrot.slane %v470_v35, %v466_v12  ;;  %v929_v33 = vld [vmem:[%s5634_s20 + $0x14] sm:$0xf]  ;;  %v931_v34 = vld [vmem:[%s5634_s20 + $0x20] sm:$0xf]  ;;  %v933_v35 = vld [vmem:[%s5634_s20 + $0x2c] sm:$0xf] }
  0x65   : > { %432 = vrot.lane.b32.xlu0 %v5210_v25, %s5420_s21  ;;  %430 = vrot.lane.b32.xlu1 %v4523_v21, %s5420_s21  ;;  %v309_v43 = vrot.slane %v304_v36, %v252_v24  ;;  %s5434_s6 = smov 96   ;;  %vm937_vm2 = vcmask 162816   ;;  %vm1011_vm3 = vcmask 261120   ;;  %vm1085_vm4 = vcmask 269312  }
  0x66   : > { %v316_v44 = vrot.slane %v311_v39, %v252_v24  ;;  %v5683_v45 = vcombine.low %v467_v41, %v475_v42  ;;  %v5689_v47 = vcombine.low %v253_v40, %v260_v38  ;;  %v1005_v38 = vld [vmem:[%s5634_s20 + $0x20] sm:$0xf]  ;;  %v1007_v39 = vld [vmem:[%s5634_s20 + $0x2c] sm:$0xf]  ;;  %v1001_v41 = vld [vmem:[%s5634_s20 + $0x8] sm:$0xf] }
  0x67   : > { %v1003_v42 = vld [vmem:[%s5634_s20 + $0x14] sm:$0xf]  ;;  %vm325_vm5 = vcmask 7168   ;;  %vm484_vm6 = vcmask 23552   ;;  %vm730_vm7 = vcmask 138240   ;;  %vm863_vm8 = vcmask 154624  }
  0x68   : > { %v5687_v46 = vcombine.low %v309_v43, %v316_v44  ;;  %vm375_vm9 = vcmask 1039360   ;;  %vm434_vm10 = vcmask 1031168   ;;  %vm534_vm11 = vcmask 1022976  }
  0x69   : > { %579 = vrot.lane.b32.xlu0 %v5679_v37, %s5421_s5  ;;  %481 = vrot.lane.b32.xlu1 %v5683_v45, %s5422_s7  ;;  %s5435_s5 = smov 127   ;;  %s5436_s7 = smov 125   ;;  %vm632_vm12 = vcmask 1014784   ;;  %vm706_vm13 = vcmask 916480   ;;  %vm780_vm14 = vcmask 908288   ;;  %vm839_vm15 = vcmask 900096  }
  0x6d   : > { %322 = vrot.lane.b32.xlu0 %v5687_v46, %s5423_s26  ;;  %653 = vrot.lane.b32.xlu1 %v5689_v47, %s5424_s8  ;;  %s5437_s26 = smov 111   ;;  %s5438_s8 = smov 109  }
  0x71   : > { %727 = vrot.lane.b32.xlu0 %v5687_v46, %s5425_s28  ;;  %827 = vrot.lane.b32.xlu1 %v4519_v6, %s5426_s11  ;;  %s5439_s28 = smov 95  }
  0x75   : > { %829 = vrot.lane.b32.xlu0 %v4520_v5, %s5426_s11  ;;  %831 = vrot.lane.b32.xlu1 %v5218_v48, %s5426_s11 }
  0x79   : > { %833 = vrot.lane.b32.xlu0 %v4522_v9, %s5426_s11  ;;  %835 = vrot.lane.b32.xlu1 %v4523_v21, %s5426_s11  ;;  %v650_v9 = vld [vmem:[%s5634_s20 + $0x20] sm:$0xf] }
  0x7d   : > { %837 = vrot.lane.b32.xlu0 %v5219_v49, %s5426_s11  ;;  %860 = vrot.lane.b32.xlu1 %v5683_v45, %s5427_s13  ;;  %s5441_s13 = smov 36  }
  0x81   : > { %934 = vrot.lane.b32.xlu0 %v5679_v37, %s5428_s14  ;;  %1008 = vrot.lane.b32.xlu1 %v5689_v47, %s5429_s23  ;;  %s5442_s14 = smov 48  }
  0x85   : > { %1082 = vrot.lane.b32.xlu0 %v5687_v46, %s5430_s9  ;;  %s5443_s9 = smov 49  }
  0xcf   : > { %v5707_v50 = vpop.permute.xlu0 %424  ;;  %v5709_v51 = vpop.permute.xlu1 %422 }
  0xd3   : > { %v5711_v52 = vpop.permute.xlu0 %428  ;;  %v5713_v53 = vpop.permute.xlu1 %426 }
  0xd7   : > { %v5715_v54 = vpop.permute.xlu0 %432  ;;  %v5717_v55 = vpop.permute.xlu1 %430 }
  0xdb   : > { %v5719_v56 = vpop.permute.xlu0 %579  ;;  %v5721_v57 = vpop.permute.xlu1 %481 }
  0xdc   : > { %v5726_v60 = vrot.slane %v5719_v56, 4 }
  0xde   : > { %v591_v63 = vmul.bf16 %v5726_v60, %v552_v58  ;;  %v593_v0 = vmul.bf16 %v5726_v60, %v554_v59  ;;  %v587_v6 = vmul.bf16 %v5726_v60, %v548_v61  ;;  %v589_v8 = vmul.bf16 %v5726_v60, %v550_v62 }
  0xdf   : > { %v5732_v1 = vpop.permute.xlu0 %322  ;;  %v5734_v5 = vpop.permute.xlu1 %653 }
  0xe0   : > { %v5741_v11 = vrot.slane %v5734_v5, 4  ;;  %v4542_v12 = vcombine.low %v591_v63, %v593_v0  ;;  %v4539_v15 = vcombine.low %v587_v6, %v589_v8  ;;  %v5794_v0 = vsel %vm582_vm0, %v5726_v60, %v5719_v56 }
  0xe1   : > { %vm913_vm0 = vcmask 891904  }
  0xe2   : > { %630 = vrot.lane.b32.xlu0 %v4542_v12, %s5431_s25  ;;  %v665_v16 = vmul.bf16 %v5741_v11, %v650_v9  ;;  %v667_v17 = vmul.bf16 %v5741_v11, %v652_v10  ;;  %624 = vrot.lane.b32.xlu1 %v4539_v15, %s5431_s25  ;;  %v661_v20 = vmul.bf16 %v5741_v11, %v646_v13 }
  0xe3   : > { %v5749_v18 = vpop.permute.xlu0 %727  ;;  %v5751_v19 = vpop.permute.xlu1 %827  ;;  %v663_v21 = vmul.bf16 %v5741_v11, %v648_v14  ;;  %v586_v10 = vmul.bf16 %v5794_v0, %v5645_v2  ;;  %v588_v12 = vmul.bf16 %v5794_v0, %v5648_v3  ;;  %v590_v13 = vmul.bf16 %v5794_v0, %v5651_v4 }
  0xe4   : > { %v4548_v22 = vcombine.low %v665_v16, %v667_v17  ;;  %v592_v14 = vmul.bf16 %v5794_v0, %v5658_v7  ;;  %v5810_v15 = vsel %vm656_vm1, %v5741_v11, %v5734_v5  ;;  %vm987_vm1 = vcmask 883712  }
  0xe5   : > { %v4545_v23 = vcombine.low %v661_v20, %v663_v21  ;;  %v4537_v56 = vcombine.low %v586_v10, %v588_v12  ;;  %v4538_v16 = vcombine.high %v586_v10, %v588_v12  ;;  %v660_v20 = vmul.bf16 %v5810_v15, %v5645_v2  ;;  %v296_v10 = vld [vmem:[%s5634_s20 + $0x8] sm:$0xf] }
  0xe6   : > { %704 = vrot.lane.b32.xlu1 %v4548_v22, %s5432_s29  ;;  %v4541_v17 = vcombine.high %v590_v13, %v592_v14  ;;  %v662_v21 = vmul.bf16 %v5810_v15, %v5648_v3  ;;  %v4540_v22 = vcombine.low %v590_v13, %v592_v14  ;;  %v300_v14 = vld [vmem:[%s5634_s20 + $0x20] sm:$0xf] }
  0xe7   : > { %v5755_v24 = vpop.permute.xlu0 %829  ;;  %v5757_v25 = vpop.permute.xlu1 %831  ;;  %698 = vrot.lane.b32.xlu0 %v4545_v23, %s5432_s29  ;;  %v664_v23 = vmul.bf16 %v5810_v15, %v5651_v4 }
  0xe8   : > { %v4544_v5 = vcombine.high %v660_v20, %v662_v21 }
  0xeb   : > { %v5761_v26 = vpop.permute.xlu0 %833  ;;  %v5763_v27 = vpop.permute.xlu1 %835 }
  0xec   : > { %7448 = vst [vmem:[#allocation12_spill] sm:$0xff] %v5761_v26 }
  0xef   : > { %v5765_v28 = vpop.permute.xlu0 %837  ;;  %v5767_v29 = vpop.permute.xlu1 %860 }
  0xf3   : > { %v935_v31 = vpop.permute.xlu0 %934  ;;  %v5770_v32 = vpop.permute.xlu1 %1008 }
  0xf4   : > { %v5775_v36 = vrot.slane %v935_v31, 4  ;;  %v5780_v40 = vrot.slane %v5770_v32, 4 }
  0xf6   : > { %v942_v43 = vmul.bf16 %v5775_v36, %v927_v30  ;;  %v944_v44 = vmul.bf16 %v5775_v36, %v929_v33  ;;  %v946_v48 = vmul.bf16 %v5775_v36, %v931_v34  ;;  %v948_v49 = vmul.bf16 %v5775_v36, %v933_v35 }
  0xf7   : > { %v1020_v58 = vmul.bf16 %v5780_v40, %v1005_v38  ;;  %v1022_v59 = vmul.bf16 %v5780_v40, %v1007_v39  ;;  %v1016_v62 = vmul.bf16 %v5780_v40, %v1001_v41  ;;  %v1018_v63 = vmul.bf16 %v5780_v40, %v1003_v42 }
  0xf8   : > { %v4569_v61 = vcombine.low %v942_v43, %v944_v44  ;;  %v4572_v6 = vcombine.low %v946_v48, %v948_v49  ;;  %v666_v30 = vmul.bf16 %v5810_v15, %v5658_v7  ;;  %v5825_v33 = vsel %vm937_vm2, %v5775_v36, %v935_v31  ;;  %v1083_v49 = vpop.permute.xlu0 %1082 }
  0xf9   : > { %v4578_v8 = vcombine.low %v1020_v58, %v1022_v59  ;;  %v4575_v9 = vcombine.low %v1016_v62, %v1018_v63  ;;  %v4543_v34 = vcombine.low %v660_v20, %v662_v21  ;;  %v941_v38 = vmul.bf16 %v5825_v33, %v5645_v2 }
  0xfa   : > { %979 = vrot.lane.b32.xlu1 %v4569_v61, %s5433_s10  ;;  %985 = vrot.lane.b32.xlu0 %v4572_v6, %s5433_s10  ;;  %v4546_v35 = vcombine.low %v664_v23, %v666_v30  ;;  %v943_v39 = vmul.bf16 %v5825_v33, %v5648_v3  ;;  %v4547_v41 = vcombine.high %v664_v23, %v666_v30  ;;  %v5854_v63 = vrot.slane %v5732_v1, 4 }
  0xfb   : > { %v945_v42 = vmul.bf16 %v5825_v33, %v5651_v4  ;;  %v947_v43 = vmul.bf16 %v5825_v33, %v5658_v7  ;;  %v5842_v44 = vsel %vm1011_vm3, %v5780_v40, %v5770_v32  ;;  %v5850_v32 = vrot.slane %v1083_v49, 4 }
  0xfc   : > { %v4567_v31 = vcombine.low %v941_v38, %v943_v39  ;;  %v4568_v48 = vcombine.high %v941_v38, %v943_v39  ;;  %v1015_v59 = vmul.bf16 %v5842_v44, %v5645_v2  ;;  %v1017_v61 = vmul.bf16 %v5842_v44, %v5648_v3  ;;  %v454_v38 = vld [vmem:[%s5634_s20 + $0x2c] sm:$0xf] }
  0xfd   : > { %v4571_v58 = vcombine.high %v945_v42, %v947_v43  ;;  %v4570_v62 = vcombine.low %v945_v42, %v947_v43  ;;  %v5864_v13 = vsel %vm1085_vm4, %v5850_v32, %v1083_v49  ;;  %v334_v30 = vmul.bf16 %v5854_v63, %v300_v14  ;;  %v238_v14 = vld [vmem:[%s5634_s20] sm:$0xff] }
  0xfe   : > { %1059 = vrot.lane.b32.xlu1 %v4578_v8, %s5434_s6  ;;  %1053 = vrot.lane.b32.xlu0 %v4575_v9, %s5434_s6  ;;  %v4574_v6 = vcombine.high %v1015_v59, %v1017_v61  ;;  %v1019_v8 = vmul.bf16 %v5842_v44, %v5651_v4  ;;  %v1021_v9 = vmul.bf16 %v5842_v44, %v5658_v7  ;;  %v5885_v39 = vrot.slane %v5721_v57, 4 }
  0xff   : > { %v4573_v12 = vcombine.low %v1015_v59, %v1017_v61  ;;  %v5891_v42 = vrot.slane %v5749_v18, 4  ;;  %v722_v59 = vld [vmem:[%s5634_s20 + $0x14] sm:$0xf]  ;;  %vm1061_vm2 = vcmask 785408   ;;  %vm1135_vm4 = vcmask 777216  }
 0x100   : > { %v4576_v20 = vcombine.low %v1019_v8, %v1021_v9  ;;  %v4577_v23 = vcombine.high %v1019_v8, %v1021_v9  ;;  %v495_v49 = vmul.bf16 %v5885_v39, %v454_v38  ;;  %v724_v9 = vld [vmem:[%s5634_s20 + $0x20] sm:$0xf]  ;;  %v859_v38 = vld [vmem:[%s5634_s20 + $0x2c] sm:$0xf] }
 0x102   : > { %620 = vrot.lane.b32.xlu1 %v4537_v56, %s5431_s25  ;;  %622 = vrot.lane.b32.xlu0 %v4538_v16, %s5431_s25  ;;  %v298_v56 = vld [vmem:[%s5634_s20 + $0x14] sm:$0xf]  ;;  %v302_v16 = vld [vmem:[%s5634_s20 + $0x2c] sm:$0xf] }
 0x103   : > { %v332_v21 = vmul.bf16 %v5854_v63, %v298_v56  ;;  %v737_v56 = vmul.bf16 %v5891_v42, %v722_v59 }
 0x106   : > { %628 = vrot.lane.b32.xlu1 %v4541_v17, %s5431_s25  ;;  %626 = vrot.lane.b32.xlu0 %v4540_v22, %s5431_s25  ;;  %v330_v17 = vmul.bf16 %v5854_v63, %v296_v10  ;;  %v5874_v22 = vmul.bf16 %v5864_v13, %v5651_v4  ;;  %v726_v10 = vld [vmem:[%s5634_s20 + $0x2c] sm:$0xf] }
 0x108   : > { %7449 = vst [vmem:[#allocation13_spill] sm:$0xff] %v5874_v22  ;;  %v4515_v43 = vcombine.low %v330_v17, %v332_v21 }
 0x10a   : > { %696 = vrot.lane.b32.xlu1 %v4544_v5, %s5432_s29  ;;  %694 = vrot.lane.b32.xlu0 %v4543_v34, %s5432_s29  ;;  %v5878_v5 = vmul.bf16 %v5864_v13, %v5658_v7  ;;  %v336_v34 = vmul.bf16 %v5854_v63, %v302_v16  ;;  %v239_v16 = vld [vmem:[%s5634_s20 + $0xc] sm:$0xff] }
 0x10b   : > { %v268_v21 = vmul.bf16 %v5689_v47, %v239_v16 }
 0x10c   : > { %7450 = vst [vmem:[#allocation14_spill] sm:$0xff] %v5878_v5 }
 0x10e   : > { %700 = vrot.lane.b32.xlu1 %v4546_v35, %s5432_s29  ;;  %702 = vrot.lane.b32.xlu0 %v4547_v41, %s5432_s29  ;;  %v452_v35 = vld [vmem:[%s5634_s20 + $0x20] sm:$0xf]  ;;  %v448_v41 = vld [vmem:[%s5634_s20 + $0x8] sm:$0xf] }
 0x112   : > { %975 = vrot.lane.b32.xlu1 %v4567_v31, %s5433_s10  ;;  %977 = vrot.lane.b32.xlu0 %v4568_v48, %s5433_s10  ;;  %v450_v31 = vld [vmem:[%s5634_s20 + $0x14] sm:$0xf]  ;;  %v493_v48 = vmul.bf16 %v5885_v39, %v452_v35  ;;  %v857_v35 = vld [vmem:[%s5634_s20 + $0x20] sm:$0xf] }
 0x113   : > { %v491_v8 = vmul.bf16 %v5885_v39, %v450_v31  ;;  %v5918_v31 = vrot.slane %v5767_v29, 4 }
 0x114   : > { %v4533_v17 = vcombine.low %v493_v48, %v495_v49  ;;  %v1075_v48 = vld [vmem:[%s5634_s20 + $0x8] sm:$0xf] }
 0x116   : > { %983 = vrot.lane.b32.xlu1 %v4571_v58, %s5433_s10  ;;  %981 = vrot.lane.b32.xlu0 %v4570_v62, %s5433_s10  ;;  %v720_v58 = vld [vmem:[%s5634_s20 + $0x8] sm:$0xf]  ;;  %v4518_v62 = vcombine.low %v334_v30, %v336_v34  ;;  %v739_v30 = vmul.bf16 %v5891_v42, %v724_v9  ;;  %v741_v34 = vmul.bf16 %v5891_v42, %v726_v10 }
 0x117   : > { %v872_v9 = vmul.bf16 %v5918_v31, %v857_v35  ;;  %v874_v10 = vmul.bf16 %v5918_v31, %v859_v38 }
 0x11a   : > { %1051 = vrot.lane.b32.xlu1 %v4574_v6, %s5434_s6  ;;  %1049 = vrot.lane.b32.xlu0 %v4573_v12, %s5434_s6  ;;  %v489_v6 = vmul.bf16 %v5885_v39, %v448_v41  ;;  %v735_v12 = vmul.bf16 %v5891_v42, %v720_v58  ;;  %v853_v41 = vld [vmem:[%s5634_s20 + $0x8] sm:$0xf] }
 0x11c   : > { %v4551_v59 = vcombine.low %v735_v12, %v737_v56  ;;  %v868_v12 = vmul.bf16 %v5918_v31, %v853_v41 }
 0x11e   : > { %1055 = vrot.lane.b32.xlu1 %v4576_v20, %s5434_s6  ;;  %1057 = vrot.lane.b32.xlu0 %v4577_v23, %s5434_s6  ;;  %v267_v20 = vmul.bf16 %v5689_v47, %v238_v14  ;;  %v4530_v23 = vcombine.low %v489_v6, %v491_v8  ;;  %v240_v6 = vld [vmem:[%s5634_s20 + $0x18] sm:$0xff]  ;;  %v241_v8 = vld [vmem:[%s5634_s20 + $0x24] sm:$0xff] }
 0x11f   : > { %v269_v14 = vmul.bf16 %v5689_v47, %v240_v6  ;;  %v270_v16 = vmul.bf16 %v5689_v47, %v241_v8 }
 0x120   : > { %v4509_v49 = vcombine.high %v267_v20, %v268_v21  ;;  %v4508_v58 = vcombine.low %v267_v20, %v268_v21  ;;  %v4554_v20 = vcombine.low %v739_v30, %v741_v34  ;;  %v1090_v21 = vmul.bf16 %v5850_v32, %v1075_v48 }
 0x121   : > { %v4511_v35 = vcombine.high %v269_v14, %v270_v16  ;;  %v4510_v38 = vcombine.low %v269_v14, %v270_v16 }
 0x122   : > { %367 = vrot.lane.b32.xlu1 %v4515_v43, %s5435_s5  ;;  %373 = vrot.lane.b32.xlu0 %v4518_v62, %s5435_s5  ;;  %v855_v43 = vld [vmem:[%s5634_s20 + $0x14] sm:$0xf] }
 0x123   : > { %v1077_v62 = vld [vmem:[%s5634_s20 + $0x14] sm:$0xf]  ;;  %3958 = vmatprep.subr.bf16.mxu0 %v4509_v49  ;;  %v870_v56 = vmul.bf16 %v5918_v31, %v855_v43  ;;  %v4566_v49 = vcombine.low %v872_v9, %v874_v10 }
 0x124   : > { %3959 = vmatpush1.bf16.msra.mxu0 %v4508_v58 }
 0x125   : > { %3960 = vmatprep.subr.bf16.mxu0 %v4511_v35 }
 0x126   : > { %532 = vrot.lane.b32.xlu1 %v4533_v17, %s5436_s7  ;;  %526 = vrot.lane.b32.xlu0 %v4530_v23, %s5436_s7  ;;  %v5934_v17 = vsel %vm325_vm5, %v5854_v63, %v5732_v1  ;;  %v1092_v23 = vmul.bf16 %v5850_v32, %v1077_v62  ;;  %v4563_v1 = vcombine.low %v868_v12, %v870_v56  ;;  %vm1218_vm5 = vcmask 285696  }
 0x127   : > { %v329_v30 = vmul.bf16 %v5645_v2, %v5934_v17  ;;  %v331_v34 = vmul.bf16 %v5648_v3, %v5934_v17  ;;  %v333_v48 = vmul.bf16 %v5651_v4, %v5934_v17  ;;  %v335_v58 = vmul.bf16 %v5658_v7, %v5934_v17 }
 0x128   : > { %3961 = vmatpush1.bf16.msra.mxu0 %v4510_v38  ;;  %v4581_v41 = vcombine.low %v1090_v21, %v1092_v23 }
 0x129   : > { %v4513_v43 = vcombine.low %v329_v30, %v331_v34  ;;  %v4514_v62 = vcombine.high %v329_v30, %v331_v34  ;;  %v4516_v6 = vcombine.low %v333_v48, %v335_v58 }
 0x12a   : > { %772 = vrot.lane.b32.xlu1 %v4551_v59, %s5437_s26  ;;  %778 = vrot.lane.b32.xlu0 %v4554_v20, %s5437_s26  ;;  %v5954_v59 = vsel %vm484_vm6, %v5885_v39, %v5721_v57  ;;  %v4517_v57 = vcombine.high %v333_v48, %v335_v58  ;;  %v5970_v20 = vsel %vm730_vm7, %v5891_v42, %v5749_v18  ;;  %vm1292_vm6 = vcmask 293888  }
 0x12b   : > { %v488_v8 = vmul.bf16 %v5954_v59, %v5645_v2  ;;  %v490_v9 = vmul.bf16 %v5954_v59, %v5648_v3  ;;  %v492_v14 = vmul.bf16 %v5954_v59, %v5651_v4  ;;  %v494_v16 = vmul.bf16 %v5954_v59, %v5658_v7 }
 0x12c   : > { %v734_v21 = vmul.bf16 %v5970_v20, %v5645_v2  ;;  %v736_v23 = vmul.bf16 %v5970_v20, %v5648_v3  ;;  %v738_v38 = vmul.bf16 %v5970_v20, %v5651_v4  ;;  %vm1366_vm7 = vcmask 392192  }
 0x12d   : > { %v4528_v10 = vcombine.low %v488_v8, %v490_v9  ;;  %v4529_v12 = vcombine.high %v488_v8, %v490_v9  ;;  %v4532_v56 = vcombine.high %v492_v14, %v494_v16  ;;  %v4531_v35 = vcombine.low %v492_v14, %v494_v16 }
 0x12e   : > { %911 = vrot.lane.b32.xlu1 %v4566_v49, %s5438_s8  ;;  %905 = vrot.lane.b32.xlu0 %v4563_v1, %s5438_s8  ;;  %v4550_v18 = vcombine.high %v734_v21, %v736_v23  ;;  %v740_v49 = vmul.bf16 %v5970_v20, %v5658_v7  ;;  %v5986_v1 = vsel %vm863_vm8, %v5918_v31, %v5767_v29  ;;  %vm1440_vm8 = vcmask 400384  }
 0x12f   : > { %v4549_v30 = vcombine.low %v734_v21, %v736_v23  ;;  %v871_v48 = vmul.bf16 %v5986_v1, %v5651_v4  ;;  %v873_v58 = vmul.bf16 %v5986_v1, %v5658_v7  ;;  %v6013_v7 = vld [vmem:[%s5634_s20 + $0x48] sm:$0xff]  ;;  %v1091_v21 = vmul.bf16 %v5864_v13, %v5648_v3 }
 0x130   : > { %v4552_v34 = vcombine.low %v738_v38, %v740_v49  ;;  %v4553_v29 = vcombine.high %v738_v38, %v740_v49  ;;  %v2071_v23 = vmul.bf16 %v6013_v7, %v5689_v47 }
 0x131   : > { %v4565_v16 = vcombine.high %v871_v48, %v873_v58  ;;  %v4564_v49 = vcombine.low %v871_v48, %v873_v58 }
 0x132   : > { %1127 = vrot.lane.b32.xlu1 %v4581_v41, %s5439_s28  ;;  %363 = vrot.lane.b32.xlu0 %v4513_v43, %s5435_s5  ;;  %v867_v41 = vmul.bf16 %v5986_v1, %v5645_v2  ;;  %v869_v43 = vmul.bf16 %v5986_v1, %v5648_v3  ;;  %v4674_v3 = vld [vmem:[%s5634_s20 + $0x44] sm:$0xf] }
 0x133   : > { %v2108_v58 = vmul.bf16 %v4674_v3, %v5854_v63 }
 0x134   : > { %v4561_v8 = vcombine.low %v867_v41, %v869_v43  ;;  %v4562_v14 = vcombine.high %v867_v41, %v869_v43 }
 0x136   : > { %365 = vrot.lane.b32.xlu1 %v4514_v62, %s5435_s5  ;;  %369 = vrot.lane.b32.xlu0 %v4516_v6, %s5435_s5  ;;  %v6001_v62 = vld [vmem:[%s5634_s20 + $0x30] sm:$0xff]  ;;  %v6004_v6 = vld [vmem:[%s5634_s20 + $0x3c] sm:$0xff] }
 0x137   : > { %v2069_v9 = vmul.bf16 %v6001_v62, %v5689_v47  ;;  %v2105_v41 = vmul.bf16 %v6001_v62, %v5934_v17  ;;  %v2107_v43 = vmul.bf16 %v6004_v6, %v5934_v17 }
 0x13a   : > { %371 = vrot.lane.b32.xlu1 %v4517_v57, %s5435_s5  ;;  %522 = vrot.lane.b32.xlu0 %v4528_v10, %s5436_s7  ;;  %v2070_v57 = vmul.bf16 %v6004_v6, %v5689_v47 }
 0x13c   : > { %v4668_v10 = vcombine.high %v2069_v9, %v2070_v57  ;;  %v4667_v4 = vcombine.low %v2069_v9, %v2070_v57  ;;  %v2109_v57 = vmul.bf16 %v6013_v7, %v5934_v17 }
 0x13e   : > { %524 = vrot.lane.b32.xlu1 %v4529_v12, %s5436_s7  ;;  %530 = vrot.lane.b32.xlu0 %v4532_v56, %s5436_s7  ;;  %v6016_v12 = vld [vmem:[%s5634_s20 + $0x54] sm:$0xff]  ;;  %v1089_v56 = vmul.bf16 %v5864_v13, %v5645_v2 }
 0x13f   : > { %4170 = vmatprep.subr.bf16.mxu1 %v4668_v10  ;;  %v4672_v2 = vld [vmem:[%s5634_s20 + $0x38] sm:$0xf]  ;;  %v2111_v10 = vmul.bf16 %v6016_v12, %v5934_v17  ;;  %v5230_v17 = vld [vmem:[#allocation6 + $0x4] ss:$28 sps:$4 sm:$0xff]   ;;  %v6074_v3 = vcombine.high %v6013_v7, %v6016_v12 }
 0x140   : > { %4171 = vmatpush1.bf16.msra.mxu1 %v4667_v4  ;;  %v2106_v48 = vmul.bf16 %v4672_v2, %v5854_v63  ;;  %v4676_v4 = vld [vmem:[%s5634_s20 + $0x50] sm:$0xf]  ;;  %3990 = vmatprep.mubr.bf16.mxu0 %v5230_v17  ;;  %v6069_v2 = vcombine.low %v6001_v62, %v6004_v6 }
 0x141   : > { %4202 = vmatprep.mubr.bf16.mxu1 %v5230_v17  ;;  %v4704_v17 = vld [vmem:[%s5634_s20 + $0x50] sm:$0xf] }
 0x142   : > { %528 = vrot.lane.b32.xlu1 %v4531_v35, %s5436_s7  ;;  %770 = vrot.lane.b32.xlu0 %v4550_v18, %s5437_s26  ;;  %v2072_v35 = vmul.bf16 %v6016_v12, %v5689_v47  ;;  %v4681_v9 = vcombine.low %v2106_v48, %v2108_v58  ;;  %v4702_v48 = vld [vmem:[%s5634_s20 + $0x44] sm:$0xf]  ;;  %v6089_v58 = vcombine.low %v6013_v7, %v6016_v12 }
 0x144   : > { %v4670_v18 = vcombine.high %v2071_v23, %v2072_v35  ;;  %v4669_v38 = vcombine.low %v2071_v23, %v2072_v35  ;;  %v4683_v23 = vcombine.high %v2109_v57, %v2111_v10 }
 0x146   : > { %768 = vrot.lane.b32.xlu1 %v4549_v30, %s5437_s26  ;;  %774 = vrot.lane.b32.xlu0 %v4552_v34, %s5437_s26  ;;  %v4580_v30 = vcombine.high %v1089_v56, %v1091_v21  ;;  %v4579_v34 = vcombine.low %v1089_v56, %v1091_v21  ;;  %v2110_v56 = vmul.bf16 %v4676_v4, %v5854_v63 }
 0x147   : > { %4172 = vmatprep.subr.bf16.mxu1 %v4670_v18  ;;  %v4682_v18 = vcombine.low %v2109_v57, %v2111_v10  ;;  %v2231_v57 = vmul.bf16 %v6004_v6, %v5954_v59 }
 0x148   : > { %4173 = vmatpush1.bf16.msra.mxu1 %v4669_v38  ;;  %v6057_v38 = vcombine.high %v6001_v62, %v6004_v6 }
 0x14a   : > { %776 = vrot.lane.b32.xlu1 %v4553_v29, %s5437_s26  ;;  %901 = vrot.lane.b32.xlu0 %v4561_v8, %s5438_s8  ;;  %v4582_v29 = vcombine.low %v5874_v22, %v5878_v5  ;;  %v4680_v8 = vcombine.high %v2105_v41, %v2107_v43  ;;  %v4744_v22 = vld [vmem:[%s5634_s20 + $0x44] sm:$0xf] }
 0x14e   : > { %903 = vrot.lane.b32.xlu1 %v4562_v14, %s5438_s8  ;;  %909 = vrot.lane.b32.xlu0 %v4565_v16, %s5438_s8  ;;  %v4678_v14 = vld [vmem:[%s5634_s20 + $0x5c] sm:$0xf]  ;;  %v4679_v16 = vcombine.low %v2105_v41, %v2107_v43 }
 0x14f   : > { %v2112_v21 = vmul.bf16 %v4678_v14, %v5854_v63  ;;  %v5221_v63 = vld [vmem:[%s5634_s20 + $0x38] ss:$12 sps:$4 sm:$0xff]   ;;  %v5224_v43 = vld [vmem:[%s5634_s20 + $0x50] ss:$12 sps:$4 sm:$0xff]   ;;  %v2232_v14 = vmul.bf16 %v4702_v48, %v5885_v39  ;;  %v2234_v48 = vmul.bf16 %v4704_v17, %v5885_v39 }
 0x151   : > { %v4684_v35 = vcombine.low %v2110_v56, %v2112_v21 }
 0x152   : > { %907 = vrot.lane.b32.xlu1 %v4564_v49, %s5438_s8  ;;  %1125 = vrot.lane.b32.xlu0 %v4580_v30, %s5439_s28 }
 0x154   : > { %v6061_v49 = vpop.permute.xlu1 %624  ;;  %v6063_v30 = vpop.permute.xlu0 %630 }
 0x156   : > { %1123 = vrot.lane.b32.xlu1 %v4579_v34, %s5439_s28  ;;  %1129 = vrot.lane.b32.xlu0 %v4582_v29, %s5439_s28  ;;  %v4700_v29 = vld [vmem:[%s5634_s20 + $0x38] sm:$0xf] }
 0x157   : > { %v2230_v4 = vmul.bf16 %v4700_v29, %v5885_v39 }
 0x158   : > { %v6076_v34 = vpop.permute.xlu1 %704 }
 0x159   : > { %v6078_v41 = vpop.permute.xlu0 %698 }
 0x15a   : > { %2141 = vrot.lane.b32.xlu1 %v4680_v8, %s5435_s5  ;;  %2143 = vrot.lane.b32.xlu0 %v4681_v9, %s5435_s5  ;;  %v2229_v9 = vmul.bf16 %v6001_v62, %v5954_v59 }
 0x15c   : > { %v4708_v56 = vcombine.high %v2229_v9, %v2231_v57  ;;  %v4707_v29 = vcombine.low %v2229_v9, %v2231_v57  ;;  %v2295_v9 = vmul.bf16 %v6001_v62, %v5794_v0 }
 0x15e   : > { %2139 = vrot.lane.b32.xlu1 %v4679_v16, %s5435_s5  ;;  %2147 = vrot.lane.b32.xlu0 %v4683_v23, %s5435_s5  ;;  %v4709_v23 = vcombine.low %v2230_v4, %v2232_v14 }
 0x162   : > { %2149 = vrot.lane.b32.xlu1 %v4684_v35, %s5435_s5  ;;  %2145 = vrot.lane.b32.xlu0 %v4682_v18, %s5435_s5  ;;  %v2233_v35 = vmul.bf16 %v6013_v7, %v5954_v59  ;;  %v2235_v18 = vmul.bf16 %v6016_v12, %v5954_v59  ;;  %v4716_v59 = vld [vmem:[%s5634_s20 + $0x44] sm:$0xf]  ;;  %s5449_s5 = smov 93  }
 0x164   : > { %v4711_v14 = vcombine.high %v2233_v35, %v2235_v18 }
 0x166   : > { %2199 = vrot.lane.b32.xlu1 %v6057_v38, %s5420_s21  ;;  %2201 = vrot.lane.b32.xlu0 %v5221_v63, %s5420_s21  ;;  %v4706_v63 = vld [vmem:[%s5634_s20 + $0x5c] sm:$0xf] }
 0x167   : > { %v2236_v61 = vmul.bf16 %v4706_v63, %v5885_v39  ;;  %v2297_v39 = vmul.bf16 %v6004_v6, %v5794_v0  ;;  %v2298_v63 = vmul.bf16 %v4716_v59, %v5726_v60 }
 0x16a   : > { %2197 = vrot.lane.b32.xlu1 %v6069_v2, %s5420_s21  ;;  %2205 = vrot.lane.b32.xlu0 %v6074_v3, %s5420_s21 }
 0x16c   : > { %v6091_v8 = vpop.permute.xlu1 %979  ;;  %v6097_v10 = vpop.permute.xlu0 %985 }
 0x16d   : > { %7451 = vst [vmem:[#allocation15_spill] sm:$0xff] %v6091_v8  ;;  %7452 = vst [vmem:[#allocation16_spill] sm:$0xff] %v6097_v10  ;;  %v2299_v10 = vmul.bf16 %v6013_v7, %v5794_v0 }
 0x16e   : > { %2207 = vrot.lane.b32.xlu1 %v5224_v43, %s5420_s21  ;;  %2203 = vrot.lane.b32.xlu0 %v6089_v58, %s5420_s21  ;;  %s5440_s21 = smov 35  }
 0x170   : > { %v6104_v16 = vpop.permute.xlu1 %1059  ;;  %v6106_v21 = vpop.permute.xlu0 %1053 }
 0x171   : > { %7453 = vst [vmem:[#allocation17_spill] sm:$0xff] %v6104_v16  ;;  %7454 = vst [vmem:[#allocation18_spill] sm:$0xff] %v6106_v21  ;;  %v4714_v16 = vld [vmem:[%s5634_s20 + $0x38] sm:$0xf] }
 0x172   : > { %2265 = vrot.lane.b32.xlu1 %v4708_v56, %s5436_s7  ;;  %2267 = vrot.lane.b32.xlu0 %v4709_v23, %s5436_s7  ;;  %v4712_v56 = vcombine.low %v2234_v48, %v2236_v61  ;;  %v4710_v23 = vcombine.low %v2233_v35, %v2235_v18  ;;  %v2296_v17 = vmul.bf16 %v4714_v16, %v5726_v60  ;;  %v4718_v18 = vld [vmem:[%s5634_s20 + $0x50] sm:$0xf]  ;;  %v4720_v16 = vld [vmem:[%s5634_s20 + $0x5c] sm:$0xf] }
 0x173   : > { %v4722_v61 = vcombine.high %v2295_v9, %v2297_v39  ;;  %v2301_v35 = vmul.bf16 %v6016_v12, %v5794_v0 }
 0x174   : > { %v6116_v43 = vpop.permute.xlu1 %620  ;;  %v6120_v4 = vpop.permute.xlu0 %622 }
 0x175   : > { %v4725_v8 = vcombine.high %v2299_v10, %v2301_v35  ;;  %v4724_v5 = vcombine.low %v2299_v10, %v2301_v35  ;;  %v4732_v35 = vld [vmem:[%s5634_s20 + $0x50] sm:$0xf] }
 0x176   : > { %2263 = vrot.lane.b32.xlu1 %v4707_v29, %s5436_s7  ;;  %2271 = vrot.lane.b32.xlu0 %v4711_v14, %s5436_s7  ;;  %v4723_v14 = vcombine.low %v2296_v17, %v2298_v63  ;;  %v2302_v17 = vmul.bf16 %v4720_v16, %v5726_v60 }
 0x178   : > { %v6126_v21 = vpop.permute.xlu1 %628  ;;  %v6132_v57 = vpop.permute.xlu0 %626 }
 0x17a   : > { %2273 = vrot.lane.b32.xlu1 %v4712_v56, %s5436_s7  ;;  %2269 = vrot.lane.b32.xlu0 %v4710_v23, %s5436_s7  ;;  %v4721_v56 = vcombine.low %v2295_v9, %v2297_v39  ;;  %v2300_v23 = vmul.bf16 %v4718_v18, %v5726_v60  ;;  %v2361_v9 = vmul.bf16 %v6001_v62, %v5810_v15  ;;  %v4728_v39 = vld [vmem:[%s5634_s20 + $0x38] sm:$0xf]  ;;  %v4730_v18 = vld [vmem:[%s5634_s20 + $0x44] sm:$0xf]  ;;  %s5450_s7 = smov 92  }
 0x17b   : > { %v2363_v60 = vmul.bf16 %v6004_v6, %v5810_v15  ;;  %v2362_v16 = vmul.bf16 %v4728_v39, %v5741_v11  ;;  %v2365_v39 = vmul.bf16 %v6013_v7, %v5810_v15 }
 0x17c   : > { %v6138_v29 = vpop.permute.xlu1 %696  ;;  %v6140_v48 = vpop.permute.xlu0 %694 }
 0x17d   : > { %v4736_v10 = vcombine.high %v2361_v9, %v2363_v60 }
 0x17e   : > { %2331 = vrot.lane.b32.xlu1 %v4722_v61, %s5431_s25  ;;  %2333 = vrot.lane.b32.xlu0 %v4723_v14, %s5431_s25  ;;  %v4726_v61 = vcombine.low %v2300_v23, %v2302_v17  ;;  %v4734_v17 = vld [vmem:[%s5634_s20 + $0x5c] sm:$0xf] }
 0x180   : > { %v6150_v59 = vpop.permute.xlu1 %700  ;;  %v6154_v63 = vpop.permute.xlu0 %702 }
 0x182   : > { %2329 = vrot.lane.b32.xlu1 %v4721_v56, %s5431_s25  ;;  %2337 = vrot.lane.b32.xlu0 %v4725_v8, %s5431_s25  ;;  %v2364_v56 = vmul.bf16 %v4730_v18, %v5741_v11  ;;  %v2367_v18 = vmul.bf16 %v6016_v12, %v5810_v15  ;;  %v4742_v15 = vld [vmem:[%s5634_s20 + $0x38] sm:$0xf] }
 0x184   : > { %v6158_v0 = vpop.permute.xlu1 %975  ;;  %v6160_v14 = vpop.permute.xlu0 %977 }
 0x185   : > { %7455 = vst [vmem:[#allocation19_spill] sm:$0xff] %v6158_v0  ;;  %7456 = vst [vmem:[#allocation20_spill] sm:$0xff] %v6160_v14  ;;  %v2366_v0 = vmul.bf16 %v4732_v35, %v5741_v11  ;;  %v2368_v14 = vmul.bf16 %v4734_v17, %v5741_v11  ;;  %v2427_v11 = vmul.bf16 %v6001_v62, %v5970_v20 }
 0x186   : > { %2339 = vrot.lane.b32.xlu1 %v4726_v61, %s5431_s25  ;;  %2335 = vrot.lane.b32.xlu0 %v4724_v5, %s5431_s25  ;;  %v4737_v5 = vcombine.low %v2362_v16, %v2364_v56  ;;  %v4739_v16 = vcombine.high %v2365_v39, %v2367_v18  ;;  %v2428_v17 = vmul.bf16 %v4742_v15, %v5891_v42  ;;  %v4746_v15 = vld [vmem:[%s5634_s20 + $0x50] sm:$0xf]  ;;  %s5445_s25 = smov 52  }
 0x188   : > { %v6170_v8 = vpop.permute.xlu1 %983  ;;  %v6174_v23 = vpop.permute.xlu0 %981 }
 0x189   : > { %7457 = vst [vmem:[#allocation21_spill] sm:$0xff] %v6170_v8  ;;  %7458 = vst [vmem:[#allocation22_spill] sm:$0xff] %v6174_v23  ;;  %v4735_v8 = vcombine.low %v2361_v9, %v2363_v60  ;;  %v4738_v60 = vcombine.low %v2365_v39, %v2367_v18  ;;  %v2431_v18 = vmul.bf16 %v6013_v7, %v5970_v20 }
 0x18a   : > { %1215 = vrot.lane.b32.xlu1 %v5683_v45, %s5440_s21  ;;  %2397 = vrot.lane.b32.xlu0 %v4736_v10, %s5432_s29  ;;  %s5454_s21 = smov 68  }
 0x18c   : > { %v6180_v61 = vpop.permute.xlu1 %1051  ;;  %v6186_v23 = vpop.permute.xlu0 %1049 }
 0x18d   : > { %7459 = vst [vmem:[#allocation23_spill] sm:$0xff] %v6180_v61  ;;  %7460 = vst [vmem:[#allocation24_spill] sm:$0xff] %v6186_v23  ;;  %v4740_v61 = vcombine.low %v2366_v0, %v2368_v14  ;;  %v2430_v0 = vmul.bf16 %v4744_v22, %v5891_v42 }
 0x18e   : > { %2399 = vrot.lane.b32.xlu1 %v4737_v5, %s5432_s29  ;;  %2395 = vrot.lane.b32.xlu0 %v4735_v8, %s5432_s29  ;;  %v2429_v8 = vmul.bf16 %v6004_v6, %v5970_v20 }
 0x18f   : > { %v4751_v39 = vcombine.low %v2428_v17, %v2430_v0 }
 0x190   : > { %v6192_v10 = vpop.permute.xlu1 %1055  ;;  %v6194_v56 = vpop.permute.xlu0 %1057 }
 0x191   : > { %7461 = vst [vmem:[#allocation25_spill] sm:$0xff] %v6192_v10  ;;  %7462 = vst [vmem:[#allocation26_spill] sm:$0xff] %v6194_v56  ;;  %v4748_v10 = vld [vmem:[%s5634_s20 + $0x5c] sm:$0xf]  ;;  %v2432_v56 = vmul.bf16 %v4746_v15, %v5891_v42 }
 0x192   : > { %2403 = vrot.lane.b32.xlu1 %v4739_v16, %s5432_s29  ;;  %2405 = vrot.lane.b32.xlu0 %v4740_v61, %s5432_s29  ;;  %v4750_v61 = vcombine.high %v2427_v11, %v2429_v8  ;;  %v2433_v16 = vmul.bf16 %v6016_v12, %v5970_v20  ;;  %v2434_v17 = vmul.bf16 %v4748_v10, %v5891_v42  ;;  %v5226_v10 = vld [vmem:[%s5634_s20 + $0x38] ss:$12 sps:$4 sm:$0xff]  }
 0x194   : > { %v368_v9 = vpop.permute.xlu1 %367  ;;  %v374_v35 = vpop.permute.xlu0 %373  ;;  %v4753_v23 = vcombine.high %v2431_v18, %v2433_v16 }
 0x196   : > { %2401 = vrot.lane.b32.xlu1 %v4738_v60, %s5432_s29  ;;  %1289 = vrot.lane.b32.xlu0 %v5679_v37, %s5441_s13  ;;  %v4749_v60 = vcombine.low %v2427_v11, %v2429_v8  ;;  %s5446_s29 = smov 64   ;;  %s5455_s13 = smov 78  }
 0x198   : > { %v6208_v14 = vpop.permute.xlu1 %532  ;;  %v6210_v5 = vpop.permute.xlu0 %526 }
 0x19a   : > { %2463 = vrot.lane.b32.xlu1 %v4750_v61, %s5437_s26  ;;  %2465 = vrot.lane.b32.xlu0 %v4751_v39, %s5437_s26  ;;  %v4754_v61 = vcombine.low %v2432_v56, %v2434_v17  ;;  %v4752_v39 = vcombine.low %v2431_v18, %v2433_v16  ;;  %v5227_v16 = vld [vmem:[%s5634_s20 + $0x50] ss:$12 sps:$4 sm:$0xff]  }
 0x19c   : > { %v6220_v22 = vpop.permute.xlu1 %772  ;;  %v6224_v0 = vpop.permute.xlu0 %778 }
 0x19e   : > { %2461 = vrot.lane.b32.xlu1 %v4749_v60, %s5437_s26  ;;  %2469 = vrot.lane.b32.xlu0 %v4753_v23, %s5437_s26 }
 0x1a0   : > { %v6228_v20 = vpop.permute.xlu1 %911  ;;  %v6230_v26 = vpop.permute.xlu0 %905 }
 0x1a2   : > { %2471 = vrot.lane.b32.xlu1 %v4754_v61, %s5437_s26  ;;  %2467 = vrot.lane.b32.xlu0 %v4752_v39, %s5437_s26  ;;  %v4772_v61 = vld [vmem:[%s5634_s20 + $0x44] sm:$0xf]  ;;  %s5451_s26 = smov 67  }
 0x1a4   : > { %v6234_v11 = vpop.permute.xlu1 %1127  ;;  %v364_v42 = vpop.permute.xlu0 %363 }
 0x1a6   : > { %1363 = vrot.lane.b32.xlu1 %v5689_v47, %s5442_s14  ;;  %2521 = vrot.lane.b32.xlu0 %v6057_v38, %s5426_s11  ;;  %s5456_s14 = smov 77  }
 0x1a8   : > { %v366_v23 = vpop.permute.xlu1 %365  ;;  %v370_v56 = vpop.permute.xlu0 %369 }
 0x1a9   : > { %v377_v8 = vsel %vm375_vm9, %v366_v23, %v368_v9  ;;  %v376_v18 = vsel %vm375_vm9, %v364_v42, %v366_v23  ;;  %v4770_v9 = vld [vmem:[%s5634_s20 + $0x38] sm:$0xf]  ;;  %v2553_v42 = vmul.bf16 %v6004_v6, %v5986_v1  ;;  %v2554_v23 = vmul.bf16 %v4772_v61, %v5918_v31 }
 0x1aa   : > { %2523 = vrot.lane.b32.xlu1 %v5226_v10, %s5426_s11  ;;  %3962 = vmatprep.subr.bf16.mxu0 %v377_v8  ;;  %v2552_v10 = vmul.bf16 %v4770_v9, %v5918_v31 }
 0x1ab   : > { %2519 = vrot.lane.b32.xlu0 %v6069_v2, %s5426_s11  ;;  %3963 = vmatpush1.bf16.msra.mxu0 %v376_v18  ;;  %v436_v2 = vsel %vm434_vm10, %v5707_v50, %v5713_v53  ;;  %v435_v53 = vsel %vm434_vm10, %v5709_v51, %v5707_v50  ;;  %v2557_v50 = vmul.bf16 %v6016_v12, %v5986_v1  ;;  %v4774_v51 = vld [vmem:[%s5634_s20 + $0x50] sm:$0xf] }
 0x1ac   : > { %v372_v15 = vpop.permute.xlu1 %371  ;;  %v523_v60 = vpop.permute.xlu0 %522  ;;  %v2556_v61 = vmul.bf16 %v4774_v51, %v5918_v31  ;;  %v634_v51 = vsel %vm632_vm12, %v6120_v4, %v6061_v49  ;;  %v633_v49 = vsel %vm632_vm12, %v6116_v43, %v6120_v4  ;;  %v708_v4 = vsel %vm706_vm13, %v6138_v29, %v6078_v41 }
 0x1ad   : > { %v379_v38 = vsel %vm375_vm9, %v372_v15, %v374_v35  ;;  %v378_v17 = vsel %vm375_vm9, %v370_v56, %v372_v15  ;;  %v2551_v35 = vmul.bf16 %v6001_v62, %v5986_v1  ;;  %v438_v56 = vsel %vm434_vm10, %v5717_v55, %v5715_v54 }
 0x1ae   : > { %2527 = vrot.lane.b32.xlu1 %v6074_v3, %s5426_s11  ;;  %3964 = vmatprep.subr.bf16.mxu0 %v379_v38  ;;  %v4779_v15 = vcombine.low %v2552_v10, %v2554_v23  ;;  %v4776_v38 = vld [vmem:[%s5634_s20 + $0x5c] sm:$0xf]  ;;  %v437_v54 = vsel %vm434_vm10, %v5711_v52, %v5717_v55  ;;  %v4784_v55 = vld [vmem:[%s5634_s20 + $0x38] sm:$0xf]  ;;  %v707_v41 = vsel %vm706_vm13, %v6140_v48, %v6138_v29  ;;  %v4802_v48 = vld [vmem:[%s5634_s20 + $0x50] sm:$0xf] }
 0x1af   : > { %2529 = vrot.lane.b32.xlu0 %v5227_v16, %s5426_s11  ;;  %3965 = vmatpush1.bf16.msra.mxu0 %v378_v17  ;;  %v4778_v18 = vcombine.high %v2551_v35, %v2553_v42 }
 0x1b0   : > { %v525_v39 = vpop.permute.xlu1 %524  ;;  %3966 = vmatprep.subr.bf16.mxu0 %v436_v2  ;;  %v531_v3 = vpop.permute.xlu0 %530  ;;  %v2558_v2 = vmul.bf16 %v4776_v38, %v5918_v31  ;;  %v2617_v31 = vmul.bf16 %v6001_v62, %v5825_v33 }
 0x1b1   : > { %v536_v17 = vsel %vm534_vm11, %v525_v39, %v6210_v5  ;;  %v535_v52 = vsel %vm534_vm11, %v523_v60, %v525_v39  ;;  %v538_v5 = vsel %vm534_vm11, %v531_v3, %v6208_v14 }
 0x1b2   : > { %2525 = vrot.lane.b32.xlu1 %v6089_v58, %s5426_s11  ;;  %v2555_v58 = vmul.bf16 %v6013_v7, %v5986_v1  ;;  %v4777_v1 = vcombine.low %v2551_v35, %v2553_v42  ;;  %v4782_v42 = vcombine.low %v2556_v61, %v2558_v2  ;;  %v636_v61 = vsel %vm632_vm12, %v6126_v21, %v6063_v30  ;;  %s5444_s11 = smov 51  }
 0x1b3   : > { %1437 = vrot.lane.b32.xlu0 %v5687_v46, %s5443_s9  ;;  %3967 = vmatpush1.bf16.msra.mxu0 %v435_v53  ;;  %v4786_v53 = vld [vmem:[%s5634_s20 + $0x44] sm:$0xf]  ;;  %v635_v30 = vsel %vm632_vm12, %v6132_v57, %v6126_v21  ;;  %v2685_v21 = vmul.bf16 %v6004_v6, %v5842_v44  ;;  %v4798_v57 = vld [vmem:[%s5634_s20 + $0x38] sm:$0xf]  ;;  %s5457_s9 = smov 76  }
 0x1b4   : > { %v529_v8 = vpop.permute.xlu1 %528  ;;  %3968 = vmatprep.subr.bf16.mxu0 %v438_v56  ;;  %v6271_v16 = vpop.permute.xlu0 %770  ;;  %v4781_v23 = vcombine.high %v2555_v58, %v2557_v50  ;;  %v2619_v56 = vmul.bf16 %v6004_v6, %v5825_v33  ;;  %v4780_v39 = vcombine.low %v2555_v58, %v2557_v50  ;;  %v2620_v14 = vmul.bf16 %v4786_v53, %v5775_v36 }
 0x1b6   : > { %2587 = vrot.lane.b32.xlu1 %v4778_v18, %s5438_s8  ;;  %v2618_v18 = vmul.bf16 %v4784_v55, %v5775_v36  ;;  %v4792_v58 = vcombine.high %v2617_v31, %v2619_v56 }
 0x1b7   : > { %2589 = vrot.lane.b32.xlu0 %v4779_v15, %s5438_s8  ;;  %3969 = vmatpush1.bf16.msra.mxu0 %v437_v54  ;;  %v537_v15 = vsel %vm534_vm11, %v529_v8, %v531_v3  ;;  %v2623_v3 = vmul.bf16 %v6016_v12, %v5825_v33  ;;  %v4788_v8 = vld [vmem:[%s5634_s20 + $0x50] sm:$0xf] }
 0x1b8   : > { %v6286_v9 = vpop.permute.xlu1 %768  ;;  %3970 = vmatprep.subr.bf16.mxu0 %v536_v17  ;;  %v6290_v10 = vpop.permute.xlu0 %774  ;;  %v4793_v54 = vcombine.low %v2618_v18, %v2620_v14  ;;  %v2621_v17 = vmul.bf16 %v6013_v7, %v5825_v33  ;;  %v2622_v33 = vmul.bf16 %v4788_v8, %v5775_v36  ;;  %v2684_v14 = vmul.bf16 %v4798_v57, %v5780_v40 }
 0x1b9   : > { %v2749_v57 = vmul.bf16 %v6001_v62, %v5864_v13 }
 0x1ba   : > { %2585 = vrot.lane.b32.xlu1 %v4777_v1, %s5438_s8  ;;  %v4790_v1 = vld [vmem:[%s5634_s20 + $0x5c] sm:$0xf]  ;;  %v4795_v43 = vcombine.high %v2621_v17, %v2623_v3 }
 0x1bb   : > { %2593 = vrot.lane.b32.xlu0 %v4781_v23, %s5438_s8  ;;  %3971 = vmatpush1.bf16.msra.mxu0 %v535_v52  ;;  %v4791_v23 = vcombine.low %v2617_v31, %v2619_v56  ;;  %v2624_v52 = vmul.bf16 %v4790_v1, %v5775_v36  ;;  %v2683_v31 = vmul.bf16 %v6001_v62, %v5842_v44  ;;  %v4800_v56 = vld [vmem:[%s5634_s20 + $0x44] sm:$0xf] }
 0x1bc   : > { %v6299_v35 = vpop.permute.xlu1 %776  ;;  %3972 = vmatprep.subr.bf16.mxu0 %v538_v5  ;;  %v6305_v60 = vpop.permute.xlu0 %901  ;;  %v2687_v1 = vmul.bf16 %v6013_v7, %v5842_v44 }
 0x1bd   : > { %v4796_v36 = vcombine.low %v2622_v33, %v2624_v52  ;;  %v784_v52 = vsel %vm780_vm14, %v6299_v35, %v6224_v0  ;;  %v783_v0 = vsel %vm780_vm14, %v6290_v10, %v6299_v35 }
 0x1be   : > { %2595 = vrot.lane.b32.xlu1 %v4782_v42, %s5438_s8  ;;  %v4794_v42 = vcombine.low %v2621_v17, %v2623_v3  ;;  %v782_v3 = vsel %vm780_vm14, %v6271_v16, %v6220_v22 }
 0x1bf   : > { %2591 = vrot.lane.b32.xlu0 %v4780_v39, %s5438_s8  ;;  %3973 = vmatpush1.bf16.msra.mxu0 %v537_v15  ;;  %v710_v39 = vsel %vm706_vm13, %v6154_v63, %v6076_v34  ;;  %v2686_v15 = vmul.bf16 %v4800_v56, %v5780_v40  ;;  %v709_v34 = vsel %vm706_vm13, %v6150_v59, %v6154_v63  ;;  %s5452_s8 = smov 80  }
 0x1c0   : > { %v6315_v38 = vpop.permute.xlu1 %903  ;;  %3974 = vmatprep.subr.bf16.mxu0 %v634_v51  ;;  %v6317_v50 = vpop.permute.xlu0 %909  ;;  %v2688_v59 = vmul.bf16 %v4802_v48, %v5780_v40  ;;  %v2751_v56 = vmul.bf16 %v6004_v6, %v5864_v13  ;;  %v843_v6 = vsel %vm839_vm15, %v5763_v27, %v5765_v28  ;;  %v6428_v28 = vld [vmem:[#allocation6] ss:$28 sps:$4 sm:$0xff]  }
 0x1c1   : > { %v4807_v8 = vcombine.low %v2684_v14, %v2686_v15 }
 0x1c2   : > { %2653 = vrot.lane.b32.xlu1 %v4792_v58, %s5433_s10  ;;  %v4806_v58 = vcombine.high %v2683_v31, %v2685_v21 }
 0x1c3   : > { %2655 = vrot.lane.b32.xlu0 %v4793_v54, %s5433_s10  ;;  %3975 = vmatpush1.bf16.msra.mxu0 %v633_v49  ;;  %v4804_v54 = vld [vmem:[%s5634_s20 + $0x5c] sm:$0xf]  ;;  %v2689_v49 = vmul.bf16 %v6016_v12, %v5842_v44  ;;  %v781_v44 = vsel %vm780_vm14, %v6286_v9, %v6271_v16  ;;  %v4814_v16 = vld [vmem:[%s5634_s20 + $0x44] sm:$0xf] }
 0x1c4   : > { %v6333_v2 = vpop.permute.xlu1 %907  ;;  %3976 = vmatprep.subr.bf16.mxu0 %v636_v61  ;;  %v6337_v55 = vpop.permute.xlu0 %1125  ;;  %v2690_v63 = vmul.bf16 %v4804_v54, %v5780_v40  ;;  %v2752_v10 = vmul.bf16 %v4814_v16, %v5850_v32  ;;  %v915_v54 = vsel %vm913_vm0, %v6315_v38, %v6230_v26 }
 0x1c6   : > { %2651 = vrot.lane.b32.xlu1 %v4791_v23, %s5433_s10  ;;  %v4805_v23 = vcombine.low %v2683_v31, %v2685_v21  ;;  %v4810_v40 = vcombine.low %v2688_v59, %v2690_v63  ;;  %v841_v31 = vsel %vm839_vm15, %v5755_v24, %v5757_v25  ;;  %v4808_v21 = vcombine.low %v2687_v1, %v2689_v49  ;;  %v7465_v59 = vld [vmem:[#allocation14_spill] sm:$0xff] }
 0x1c7   : > { %2659 = vrot.lane.b32.xlu0 %v4795_v43, %s5433_s10  ;;  %3977 = vmatpush1.bf16.msra.mxu0 %v635_v30  ;;  %v4809_v43 = vcombine.high %v2687_v1, %v2689_v49  ;;  %v840_v25 = vsel %vm839_vm15, %v5751_v19, %v5755_v24  ;;  %v7463_v19 = vld [vmem:[#allocation12_spill] sm:$0xff] }
 0x1c8   : > { %v6347_v53 = vpop.permute.xlu1 %1123  ;;  %3978 = vmatprep.subr.bf16.mxu0 %v708_v4  ;;  %v6349_v5 = vpop.permute.xlu0 %1129  ;;  %v842_v24 = vsel %vm839_vm15, %v7463_v19, %v5763_v27  ;;  %v2753_v27 = vmul.bf16 %v6013_v7, %v5864_v13  ;;  %v914_v7 = vsel %vm913_vm0, %v6305_v60, %v6315_v38  ;;  %v916_v38 = vsel %vm913_vm0, %v6333_v2, %v6317_v50 }
 0x1ca   : > { %2661 = vrot.lane.b32.xlu1 %v4796_v36, %s5433_s10 }
 0x1cb   : > { %2657 = vrot.lane.b32.xlu0 %v4794_v42, %s5433_s10  ;;  %3979 = vmatpush1.bf16.msra.mxu0 %v707_v41  ;;  %v4812_v42 = vld [vmem:[%s5634_s20 + $0x38] sm:$0xf]  ;;  %s5447_s10 = smov 94  }
 0x1cc   : > { %v2142_v18 = vpop.permute.xlu1 %2141  ;;  %3980 = vmatprep.subr.bf16.mxu0 %v710_v39  ;;  %v2144_v51 = vpop.permute.xlu0 %2143  ;;  %v2750_v39 = vmul.bf16 %v4812_v42, %v5850_v32 }
 0x1cd   : > { %v2152_v29 = vsel %vm375_vm9, %v2142_v18, %v2144_v51 }
 0x1ce   : > { %1570 = vrot.lane.b32.xlu1 %v5683_v45, %s5444_s11  ;;  %4174 = vmatprep.subr.bf16.mxu1 %v2152_v29  ;;  %v4821_v15 = vcombine.low %v2750_v39, %v2752_v10  ;;  %v1081_v29 = vld [vmem:[%s5634_s20 + $0x2c] sm:$0xf]  ;;  %v6484_v10 = vld [vmem:[%s5634_s20 + $0x30] sm:$0xff]  ;;  %s5458_s11 = smov 63  }
 0x1cf   : > { %2719 = vrot.lane.b32.xlu0 %v4806_v58, %s5434_s6  ;;  %3981 = vmatpush1.bf16.msra.mxu0 %v709_v34  ;;  %v1079_v58 = vld [vmem:[%s5634_s20 + $0x20] sm:$0xf]  ;;  %v4819_v34 = vcombine.low %v2749_v57, %v2751_v56 }
 0x1d0   : > { %v2140_v17 = vpop.permute.xlu1 %2139  ;;  %v2148_v61 = vpop.permute.xlu0 %2147  ;;  %3982 = vmatprep.subr.bf16.mxu0 %v782_v3  ;;  %v1096_v3 = vmul.bf16 %v5850_v32, %v1081_v29  ;;  %v7474_v29 = vld [vmem:[#allocation23_spill] sm:$0xff] }
 0x1d1   : > { %v2151_v33 = vsel %vm375_vm9, %v2140_v17, %v2142_v18  ;;  %v4820_v18 = vcombine.high %v2749_v57, %v2751_v56  ;;  %v1094_v17 = vmul.bf16 %v5850_v32, %v1079_v58  ;;  %v7470_v56 = vld [vmem:[#allocation16_spill] sm:$0xff] }
 0x1d2   : > { %2721 = vrot.lane.b32.xlu1 %v4807_v8, %s5434_s6  ;;  %4175 = vmatpush1.bf16.msra.mxu1 %v2151_v33  ;;  %v4816_v8 = vld [vmem:[%s5634_s20 + $0x50] sm:$0xf]  ;;  %v7464_v33 = vld [vmem:[#allocation13_spill] sm:$0xff] }
 0x1d3   : > { %2717 = vrot.lane.b32.xlu0 %v4805_v23, %s5434_s6  ;;  %3983 = vmatpush1.bf16.msra.mxu0 %v781_v44  ;;  %v4818_v23 = vld [vmem:[%s5634_s20 + $0x5c] sm:$0xf]  ;;  %v7466_v63 = vcombine.high %v7464_v33, %v7465_v59  ;;  %v2754_v44 = vmul.bf16 %v4816_v8, %v5850_v32 }
 0x1d4   : > { %v2150_v22 = vpop.permute.xlu1 %2149  ;;  %v2146_v30 = vpop.permute.xlu0 %2145  ;;  %3984 = vmatprep.subr.bf16.mxu0 %v784_v52  ;;  %v2756_v52 = vmul.bf16 %v4818_v23, %v5850_v32  ;;  %v7467_v32 = vld [vmem:[#allocation15_spill] sm:$0xff]  ;;  %v7478_v33 = vld [vmem:[#allocation25_spill] sm:$0xff] }
 0x1d5   : > { %v2154_v4 = vsel %vm375_vm9, %v2148_v61, %v2150_v22  ;;  %v2153_v36 = vsel %vm375_vm9, %v2146_v30, %v2148_v61  ;;  %v2755_v61 = vmul.bf16 %v6016_v12, %v5864_v13  ;;  %v917_v12 = vsel %vm913_vm0, %v6317_v50, %v6228_v20  ;;  %v7469_v50 = vld [vmem:[#allocation19_spill] sm:$0xff] }
 0x1d6   : > { %2725 = vrot.lane.b32.xlu1 %v4809_v43, %s5434_s6  ;;  %4176 = vmatprep.subr.bf16.mxu1 %v2154_v4  ;;  %v4584_v22 = vcombine.low %v1094_v17, %v1096_v3  ;;  %vm1194_vm9 = vcmask 769024  }
 0x1d7   : > { %2727 = vrot.lane.b32.xlu0 %v4810_v40, %s5434_s6  ;;  %4177 = vmatpush1.bf16.msra.mxu1 %v2153_v36  ;;  %v4823_v30 = vcombine.high %v2753_v27, %v2755_v61  ;;  %v7468_v40 = vld [vmem:[#allocation20_spill] sm:$0xff]  ;;  %v4824_v36 = vcombine.low %v2754_v44, %v2756_v52  ;;  %v4822_v16 = vcombine.low %v2753_v27, %v2755_v61 }
 0x1d8   : > { %3985 = vmatpush1.bf16.msra.mxu0 %v783_v0  ;;  %v2200_v9 = vpop.permute.xlu1 %2199  ;;  %v2202_v41 = vpop.permute.xlu0 %2201  ;;  %v989_v4 = vsel %vm987_vm1, %v7468_v40, %v7467_v32  ;;  %v988_v2 = vsel %vm987_vm1, %v7469_v50, %v7468_v40  ;;  %v6543_v52 = vld [vmem:[%s5634_s20 + $0x54] sm:$0xff] }
 0x1d9   : > { %3986 = vmatprep.subr.bf16.mxu0 %v841_v31  ;;  %v2210_v35 = vsel %vm434_vm10, %v2200_v9, %v2202_v41  ;;  %v6476_v31 = vld [vmem:[%s5634_s20 + $0xc] sm:$0xff]  ;;  %v7471_v41 = vld [vmem:[#allocation21_spill] sm:$0xff] }
 0x1da   : > { %2723 = vrot.lane.b32.xlu1 %v4808_v21, %s5434_s6  ;;  %4178 = vmatprep.subr.bf16.mxu1 %v2210_v35  ;;  %v991_v39 = vsel %vm987_vm1, %v7471_v41, %v7470_v56  ;;  %v6487_v35 = vld [vmem:[%s5634_s20 + $0x3c] sm:$0xff]  ;;  %s5448_s6 = smov 65  }
 0x1db   : > { %1644 = vrot.lane.b32.xlu0 %v5679_v37, %s5445_s25  ;;  %s5459_s25 = smov 62  }
 0x1dc   : > { %3987 = vmatpush1.bf16.msra.mxu0 %v840_v25  ;;  %v2198_v62 = vpop.permute.xlu1 %2197  ;;  %v2206_v14 = vpop.permute.xlu0 %2205 }
 0x1dd   : > { %3988 = vmatprep.subr.bf16.mxu0 %v843_v6  ;;  %v2209_v51 = vsel %vm434_vm10, %v2198_v62, %v2200_v9  ;;  %v6473_v9 = vld [vmem:[%s5634_s20] sm:$0xff] }
 0x1de   : > { %2785 = vrot.lane.b32.xlu1 %v4820_v18, %s5439_s28  ;;  %4179 = vmatpush1.bf16.msra.mxu1 %v2209_v51  ;;  %v4586_v21 = vcombine.high %v6473_v9, %v6476_v31  ;;  %v5233_v18 = vld [vmem:[%s5634_s20 + $0x8] ss:$12 sps:$4 sm:$0xff]   ;;  %v6500_v51 = vcombine.high %v6484_v10, %v6487_v35  ;;  %v4585_v3 = vcombine.low %v6473_v9, %v6476_v31 }
 0x1df   : > { %2787 = vrot.lane.b32.xlu0 %v4821_v15, %s5439_s28 }
 0x1e0   : > { %3989 = vmatpush1.bf16.msra.mxu0 %v842_v24  ;;  %v2208_v48 = vpop.permute.xlu1 %2207  ;;  %v2204_v1 = vpop.permute.xlu0 %2203 }
 0x1e1   : > { %4011 = vmatprep.subr.bf16.mxu0 %v915_v54  ;;  %v2212_v49 = vsel %vm434_vm10, %v2206_v14, %v2208_v48  ;;  %v2211_v26 = vsel %vm434_vm10, %v2204_v1, %v2206_v14  ;;  %v7472_v14 = vld [vmem:[#allocation22_spill] sm:$0xff]  ;;  %v7476_v1 = vld [vmem:[#allocation17_spill] sm:$0xff]  ;;  %vm1573_vm10 = vcmask 416768  }
 0x1e2   : > { %2783 = vrot.lane.b32.xlu1 %v4819_v34, %s5439_s28  ;;  %4180 = vmatprep.subr.bf16.mxu1 %v2212_v49  ;;  %v990_v15 = vsel %vm987_vm1, %v7472_v14, %v7471_v41  ;;  %v5235_v54 = vld [vmem:[%s5634_s20 + $0x38] ss:$12 sps:$4 sm:$0xff]   ;;  %v7475_v34 = vld [vmem:[#allocation24_spill] sm:$0xff] }
 0x1e3   : > { %1131 = vrot.lane.b32.xlu0 %v7466_v63, %s5439_s28  ;;  %3991 = vmatmul.mubr.bf16.vlgmr.msra.gmra.mrb[0].mxu0 %v6428_v28  ;;  %v1062_v17 = vsel %vm1061_vm2, %v7475_v34, %v7474_v29  ;;  %v7477_v49 = vld [vmem:[#allocation26_spill] sm:$0xff]  ;;  %v6529_v63 = vld [vmem:[%s5634_s20 + $0x18] sm:$0xff] }
 0x1e4   : > { %4012 = vmatpush1.bf16.msra.mxu0 %v914_v7  ;;  %4181 = vmatpush1.bf16.msra.mxu1 %v2211_v26  ;;  %v2266_v13 = vpop.permute.xlu1 %2265  ;;  %v2268_v43 = vpop.permute.xlu0 %2267  ;;  %v1065_v27 = vsel %vm1061_vm2, %v7477_v49, %v7476_v1  ;;  %v6522_v26 = vcombine.low %v6484_v10, %v6487_v35  ;;  %v1064_v59 = vsel %vm1061_vm2, %v7478_v33, %v7477_v49  ;;  %v6532_v7 = vld [vmem:[%s5634_s20 + $0x24] sm:$0xff]  ;;  %v4840_v14 = vld [vmem:[%s5634_s20 + $0x38] sm:$0xf] }
 0x1e5   : > { %4013 = vmatprep.subr.bf16.mxu0 %v917_v12  ;;  %v2276_v60 = vsel %vm534_vm11, %v2266_v13, %v2268_v43  ;;  %v4589_v44 = vcombine.high %v6529_v63, %v6532_v7  ;;  %v1137_v12 = vsel %vm1135_vm4, %v6337_v55, %v6234_v11  ;;  %v1136_v11 = vsel %vm1135_vm4, %v6347_v53, %v6337_v55 }
 0x1e6   : > { %1133 = vrot.lane.b32.xlu1 %v4584_v22, %s5439_s28  ;;  %4182 = vmatprep.subr.bf16.mxu1 %v2276_v60  ;;  %v6540_v22 = vld [vmem:[%s5634_s20 + $0x48] sm:$0xff]  ;;  %v4588_v55 = vcombine.low %v6529_v63, %v6532_v7 }
 0x1e7   : > { %2791 = vrot.lane.b32.xlu0 %v4823_v30, %s5439_s28 }
 0x1e8   : > { %4014 = vmatpush1.bf16.msra.mxu0 %v916_v38  ;;  %v2264_v20 = vpop.permute.xlu1 %2263  ;;  %v2272_v42 = vpop.permute.xlu0 %2271  ;;  %v5239_v38 = vld [vmem:[%s5634_s20 + $0x20] ss:$12 sps:$4 sm:$0xff]  }
 0x1e9   : > { %4015 = vmatprep.subr.bf16.mxu0 %v989_v4  ;;  %v2275_v0 = vsel %vm534_vm11, %v2264_v20, %v2266_v13  ;;  %v6556_v20 = vcombine.high %v6540_v22, %v6543_v52 }
 0x1ea   : > { %2793 = vrot.lane.b32.xlu1 %v4824_v36, %s5439_s28  ;;  %4183 = vmatpush1.bf16.msra.mxu1 %v2275_v0  ;;  %v5241_v36 = vld [vmem:[%s5634_s20 + $0x50] ss:$12 sps:$4 sm:$0xff]  }
 0x1eb   : > { %2789 = vrot.lane.b32.xlu0 %v4822_v16, %s5439_s28  ;;  %s5453_s28 = smov 79  }
 0x1ec   : > { %4016 = vmatpush1.bf16.msra.mxu0 %v988_v2  ;;  %v2274_v57 = vpop.permute.xlu1 %2273  ;;  %v2270_v25 = vpop.permute.xlu0 %2269  ;;  %v6574_v2 = vcombine.low %v6540_v22, %v6543_v52 }
 0x1ed   : > { %4017 = vmatprep.subr.bf16.mxu0 %v991_v39  ;;  %v2278_v62 = vsel %vm534_vm11, %v2272_v42, %v2274_v57  ;;  %v2277_v6 = vsel %vm534_vm11, %v2270_v25, %v2272_v42  ;;  %v1210_v57 = vld [vmem:[%s5634_s20 + $0x14] sm:$0xf]  ;;  %vm1268_vm11 = vcmask 760832  }
 0x1ee   : > { %1718 = vrot.lane.b32.xlu1 %v5689_v47, %s5446_s29  ;;  %4184 = vmatprep.subr.bf16.mxu1 %v2278_v62  ;;  %v7473_v47 = vld [vmem:[#allocation18_spill] sm:$0xff] }
 0x1ef   : > { %1184 = vrot.lane.b32.xlu0 %v4586_v21, %s5447_s10  ;;  %4185 = vmatpush1.bf16.msra.mxu1 %v2277_v6  ;;  %v1063_v19 = vsel %vm1061_vm2, %v7474_v29, %v7473_v47  ;;  %v1208_v21 = vld [vmem:[%s5634_s20 + $0x8] sm:$0xf] }
 0x1f0   : > { %4018 = vmatpush1.bf16.msra.mxu0 %v990_v15  ;;  %v2332_v58 = vpop.permute.xlu1 %2331  ;;  %v2334_v24 = vpop.permute.xlu0 %2333  ;;  %v4842_v15 = vld [vmem:[%s5634_s20 + $0x44] sm:$0xf] }
 0x1f1   : > { %4019 = vmatprep.subr.bf16.mxu0 %v1063_v19  ;;  %v2342_v48 = vsel %vm632_vm12, %v2332_v58, %v2334_v24 }
 0x1f2   : > { %1186 = vrot.lane.b32.xlu1 %v5233_v18, %s5447_s10  ;;  %4186 = vmatprep.subr.bf16.mxu1 %v2342_v48 }
 0x1f3   : > { %2843 = vrot.lane.b32.xlu0 %v6500_v51, %s5447_s10 }
 0x1f4   : > { %4020 = vmatpush1.bf16.msra.mxu0 %v1062_v17  ;;  %v2330_v8 = vpop.permute.xlu1 %2329  ;;  %v2338_v61 = vpop.permute.xlu0 %2337 }
 0x1f5   : > { %4021 = vmatprep.subr.bf16.mxu0 %v1065_v27  ;;  %v2341_v23 = vsel %vm632_vm12, %v2330_v8, %v2332_v58  ;;  %v1212_v27 = vld [vmem:[%s5634_s20 + $0x20] sm:$0xf] }
 0x1f6   : > { %2845 = vrot.lane.b32.xlu1 %v5235_v54, %s5447_s10  ;;  %4187 = vmatpush1.bf16.msra.mxu1 %v2341_v23 }
 0x1f7   : > { %1182 = vrot.lane.b32.xlu0 %v4585_v3, %s5447_s10 }
 0x1f8   : > { %4022 = vmatpush1.bf16.msra.mxu0 %v1064_v59  ;;  %v2340_v13 = vpop.permute.xlu1 %2339  ;;  %v2336_v43 = vpop.permute.xlu0 %2335 }
 0x1f9   : > { %4023 = vmatprep.subr.bf16.mxu0 %v1137_v12  ;;  %v2344_v30 = vsel %vm632_vm12, %v2338_v61, %v2340_v13  ;;  %v2343_v60 = vsel %vm632_vm12, %v2336_v43, %v2338_v61  ;;  %v1214_v61 = vld [vmem:[%s5634_s20 + $0x2c] sm:$0xf]  ;;  %vm1647_vm12 = vcmask 424960  }
 0x1fa   : > { %2841 = vrot.lane.b32.xlu1 %v6522_v26, %s5447_s10  ;;  %4188 = vmatprep.subr.bf16.mxu1 %v2344_v30 }
 0x1fb   : > { %1190 = vrot.lane.b32.xlu0 %v4589_v44, %s5447_s10  ;;  %4189 = vmatpush1.bf16.msra.mxu1 %v2343_v60 }
 0x1fc   : > { %4024 = vmatpush1.bf16.msra.mxu0 %v1136_v11  ;;  %v1216_v32 = vpop.permute.xlu1 %1215  ;;  %v2398_v40 = vpop.permute.xlu0 %2397  ;;  %v4846_v11 = vld [vmem:[%s5634_s20 + $0x5c] sm:$0xf] }
 0x1fd   : > { %v6558_v4 = vrot.slane %v1216_v32, 4 }
 0x1fe   : > { %1192 = vrot.lane.b32.xlu1 %v5239_v38, %s5447_s10  ;;  %v4844_v38 = vld [vmem:[%s5634_s20 + $0x50] sm:$0xf] }
 0x1ff   : > { %2849 = vrot.lane.b32.xlu0 %v6556_v20, %s5447_s10  ;;  %v6567_v42 = vsel %vm1218_vm5, %v6558_v4, %v1216_v32  ;;  %v1223_v62 = vmul.bf16 %v6558_v4, %v1208_v21  ;;  %v1225_v6 = vmul.bf16 %v6558_v4, %v1210_v57  ;;  %v2874_v34 = vmul.bf16 %v4840_v14, %v6558_v4 }
 0x200   : > { %v2400_v53 = vpop.permute.xlu1 %2399  ;;  %v2396_v16 = vpop.permute.xlu0 %2395  ;;  %v1222_v41 = vmul.bf16 %v6473_v9, %v6567_v42  ;;  %v1224_v39 = vmul.bf16 %v6476_v31, %v6567_v42  ;;  %v2873_v29 = vmul.bf16 %v6484_v10, %v6567_v42  ;;  %v2875_v19 = vmul.bf16 %v6487_v35, %v6567_v42 }
 0x201   : > { %v2408_v0 = vsel %vm706_vm13, %v2398_v40, %v2400_v53  ;;  %v2407_v50 = vsel %vm706_vm13, %v2396_v16, %v2398_v40  ;;  %v4593_v48 = vcombine.low %v1223_v62, %v1225_v6  ;;  %v2876_v17 = vmul.bf16 %v4842_v15, %v6558_v4 }
 0x202   : > { %2851 = vrot.lane.b32.xlu1 %v5241_v36, %s5447_s10  ;;  %4190 = vmatprep.subr.bf16.mxu1 %v2408_v0  ;;  %v4592_v47 = vcombine.high %v1222_v41, %v1224_v39  ;;  %v4848_v3 = vcombine.high %v2873_v29, %v2875_v19  ;;  %v4591_v33 = vcombine.low %v1222_v41, %v1224_v39  ;;  %vm1623_vm5 = vcmask 629760  }
 0x203   : > { %1188 = vrot.lane.b32.xlu0 %v4588_v55, %s5447_s10  ;;  %4191 = vmatpush1.bf16.msra.mxu1 %v2407_v50  ;;  %v4849_v1 = vcombine.low %v2874_v34, %v2876_v17  ;;  %v1226_v59 = vmul.bf16 %v6529_v63, %v6567_v42  ;;  %v1228_v44 = vmul.bf16 %v6532_v7, %v6567_v42 }
 0x204   : > { %v2404_v56 = vpop.permute.xlu1 %2403  ;;  %v2406_v25 = vpop.permute.xlu0 %2405  ;;  %v4847_v12 = vcombine.low %v2873_v29, %v2875_v19  ;;  %v1227_v30 = vmul.bf16 %v6558_v4, %v1212_v27  ;;  %v1229_v60 = vmul.bf16 %v6558_v4, %v1214_v61  ;;  %v2878_v40 = vmul.bf16 %v4844_v38, %v6558_v4 }
 0x205   : > { %v2410_v18 = vsel %vm706_vm13, %v2404_v56, %v2406_v25  ;;  %v4595_v63 = vcombine.high %v1226_v59, %v1228_v44  ;;  %v2877_v7 = vmul.bf16 %v6540_v22, %v6567_v42  ;;  %v2879_v36 = vmul.bf16 %v6543_v52, %v6567_v42  ;;  %v1284_v25 = vld [vmem:[%s5634_s20 + $0x14] sm:$0xf] }
 0x206   : > { %2847 = vrot.lane.b32.xlu1 %v6574_v2, %s5447_s10  ;;  %4192 = vmatprep.subr.bf16.mxu1 %v2410_v18  ;;  %v4596_v16 = vcombine.low %v1227_v30, %v1229_v60  ;;  %v2880_v50 = vmul.bf16 %v4846_v11, %v6558_v4  ;;  %v1282_v4 = vld [vmem:[%s5634_s20 + $0x8] sm:$0xf]  ;;  %v4594_v6 = vcombine.low %v1226_v59, %v1228_v44  ;;  %v6662_v44 = vld [vmem:[%s5634_s20 + $0x18] sm:$0xff]  ;;  %s5461_s10 = smov 60  }
 0x207   : > { %1791 = vrot.lane.b32.xlu0 %v5687_v46, %s5448_s6  ;;  %v4851_v57 = vcombine.high %v2877_v7, %v2879_v36  ;;  %s5463_s6 = smov [#allocation8]  }
 0x208   : > { %v2402_v58 = vpop.permute.xlu1 %2401  ;;  %v1290_v24 = vpop.permute.xlu0 %1289  ;;  %v4852_v39 = vcombine.low %v2878_v40, %v2880_v50 }
 0x209   : > { %v2409_v54 = vsel %vm706_vm13, %v2402_v58, %v2404_v56  ;;  %v6621_v55 = vrot.slane %v1290_v24, 4  ;;  %v4850_v58 = vcombine.low %v2877_v7, %v2879_v36  ;;  %vm1342_vm13 = vcmask 752640  }
 0x20a   : > { %1258 = vrot.lane.b32.xlu1 %v4592_v47, %s5449_s5  ;;  %4193 = vmatpush1.bf16.msra.mxu1 %v2409_v54  ;;  %v4856_v54 = vld [vmem:[%s5634_s20 + $0x44] sm:$0xf] }
 0x20b   : > { %1260 = vrot.lane.b32.xlu0 %v4593_v48, %s5449_s5  ;;  %v6631_v56 = vsel %vm1292_vm6, %v6621_v55, %v1290_v24  ;;  %v1297_v29 = vmul.bf16 %v6621_v55, %v1282_v4  ;;  %v1299_v19 = vmul.bf16 %v6621_v55, %v1284_v25  ;;  %v4854_v48 = vld [vmem:[%s5634_s20 + $0x38] sm:$0xf]  ;;  %vm2001_vm6 = vcmask 556032  }
 0x20c   : > { %v2464_v46 = vpop.permute.xlu1 %2463  ;;  %v2466_v8 = vpop.permute.xlu0 %2465  ;;  %v1296_v18 = vmul.bf16 %v6473_v9, %v6631_v56  ;;  %v1298_v14 = vmul.bf16 %v6476_v31, %v6631_v56  ;;  %v2939_v34 = vmul.bf16 %v6484_v10, %v6631_v56  ;;  %v2941_v17 = vmul.bf16 %v6487_v35, %v6631_v56 }
 0x20d   : > { %v2474_v49 = vsel %vm780_vm14, %v2464_v46, %v2466_v8  ;;  %v2940_v8 = vmul.bf16 %v4854_v48, %v6621_v55  ;;  %v1300_v38 = vmul.bf16 %v6631_v56, %v6662_v44 }
 0x20e   : > { %2909 = vrot.lane.b32.xlu1 %v4848_v3, %s5449_s5  ;;  %4194 = vmatprep.subr.bf16.mxu1 %v2474_v49  ;;  %v4598_v31 = vcombine.high %v1296_v18, %v1298_v14  ;;  %v4599_v3 = vcombine.low %v1297_v29, %v1299_v19  ;;  %v4862_v61 = vcombine.high %v2939_v34, %v2941_v17  ;;  %v6706_v29 = vld [vmem:[%s5634_s20 + $0xc] sm:$0xff] }
 0x20f   : > { %2911 = vrot.lane.b32.xlu0 %v4849_v1, %s5449_s5  ;;  %v2942_v1 = vmul.bf16 %v4856_v54, %v6621_v55  ;;  %v4597_v60 = vcombine.low %v1296_v18, %v1298_v14 }
 0x210   : > { %v2462_v23 = vpop.permute.xlu1 %2461  ;;  %v2470_v13 = vpop.permute.xlu0 %2469 }
 0x211   : > { %v2473_v43 = vsel %vm780_vm14, %v2462_v23, %v2464_v46 }
 0x212   : > { %1256 = vrot.lane.b32.xlu1 %v4591_v33, %s5449_s5  ;;  %4195 = vmatpush1.bf16.msra.mxu1 %v2473_v43  ;;  %v4863_v33 = vcombine.low %v2940_v8, %v2942_v1  ;;  %v1288_v43 = vld [vmem:[%s5634_s20 + $0x2c] sm:$0xf] }
 0x213   : > { %2907 = vrot.lane.b32.xlu0 %v4847_v12, %s5449_s5  ;;  %v1286_v12 = vld [vmem:[%s5634_s20 + $0x20] sm:$0xf]  ;;  %v1303_v7 = vmul.bf16 %v6621_v55, %v1288_v43 }
 0x214   : > { %v2472_v32 = vpop.permute.xlu1 %2471  ;;  %v2468_v53 = vpop.permute.xlu0 %2467  ;;  %v1301_v40 = vmul.bf16 %v6621_v55, %v1286_v12  ;;  %v4870_v12 = vld [vmem:[%s5634_s20 + $0x44] sm:$0xf] }
 0x215   : > { %v2476_v0 = vsel %vm780_vm14, %v2470_v13, %v2472_v32  ;;  %v2475_v21 = vsel %vm780_vm14, %v2468_v53, %v2470_v13  ;;  %v6665_v13 = vld [vmem:[%s5634_s20 + $0x24] sm:$0xff]  ;;  %v4858_v53 = vld [vmem:[%s5634_s20 + $0x50] sm:$0xf]  ;;  %vm1721_vm14 = vcmask 523264  }
 0x216   : > { %1264 = vrot.lane.b32.xlu1 %v4595_v63, %s5449_s5  ;;  %4196 = vmatprep.subr.bf16.mxu1 %v2476_v0  ;;  %v1302_v11 = vmul.bf16 %v6631_v56, %v6665_v13  ;;  %v4861_v63 = vcombine.low %v2939_v34, %v2941_v17  ;;  %v2944_v4 = vmul.bf16 %v4858_v53, %v6621_v55  ;;  %v1358_v34 = vld [vmem:[%s5634_s20 + $0x14] sm:$0xf] }
 0x217   : > { %1266 = vrot.lane.b32.xlu0 %v4596_v16, %s5449_s5  ;;  %4197 = vmatpush1.bf16.msra.mxu1 %v2475_v21  ;;  %v4860_v16 = vld [vmem:[%s5634_s20 + $0x5c] sm:$0xf]  ;;  %v2943_v21 = vmul.bf16 %v6540_v22, %v6631_v56 }
 0x218   : > { %v6628_v42 = vpop.permute.xlu1 %1363  ;;  %v2522_v41 = vpop.permute.xlu0 %2521  ;;  %v4601_v50 = vcombine.high %v1300_v38, %v1302_v11  ;;  %v2946_v25 = vmul.bf16 %v4860_v16, %v6621_v55 }
 0x21a   : > { %2915 = vrot.lane.b32.xlu1 %v4851_v57, %s5449_s5  ;;  %v2945_v57 = vmul.bf16 %v6543_v52, %v6631_v56  ;;  %v4866_v14 = vcombine.low %v2944_v4, %v2946_v25 }
 0x21b   : > { %2917 = vrot.lane.b32.xlu0 %v4852_v39, %s5449_s5  ;;  %v4602_v39 = vcombine.low %v1301_v40, %v1303_v7 }
 0x21c   : > { %v2524_v62 = vpop.permute.xlu1 %2523  ;;  %v4864_v54 = vcombine.low %v2943_v21, %v2945_v57 }
 0x21d   : > { %v2520_v15 = vpop.permute.xlu0 %2519  ;;  %v2532_v47 = vsel %vm839_vm15, %v2522_v41, %v2524_v62  ;;  %v6691_v62 = vrot.slane %v6628_v42, 4 }
 0x21e   : > { %1262 = vrot.lane.b32.xlu1 %v4594_v6, %s5449_s5  ;;  %4198 = vmatprep.subr.bf16.mxu1 %v2532_v47  ;;  %v2531_v24 = vsel %vm839_vm15, %v2520_v15, %v2522_v41  ;;  %v4865_v6 = vcombine.high %v2943_v21, %v2945_v57  ;;  %v6703_v47 = vld [vmem:[%s5634_s20] sm:$0xff]  ;;  %v1362_v21 = vld [vmem:[%s5634_s20 + $0x2c] sm:$0xf] }
 0x21f   : > { %2913 = vrot.lane.b32.xlu0 %v4850_v58, %s5449_s5  ;;  %4199 = vmatpush1.bf16.msra.mxu1 %v2531_v24  ;;  %v6698_v55 = vsel %vm1366_vm7, %v6691_v62, %v6628_v42  ;;  %v4600_v24 = vcombine.low %v1300_v38, %v1302_v11  ;;  %v1373_v8 = vmul.bf16 %v6691_v62, %v1358_v34  ;;  %vm1697_vm7 = vcmask 621568   ;;  %s5346_s5 = sshll.u32 %s5463_s6, 4  ;;  %s5347_s5 = int_to_ptr.vmem [resolvable:$false] %s5346_s5 }
 0x220   : > { %v2528_v9 = vpop.permute.xlu1 %2527  ;;  %v1370_v42 = vmul.bf16 %v6698_v55, %v6703_v47  ;;  %v3008_v38 = vmul.bf16 %v4870_v12, %v6691_v62  ;;  %v1374_v16 = vmul.bf16 %v6698_v55, %v6662_v44 }
 0x221   : > { %v2530_v46 = vpop.permute.xlu0 %2529 }
 0x222   : > { %1332 = vrot.lane.b32.xlu1 %v4598_v31, %s5450_s7  ;;  %v2534_v49 = vsel %vm839_vm15, %v2528_v9, %v2530_v46  ;;  %v1356_v31 = vld [vmem:[%s5634_s20 + $0x8] sm:$0xf] }
 0x223   : > { %1334 = vrot.lane.b32.xlu0 %v4599_v3, %s5450_s7  ;;  %4200 = vmatprep.subr.bf16.mxu1 %v2534_v49  ;;  %v1371_v3 = vmul.bf16 %v6691_v62, %v1356_v31 }
 0x224   : > { %v2526_v27 = vpop.permute.xlu1 %2525 }
 0x225   : > { %v6658_v23 = vpop.permute.xlu0 %1437  ;;  %v2533_v59 = vsel %vm839_vm15, %v2526_v27, %v2528_v9  ;;  %v1372_v9 = vmul.bf16 %v6698_v55, %v6706_v29  ;;  %vm1416_vm15 = vcmask 654336  }
 0x226   : > { %2975 = vrot.lane.b32.xlu1 %v4862_v61, %s5450_s7  ;;  %4201 = vmatpush1.bf16.msra.mxu1 %v2533_v59  ;;  %v3005_v61 = vmul.bf16 %v6484_v10, %v6698_v55  ;;  %v4868_v59 = vld [vmem:[%s5634_s20 + $0x38] sm:$0xf] }
 0x227   : > { %2977 = vrot.lane.b32.xlu0 %v4863_v33, %s5450_s7  ;;  %v4604_v27 = vcombine.high %v1370_v42, %v1372_v9  ;;  %v3007_v33 = vmul.bf16 %v6487_v35, %v6698_v55  ;;  %v4603_v53 = vcombine.low %v1370_v42, %v1372_v9 }
 0x228   : > { %v2588_v30 = vpop.permute.xlu1 %2587 }
 0x229   : > { %v2590_v32 = vpop.permute.xlu0 %2589  ;;  %4203 = vmatmul.mubr.bf16.vlgmr.msra.gmra.mrb[0].mxu1 %v6428_v28 }
 0x22a   : > { %1330 = vrot.lane.b32.xlu1 %v4597_v60, %s5450_s7  ;;  %v2598_v36 = vsel %vm913_vm0, %v2588_v30, %v2590_v32  ;;  %v3006_v60 = vmul.bf16 %v4868_v59, %v6691_v62  ;;  %v4876_v32 = vcombine.high %v3005_v61, %v3007_v33  ;;  %v5256_v59 = vld [vmem:[#allocation6 + $0xc] ss:$28 sps:$4 sm:$0xff]  }
 0x22b   : > { %2973 = vrot.lane.b32.xlu0 %v4861_v63, %s5450_s7  ;;  %4223 = vmatprep.subr.bf16.mxu1 %v2598_v36 }
 0x22c   : > { %v2586_v0 = vpop.permute.xlu1 %2585  ;;  %v4877_v7 = vcombine.low %v3006_v60, %v3008_v38 }
 0x22d   : > { %v2594_v41 = vpop.permute.xlu0 %2593  ;;  %v2597_v28 = vsel %vm913_vm0, %v2586_v0, %v2588_v30  ;;  %v4605_v30 = vcombine.low %v1371_v3, %v1373_v8  ;;  %v1376_v0 = vmul.bf16 %v6698_v55, %v6665_v13 }
 0x22e   : > { %1338 = vrot.lane.b32.xlu1 %v4601_v50, %s5450_s7  ;;  %4224 = vmatpush1.bf16.msra.mxu1 %v2597_v28  ;;  %v1360_v50 = vld [vmem:[%s5634_s20 + $0x20] sm:$0xf] }
 0x22f   : > { %1340 = vrot.lane.b32.xlu0 %v4602_v39, %s5450_s7  ;;  %v1375_v28 = vmul.bf16 %v6691_v62, %v1360_v50  ;;  %v1377_v39 = vmul.bf16 %v6691_v62, %v1362_v21  ;;  %v4607_v25 = vcombine.high %v1374_v16, %v1376_v0 }
 0x230   : > { %v2596_v56 = vpop.permute.xlu1 %2595 }
 0x231   : > { %v2592_v18 = vpop.permute.xlu0 %2591  ;;  %v2600_v15 = vsel %vm913_vm0, %v2594_v41, %v2596_v56  ;;  %v4608_v42 = vcombine.low %v1375_v28, %v1377_v39 }
 0x232   : > { %v2599_v58 = vsel %vm913_vm0, %v2592_v18, %v2594_v41  ;;  %2981 = vrot.lane.b32.xlu1 %v4865_v6, %s5450_s7  ;;  %4225 = vmatprep.subr.bf16.mxu1 %v2600_v15  ;;  %v4875_v41 = vcombine.low %v3005_v61, %v3007_v33  ;;  %v3009_v6 = vmul.bf16 %v6540_v22, %v6698_v55  ;;  %v4874_v15 = vld [vmem:[%s5634_s20 + $0x5c] sm:$0xf]  ;;  %v1430_v61 = vld [vmem:[%s5634_s20 + $0x8] sm:$0xf]  ;;  %v1432_v33 = vld [vmem:[%s5634_s20 + $0x14] sm:$0xf] }
 0x233   : > { %2983 = vrot.lane.b32.xlu0 %v4866_v14, %s5450_s7  ;;  %4226 = vmatpush1.bf16.msra.mxu1 %v2599_v58  ;;  %v3011_v18 = vmul.bf16 %v6543_v52, %v6698_v55  ;;  %v4872_v14 = vld [vmem:[%s5634_s20 + $0x50] sm:$0xf]  ;;  %v5251_v58 = vld [vmem:[#allocation6 + $0x3c] ss:$28 sps:$4 sm:$0xff]   ;;  %v3012_v9 = vmul.bf16 %v4874_v15, %v6691_v62  ;;  %vm1794_vm0 = vcmask 531456  }
 0x234   : > { %v2654_v19 = vpop.permute.xlu1 %2653  ;;  %v3010_v55 = vmul.bf16 %v4872_v14, %v6691_v62  ;;  %4000 = vmatprep.mubr.bf16.mxu0 %v5251_v58  ;;  %4212 = vmatprep.mubr.bf16.mxu1 %v5251_v58 }
 0x235   : > { %v2656_v48 = vpop.permute.xlu0 %2655  ;;  %v4879_v34 = vcombine.high %v3009_v6, %v3011_v18 }
 0x236   : > { %1336 = vrot.lane.b32.xlu1 %v4600_v24, %s5450_s7  ;;  %v2664_v17 = vsel %vm987_vm1, %v2654_v19, %v2656_v48  ;;  %v5253_v48 = vld [vmem:[#allocation6 + $0x38] ss:$28 sps:$4 sm:$0xff]   ;;  %v4880_v62 = vcombine.low %v3010_v55, %v3012_v9 }
 0x237   : > { %2979 = vrot.lane.b32.xlu0 %v4864_v54, %s5450_s7  ;;  %4227 = vmatprep.subr.bf16.mxu1 %v2664_v17  ;;  %s5348_s7 = scalar_lea.vmem %s5347_s5, 4096 }
 0x238   : > { %v2652_v46 = vpop.permute.xlu1 %2651  ;;  %4001 = vmatmul.mubr.bf16.gmra.mrb[4].mxu0 %v5253_v48  ;;  %4213 = vmatmul.mubr.bf16.gmra.mrb[4].mxu1 %v5253_v48 }
 0x239   : > { %v2660_v1 = vpop.permute.xlu0 %2659  ;;  %v2663_v49 = vsel %vm987_vm1, %v2652_v46, %v2654_v19  ;;  %v6755_v19 = vrot.slane %v6658_v23, 4  ;;  %4043 = vmatprep.mubr.bf16.mxu0 %v5256_v59  ;;  %4255 = vmatprep.mubr.bf16.mxu1 %v5256_v59 }
 0x23a   : > { %1924 = vrot.lane.b32.xlu1 %v5683_v45, %s5451_s26  ;;  %4228 = vmatpush1.bf16.msra.mxu1 %v2663_v49  ;;  %v4606_v49 = vcombine.low %v1374_v16, %v1376_v0 }
 0x23b   : > { %1406 = vrot.lane.b32.xlu0 %v4604_v27, %s5452_s8  ;;  %v6764_v17 = vsel %vm1440_vm8, %v6755_v19, %v6658_v23  ;;  %v1447_v60 = vmul.bf16 %v6755_v19, %v1432_v33  ;;  %vm1844_vm8 = vcmask 515072  }
 0x23c   : > { %v2662_v43 = vpop.permute.xlu1 %2661  ;;  %v1444_v27 = vmul.bf16 %v6764_v17, %v6703_v47  ;;  %v1446_v23 = vmul.bf16 %v6764_v17, %v6706_v29  ;;  %v3075_v9 = vmul.bf16 %v6540_v22, %v6764_v17 }
 0x23d   : > { %v2658_v11 = vpop.permute.xlu0 %2657  ;;  %v2666_v63 = vsel %vm987_vm1, %v2660_v1, %v2662_v43  ;;  %v4878_v43 = vcombine.low %v3009_v6, %v3011_v18  ;;  %v1434_v6 = vld [vmem:[%s5634_s20 + $0x20] sm:$0xf]  ;;  %v1436_v18 = vld [vmem:[%s5634_s20 + $0x2c] sm:$0xf] }
 0x23e   : > { %v2665_v40 = vsel %vm987_vm1, %v2658_v11, %v2660_v1  ;;  %1408 = vrot.lane.b32.xlu1 %v4605_v30, %s5452_s8  ;;  %4229 = vmatprep.subr.bf16.mxu1 %v2666_v63  ;;  %v1445_v30 = vmul.bf16 %v6755_v19, %v1430_v61  ;;  %v4610_v11 = vcombine.high %v1444_v27, %v1446_v23  ;;  %vm1490_vm1 = vcmask 646144  }
 0x23f   : > { %3041 = vrot.lane.b32.xlu0 %v4876_v32, %s5452_s8  ;;  %4230 = vmatpush1.bf16.msra.mxu1 %v2665_v40  ;;  %v3071_v32 = vmul.bf16 %v6484_v10, %v6764_v17  ;;  %v3073_v63 = vmul.bf16 %v6487_v35, %v6764_v17  ;;  %v4882_v40 = vld [vmem:[%s5634_s20 + $0x38] sm:$0xf]  ;;  %v4609_v39 = vcombine.low %v1444_v27, %v1446_v23 }
 0x240   : > { %v6735_v45 = vpop.permute.xlu1 %1570  ;;  %v4611_v16 = vcombine.low %v1445_v30, %v1447_v60  ;;  %v3072_v0 = vmul.bf16 %v4882_v40, %v6755_v19  ;;  %v1451_v48 = vmul.bf16 %v6755_v19, %v1436_v18  ;;  %v4616_v60 = vcombine.high %v6703_v47, %v6706_v29  ;;  %v5245_v40 = vld [vmem:[%s5634_s20 + $0x38] ss:$12 sps:$4 sm:$0xff]   ;;  %v1563_v18 = vld [vmem:[%s5634_s20 + $0x8] sm:$0xf] }
 0x241   : > { %v2720_v36 = vpop.permute.xlu0 %2719  ;;  %v4890_v21 = vcombine.high %v3071_v32, %v3073_v63  ;;  %v4889_v58 = vcombine.low %v3071_v32, %v3073_v63 }
 0x242   : > { %3043 = vrot.lane.b32.xlu1 %v4877_v7, %s5452_s8  ;;  %v4884_v7 = vld [vmem:[%s5634_s20 + $0x44] sm:$0xf] }
 0x243   : > { %1404 = vrot.lane.b32.xlu0 %v4603_v53, %s5452_s8  ;;  %v3074_v10 = vmul.bf16 %v4884_v7, %v6755_v19 }
 0x244   : > { %v2722_v57 = vpop.permute.xlu1 %2721 }
 0x245   : > { %v2718_v4 = vpop.permute.xlu0 %2717  ;;  %v2730_v56 = vsel %vm1061_vm2, %v2720_v36, %v2722_v57 }
 0x246   : > { %v2729_v24 = vsel %vm1061_vm2, %v2718_v4, %v2720_v36  ;;  %3039 = vrot.lane.b32.xlu1 %v4875_v41, %s5452_s8  ;;  %4231 = vmatprep.subr.bf16.mxu1 %v2730_v56  ;;  %v4891_v41 = vcombine.low %v3072_v0, %v3074_v10  ;;  %v1450_v56 = vmul.bf16 %v6764_v17, %v6665_v13 }
 0x247   : > { %1412 = vrot.lane.b32.xlu0 %v4607_v25, %s5452_s8  ;;  %4232 = vmatpush1.bf16.msra.mxu1 %v2729_v24  ;;  %v1448_v25 = vmul.bf16 %v6764_v17, %v6662_v44  ;;  %v1449_v24 = vmul.bf16 %v6755_v19, %v1434_v6  ;;  %v4618_v6 = vcombine.low %v6662_v44, %v6665_v13 }
 0x248   : > { %v2726_v54 = vpop.permute.xlu1 %2725 }
 0x249   : > { %v2728_v31 = vpop.permute.xlu0 %2727  ;;  %v4612_v61 = vcombine.low %v1448_v25, %v1450_v56 }
 0x24a   : > { %1414 = vrot.lane.b32.xlu1 %v4608_v42, %s5452_s8  ;;  %v2732_v46 = vsel %vm1061_vm2, %v2726_v54, %v2728_v31  ;;  %v4613_v42 = vcombine.high %v1448_v25, %v1450_v56  ;;  %v3077_v31 = vmul.bf16 %v6543_v52, %v6764_v17 }
 0x24b   : > { %3047 = vrot.lane.b32.xlu0 %v4879_v34, %s5452_s8  ;;  %4233 = vmatprep.subr.bf16.mxu1 %v2732_v46  ;;  %v4888_v34 = vld [vmem:[%s5634_s20 + $0x5c] sm:$0xf] }
 0x24c   : > { %v2724_v3 = vpop.permute.xlu1 %2723  ;;  %v3078_v22 = vmul.bf16 %v4888_v34, %v6755_v19  ;;  %v4893_v27 = vcombine.high %v3075_v9, %v3077_v31  ;;  %v4892_v59 = vcombine.low %v3075_v9, %v3077_v31  ;;  %v4910_v9 = vld [vmem:[%s5634_s20 + $0x38] sm:$0xf]  ;;  %v4912_v31 = vld [vmem:[%s5634_s20 + $0x44] sm:$0xf] }
 0x24d   : > { %v6769_v8 = vpop.permute.xlu0 %1644  ;;  %v2731_v1 = vsel %vm1061_vm2, %v2724_v3, %v2726_v54  ;;  %vm1549_vm2 = vcmask 637952  }
 0x24e   : > { %3049 = vrot.lane.b32.xlu1 %v4880_v62, %s5452_s8  ;;  %4234 = vmatpush1.bf16.msra.mxu1 %v2731_v1  ;;  %v4614_v62 = vcombine.low %v1449_v24, %v1451_v48 }
 0x24f   : > { %1410 = vrot.lane.b32.xlu0 %v4606_v49, %s5452_s8 }
 0x250   : > { %v2786_v12 = vpop.permute.xlu1 %2785 }
 0x251   : > { %v2788_v38 = vpop.permute.xlu0 %2787 }
 0x252   : > { %3045 = vrot.lane.b32.xlu1 %v4878_v43, %s5452_s8  ;;  %v2796_v36 = vsel %vm1135_vm4, %v2786_v12, %v2788_v38  ;;  %v5243_v38 = vld [vmem:[%s5634_s20 + $0x8] ss:$12 sps:$4 sm:$0xff]  }
 0x253   : > { %1480 = vrot.lane.b32.xlu0 %v4610_v11, %s5453_s28  ;;  %4235 = vmatprep.subr.bf16.mxu1 %v2796_v36 }
 0x254   : > { %v2784_v53 = vpop.permute.xlu1 %2783 }
 0x255   : > { %v1132_v35 = vpop.permute.xlu0 %1131  ;;  %v2795_v50 = vsel %vm1135_vm4, %v2784_v53, %v2786_v12 }
 0x256   : > { %1482 = vrot.lane.b32.xlu1 %v4611_v16, %s5453_s28  ;;  %4236 = vmatpush1.bf16.msra.mxu1 %v2795_v50  ;;  %v1138_v14 = vsel %vm1135_vm4, %v6349_v5, %v1132_v35  ;;  %v4886_v5 = vld [vmem:[%s5634_s20 + $0x50] sm:$0xf]  ;;  %v4619_v50 = vcombine.high %v6662_v44, %v6665_v13 }
 0x257   : > { %3107 = vrot.lane.b32.xlu0 %v4890_v21, %s5453_s28  ;;  %v3076_v1 = vmul.bf16 %v4886_v5, %v6755_v19 }
 0x258   : > { %v1134_v57 = vpop.permute.xlu1 %1133 }
 0x259   : > { %v2792_v28 = vpop.permute.xlu0 %2791  ;;  %v1139_v4 = vsel %vm1135_vm4, %v1132_v35, %v1134_v57  ;;  %v4894_v17 = vcombine.low %v3076_v1, %v3078_v22  ;;  %v6854_v57 = vrot.slane %v6735_v45, 4 }
 0x25a   : > { %3109 = vrot.lane.b32.xlu1 %v4891_v41, %s5453_s28  ;;  %4025 = vmatprep.subr.bf16.mxu0 %v1139_v4 }
 0x25b   : > { %1478 = vrot.lane.b32.xlu0 %v4609_v39, %s5453_s28  ;;  %4026 = vmatpush1.bf16.msra.mxu0 %v1138_v14  ;;  %v5249_v39 = vld [vmem:[%s5634_s20 + $0x50] ss:$12 sps:$4 sm:$0xff]   ;;  %v6864_v4 = vsel %vm1573_vm10, %v6854_v57, %v6735_v45  ;;  %v1565_v14 = vld [vmem:[%s5634_s20 + $0x14] sm:$0xf]  ;;  %v1578_v24 = vmul.bf16 %v6854_v57, %v1563_v18  ;;  %vm1977_vm10 = vcmask 498688  }
 0x25c   : > { %v2794_v15 = vpop.permute.xlu1 %2793  ;;  %v1577_v45 = vmul.bf16 %v6864_v4, %v6703_v47  ;;  %v1580_v48 = vmul.bf16 %v6854_v57, %v1565_v14 }
 0x25d   : > { %v2790_v54 = vpop.permute.xlu0 %2789  ;;  %v2798_v55 = vsel %vm1135_vm4, %v2792_v28, %v2794_v15 }
 0x25e   : > { %v2797_v46 = vsel %vm1135_vm4, %v2790_v54, %v2792_v28  ;;  %3105 = vrot.lane.b32.xlu1 %v4889_v58, %s5453_s28  ;;  %4237 = vmatprep.subr.bf16.mxu1 %v2798_v55  ;;  %v1579_v58 = vmul.bf16 %v6864_v4, %v6706_v29  ;;  %v6881_v54 = vld [vmem:[%s5634_s20 + $0x30] sm:$0xff]  ;;  %vm1927_vm4 = vcmask 547840  }
 0x25f   : > { %1486 = vrot.lane.b32.xlu0 %v4613_v42, %s5453_s28  ;;  %4238 = vmatpush1.bf16.msra.mxu1 %v2797_v46  ;;  %v6884_v42 = vld [vmem:[%s5634_s20 + $0x3c] sm:$0xff]  ;;  %v3195_v46 = vmul.bf16 %v6881_v54, %v6864_v4 }
 0x260   : > { %v6819_v3 = vpop.permute.xlu1 %1718  ;;  %v4622_v34 = vcombine.high %v1577_v45, %v1579_v58 }
 0x261   : > { %v1185_v49 = vpop.permute.xlu0 %1184 }
 0x262   : > { %1488 = vrot.lane.b32.xlu1 %v4614_v62, %s5453_s28  ;;  %v3197_v62 = vmul.bf16 %v6884_v42, %v6864_v4 }
 0x263   : > { %3113 = vrot.lane.b32.xlu0 %v4893_v27, %s5453_s28  ;;  %v3196_v27 = vmul.bf16 %v4910_v9, %v6854_v57 }
 0x264   : > { %v1187_v52 = vpop.permute.xlu1 %1186 }
 0x265   : > { %v2844_v23 = vpop.permute.xlu0 %2843  ;;  %v1196_v33 = vsel %vm1194_vm9, %v1185_v49, %v1187_v52  ;;  %v3198_v52 = vmul.bf16 %v4912_v31, %v6854_v57 }
 0x266   : > { %3115 = vrot.lane.b32.xlu1 %v4894_v17, %s5453_s28  ;;  %4027 = vmatprep.subr.bf16.mxu0 %v1196_v33 }
 0x267   : > { %1484 = vrot.lane.b32.xlu0 %v4612_v61, %s5453_s28  ;;  %v4919_v33 = vcombine.low %v3196_v27, %v3198_v52 }
 0x268   : > { %v2846_v19 = vpop.permute.xlu1 %2845 }
 0x269   : > { %v1183_v12 = vpop.permute.xlu0 %1182  ;;  %v2854_v43 = vsel %vm1194_vm9, %v2844_v23, %v2846_v19 }
 0x26a   : > { %v1195_v30 = vsel %vm1194_vm9, %v1183_v12, %v1185_v49  ;;  %3111 = vrot.lane.b32.xlu1 %v4892_v59, %s5453_s28  ;;  %4239 = vmatprep.subr.bf16.mxu1 %v2854_v43  ;;  %v4623_v49 = vcombine.low %v1578_v24, %v1580_v48  ;;  %v1567_v59 = vld [vmem:[%s5634_s20 + $0x20] sm:$0xf]  ;;  %v1569_v12 = vld [vmem:[%s5634_s20 + $0x2c] sm:$0xf] }
 0x26b   : > { %1998 = vrot.lane.b32.xlu0 %v5679_v37, %s5454_s21  ;;  %4028 = vmatpush1.bf16.msra.mxu0 %v1195_v30  ;;  %v4615_v37 = vcombine.low %v6703_v47, %v6706_v29  ;;  %v4621_v30 = vcombine.low %v1577_v45, %v1579_v58  ;;  %v1637_v45 = vld [vmem:[%s5634_s20 + $0x8] sm:$0xf]  ;;  %v1639_v58 = vld [vmem:[%s5634_s20 + $0x14] sm:$0xf] }
 0x26c   : > { %v2842_v11 = vpop.permute.xlu1 %2841 }
 0x26d   : > { %v1191_v32 = vpop.permute.xlu0 %1190  ;;  %v2853_v63 = vsel %vm1194_vm9, %v2842_v11, %v2844_v23  ;;  %v4918_v23 = vcombine.high %v3195_v46, %v3197_v62 }
 0x26e   : > { %1539 = vrot.lane.b32.xlu1 %v4616_v60, %s5455_s13  ;;  %4240 = vmatpush1.bf16.msra.mxu1 %v2853_v63  ;;  %v1581_v60 = vmul.bf16 %v6864_v4, %v6662_v44  ;;  %v1582_v63 = vmul.bf16 %v6854_v57, %v1567_v59 }
 0x26f   : > { %1541 = vrot.lane.b32.xlu0 %v5243_v38, %s5455_s13  ;;  %v1583_v38 = vmul.bf16 %v6864_v4, %v6665_v13 }
 0x270   : > { %v1193_v7 = vpop.permute.xlu1 %1192 }
 0x271   : > { %v2850_v36 = vpop.permute.xlu0 %2849  ;;  %v1198_v53 = vsel %vm1194_vm9, %v1191_v32, %v1193_v7  ;;  %v4914_v7 = vld [vmem:[%s5634_s20 + $0x50] sm:$0xf]  ;;  %v4624_v24 = vcombine.low %v1581_v60, %v1583_v38 }
 0x272   : > { %3165 = vrot.lane.b32.xlu1 %v6500_v51, %s5455_s13  ;;  %4029 = vmatprep.subr.bf16.mxu0 %v1198_v53  ;;  %v5247_v51 = vld [vmem:[%s5634_s20 + $0x20] ss:$12 sps:$4 sm:$0xff]   ;;  %v6918_v53 = vld [vmem:[%s5634_s20 + $0x54] sm:$0xff] }
 0x273   : > { %3167 = vrot.lane.b32.xlu0 %v5245_v40, %s5455_s13  ;;  %v1584_v40 = vmul.bf16 %v6854_v57, %v1569_v12 }
 0x274   : > { %v2852_v16 = vpop.permute.xlu1 %2851 }
 0x275   : > { %v1189_v0 = vpop.permute.xlu0 %1188  ;;  %v2856_v10 = vsel %vm1194_vm9, %v2850_v36, %v2852_v16  ;;  %v4916_v16 = vld [vmem:[%s5634_s20 + $0x5c] sm:$0xf] }
 0x276   : > { %v1197_v35 = vsel %vm1194_vm9, %v1189_v0, %v1191_v32  ;;  %1537 = vrot.lane.b32.xlu1 %v4615_v37, %s5455_s13  ;;  %4241 = vmatprep.subr.bf16.mxu1 %v2856_v10  ;;  %v4917_v32 = vcombine.low %v3195_v46, %v3197_v62  ;;  %v4625_v10 = vcombine.high %v1581_v60, %v1583_v38  ;;  %v4924_v46 = vld [vmem:[%s5634_s20 + $0x38] sm:$0xf]  ;;  %v4926_v62 = vld [vmem:[%s5634_s20 + $0x44] sm:$0xf]  ;;  %v1641_v60 = vld [vmem:[%s5634_s20 + $0x20] sm:$0xf] }
 0x277   : > { %3163 = vrot.lane.b32.xlu0 %v6522_v26, %s5455_s13  ;;  %4030 = vmatpush1.bf16.msra.mxu0 %v1197_v35  ;;  %v3200_v35 = vmul.bf16 %v4914_v7, %v6854_v57  ;;  %v1643_v38 = vld [vmem:[%s5634_s20 + $0x2c] sm:$0xf] }
 0x278   : > { %v2848_v21 = vpop.permute.xlu1 %2847 }
 0x279   : > { %v6856_v41 = vpop.permute.xlu0 %1791  ;;  %v2855_v28 = vsel %vm1194_vm9, %v2848_v21, %v2850_v36  ;;  %v6915_v36 = vld [vmem:[%s5634_s20 + $0x48] sm:$0xff]  ;;  %v6930_v21 = vrot.slane %v6769_v8, 4  ;;  %vm1903_vm9 = vcmask 506880  }
 0x27a   : > { %1545 = vrot.lane.b32.xlu1 %v4619_v50, %s5455_s13  ;;  %4242 = vmatpush1.bf16.msra.mxu1 %v2855_v28  ;;  %v3199_v50 = vmul.bf16 %v6915_v36, %v6864_v4 }
 0x27b   : > { %1547 = vrot.lane.b32.xlu0 %v5247_v51, %s5455_s13  ;;  %v3201_v51 = vmul.bf16 %v6918_v53, %v6864_v4  ;;  %v6939_v18 = vsel %vm1647_vm12, %v6930_v21, %v6769_v8  ;;  %v1652_v31 = vmul.bf16 %v6930_v21, %v1637_v45 }
 0x27c   : > { %v1259_v26 = vpop.permute.xlu1 %1258  ;;  %v1651_v48 = vmul.bf16 %v6939_v18, %v6703_v47  ;;  %v1653_v8 = vmul.bf16 %v6939_v18, %v6706_v29  ;;  %v3263_v27 = vmul.bf16 %v6884_v42, %v6939_v18 }
 0x27d   : > { %v1261_v25 = vpop.permute.xlu0 %1260  ;;  %v4920_v9 = vcombine.low %v3199_v50, %v3201_v51 }
 0x27e   : > { %3171 = vrot.lane.b32.xlu1 %v6556_v20, %s5455_s13  ;;  %v1270_v56 = vsel %vm1268_vm11, %v1259_v26, %v1261_v25  ;;  %v3202_v25 = vmul.bf16 %v4916_v16, %v6854_v57  ;;  %v1656_v16 = vmul.bf16 %v6930_v21, %v1641_v60  ;;  %v1715_v60 = vld [vmem:[%s5634_s20 + $0x20] sm:$0xf] }
 0x27f   : > { %3173 = vrot.lane.b32.xlu0 %v5249_v39, %s5455_s13  ;;  %4031 = vmatprep.subr.bf16.mxu0 %v1270_v56 }
 0x280   : > { %v2910_v15 = vpop.permute.xlu1 %2909 }
 0x281   : > { %v2912_v20 = vpop.permute.xlu0 %2911 }
 0x282   : > { %1543 = vrot.lane.b32.xlu1 %v4618_v6, %s5455_s13  ;;  %v2920_v55 = vsel %vm1268_vm11, %v2910_v15, %v2912_v20  ;;  %v4921_v6 = vcombine.high %v3199_v50, %v3201_v51  ;;  %v4930_v50 = vld [vmem:[%s5634_s20 + $0x5c] sm:$0xf] }
 0x283   : > { %3169 = vrot.lane.b32.xlu0 %v6574_v2, %s5455_s13  ;;  %4243 = vmatprep.subr.bf16.mxu1 %v2920_v55  ;;  %s4504_s13 = sshll.u32 %s5630_s12, 7 }
 0x284   : > { %v1257_v5 = vpop.permute.xlu1 %1256 }
 0x285   : > { %v2908_v1 = vpop.permute.xlu0 %2907  ;;  %v1269_v22 = vsel %vm1268_vm11, %v1257_v5, %v1259_v26  ;;  %v4626_v26 = vcombine.low %v1582_v63, %v1584_v40  ;;  %v1654_v5 = vmul.bf16 %v6930_v21, %v1639_v58  ;;  %v1655_v63 = vmul.bf16 %v6939_v18, %v6662_v44 }
 0x286   : > { %v2919_v2 = vsel %vm1268_vm11, %v2908_v1, %v2910_v15  ;;  %1613 = vrot.lane.b32.xlu1 %v4622_v34, %s5456_s14  ;;  %4032 = vmatpush1.bf16.msra.mxu0 %v1269_v22  ;;  %v4922_v15 = vcombine.low %v3200_v35, %v3202_v25  ;;  %v4628_v22 = vcombine.high %v1651_v48, %v1653_v8 }
 0x287   : > { %1615 = vrot.lane.b32.xlu0 %v4623_v49, %s5456_s14  ;;  %4244 = vmatpush1.bf16.msra.mxu1 %v2919_v2  ;;  %v3261_v49 = vmul.bf16 %v6881_v54, %v6939_v18  ;;  %v1657_v40 = vmul.bf16 %v6939_v18, %v6665_v13  ;;  %v3265_v13 = vmul.bf16 %v6915_v36, %v6939_v18 }
 0x288   : > { %v1265_v17 = vpop.permute.xlu1 %1264 }
 0x289   : > { %v1267_v61 = vpop.permute.xlu0 %1266  ;;  %v4932_v59 = vcombine.high %v3261_v49, %v3263_v27  ;;  %v4631_v44 = vcombine.high %v1655_v63, %v1657_v40 }
 0x28a   : > { %3231 = vrot.lane.b32.xlu1 %v4918_v23, %s5456_s14  ;;  %v1272_v19 = vsel %vm1268_vm11, %v1265_v17, %v1267_v61  ;;  %v3262_v23 = vmul.bf16 %v4924_v46, %v6930_v21  ;;  %v3264_v61 = vmul.bf16 %v4926_v62, %v6930_v21  ;;  %v4938_v46 = vld [vmem:[%s5634_s20 + $0x38] sm:$0xf]  ;;  %v4940_v62 = vld [vmem:[%s5634_s20 + $0x44] sm:$0xf] }
 0x28b   : > { %3233 = vrot.lane.b32.xlu0 %v4919_v33, %s5456_s14  ;;  %4033 = vmatprep.subr.bf16.mxu0 %v1272_v19 }
 0x28c   : > { %v2916_v43 = vpop.permute.xlu1 %2915 }
 0x28d   : > { %v2918_v11 = vpop.permute.xlu0 %2917 }
 0x28e   : > { %1611 = vrot.lane.b32.xlu1 %v4621_v30, %s5456_s14  ;;  %v2922_v37 = vsel %vm1268_vm11, %v2916_v43, %v2918_v11 }
 0x28f   : > { %3229 = vrot.lane.b32.xlu0 %v4917_v32, %s5456_s14  ;;  %4245 = vmatprep.subr.bf16.mxu1 %v2922_v37  ;;  %v4627_v32 = vcombine.low %v1651_v48, %v1653_v8  ;;  %v4931_v37 = vcombine.low %v3261_v49, %v3263_v27  ;;  %v4630_v48 = vcombine.low %v1655_v63, %v1657_v40 }
 0x290   : > { %v1263_v0 = vpop.permute.xlu1 %1262 }
 0x291   : > { %v2914_v28 = vpop.permute.xlu0 %2913  ;;  %v1271_v39 = vsel %vm1268_vm11, %v1263_v0, %v1265_v17  ;;  %v4629_v17 = vcombine.low %v1652_v31, %v1654_v5  ;;  %v1658_v0 = vmul.bf16 %v6930_v21, %v1643_v38  ;;  %v1717_v38 = vld [vmem:[%s5634_s20 + $0x2c] sm:$0xf] }
 0x292   : > { %v2921_v56 = vsel %vm1268_vm11, %v2914_v28, %v2916_v43  ;;  %1619 = vrot.lane.b32.xlu1 %v4625_v10, %s5456_s14  ;;  %4034 = vmatpush1.bf16.msra.mxu0 %v1271_v39  ;;  %v4933_v43 = vcombine.low %v3262_v23, %v3264_v61  ;;  %v4928_v10 = vld [vmem:[%s5634_s20 + $0x50] sm:$0xf]  ;;  %v3267_v39 = vmul.bf16 %v6918_v53, %v6939_v18  ;;  %vm2051_vm11 = vcmask 490496  }
 0x293   : > { %1621 = vrot.lane.b32.xlu0 %v4626_v26, %s5456_s14  ;;  %4246 = vmatpush1.bf16.msra.mxu1 %v2921_v56  ;;  %v3266_v28 = vmul.bf16 %v4928_v10, %v6930_v21  ;;  %v6989_v26 = vrot.slane %v6819_v3, 4 }
 0x294   : > { %v1333_v4 = vpop.permute.xlu1 %1332 }
 0x295   : > { %v1335_v14 = vpop.permute.xlu0 %1334  ;;  %v1732_v10 = vmul.bf16 %v6989_v26, %v1717_v38 }
 0x296   : > { %3237 = vrot.lane.b32.xlu1 %v4921_v6, %s5456_s14  ;;  %v1344_v57 = vsel %vm1342_vm13, %v1333_v4, %v1335_v14  ;;  %v3268_v6 = vmul.bf16 %v4930_v50, %v6930_v21  ;;  %v1711_v21 = vld [vmem:[%s5634_s20 + $0x8] sm:$0xf]  ;;  %v4944_v50 = vld [vmem:[%s5634_s20 + $0x5c] sm:$0xf] }
 0x297   : > { %3239 = vrot.lane.b32.xlu0 %v4922_v15, %s5456_s14  ;;  %4035 = vmatprep.subr.bf16.mxu0 %v1344_v57  ;;  %v4935_v15 = vcombine.high %v3265_v13, %v3267_v39  ;;  %v7001_v57 = vsel %vm1721_vm14, %v6989_v26, %v6819_v3  ;;  %v1726_v5 = vmul.bf16 %v6989_v26, %v1711_v21 }
 0x298   : > { %v2976_v20 = vpop.permute.xlu1 %2975  ;;  %v4936_v58 = vcombine.low %v3266_v28, %v3268_v6  ;;  %v1725_v8 = vmul.bf16 %v7001_v57, %v6703_v47  ;;  %v1727_v3 = vmul.bf16 %v7001_v57, %v6706_v29  ;;  %v3327_v29 = vmul.bf16 %v6881_v54, %v7001_v57 }
 0x299   : > { %v2978_v55 = vpop.permute.xlu0 %2977 }
 0x29a   : > { %1617 = vrot.lane.b32.xlu1 %v4624_v24, %s5456_s14  ;;  %v2986_v34 = vsel %vm1342_vm13, %v2976_v20, %v2978_v55  ;;  %v4634_v47 = vcombine.high %v1725_v8, %v1727_v3 }
 0x29b   : > { %3235 = vrot.lane.b32.xlu0 %v4920_v9, %s5456_s14  ;;  %4247 = vmatprep.subr.bf16.mxu1 %v2986_v34  ;;  %v4934_v9 = vcombine.low %v3265_v13, %v3267_v39  ;;  %v3331_v13 = vmul.bf16 %v6915_v36, %v7001_v57  ;;  %v3333_v39 = vmul.bf16 %v6918_v53, %v7001_v57  ;;  %s7353_s14 = scalar_lea.vmem [#allocation8], %s4504_s13 }
 0x29c   : > { %v1331_v1 = vpop.permute.xlu1 %1330 }
 0x29d   : > { %v2974_v52 = vpop.permute.xlu0 %2973  ;;  %v1343_v2 = vsel %vm1342_vm13, %v1331_v1, %v1333_v4  ;;  %v4632_v4 = vcombine.low %v1656_v16, %v1658_v0  ;;  %v1730_v0 = vmul.bf16 %v6989_v26, %v1715_v60 }
 0x29e   : > { %v2985_v33 = vsel %vm1342_vm13, %v2974_v52, %v2976_v20  ;;  %1687 = vrot.lane.b32.xlu1 %v4628_v22, %s5457_s9  ;;  %4036 = vmatpush1.bf16.msra.mxu0 %v1343_v2  ;;  %v1713_v20 = vld [vmem:[%s5634_s20 + $0x14] sm:$0xf]  ;;  %v3329_v22 = vmul.bf16 %v6884_v42, %v7001_v57  ;;  %v3328_v2 = vmul.bf16 %v4938_v46, %v6989_v26 }
 0x29f   : > { %1689 = vrot.lane.b32.xlu0 %v4629_v17, %s5457_s9  ;;  %4248 = vmatpush1.bf16.msra.mxu1 %v2985_v33  ;;  %v1728_v34 = vmul.bf16 %v6989_v26, %v1713_v20  ;;  %v3330_v17 = vmul.bf16 %v4940_v62, %v6989_v26  ;;  %v4948_v46 = vcombine.low %v3331_v13, %v3333_v39 }
 0x2a0   : > { %v1339_v19 = vpop.permute.xlu1 %1338  ;;  %v4946_v33 = vcombine.high %v3327_v29, %v3329_v22 }
 0x2a1   : > { %v1341_v12 = vpop.permute.xlu0 %1340  ;;  %v4635_v27 = vcombine.low %v1726_v5, %v1728_v34 }
 0x2a2   : > { %3297 = vrot.lane.b32.xlu1 %v4932_v59, %s5457_s9  ;;  %v1346_v30 = vsel %vm1342_vm13, %v1339_v19, %v1341_v12  ;;  %v4947_v12 = vcombine.low %v3328_v2, %v3330_v17 }
 0x2a3   : > { %3299 = vrot.lane.b32.xlu0 %v4933_v43, %s5457_s9  ;;  %4037 = vmatprep.subr.bf16.mxu0 %v1346_v30  ;;  %v7030_v43 = vld [vmem:[%s5634_s20 + $0x18] sm:$0xff]  ;;  %v7033_v30 = vld [vmem:[%s5634_s20 + $0x24] sm:$0xff] }
 0x2a4   : > { %v2982_v11 = vpop.permute.xlu1 %2981  ;;  %v1729_v63 = vmul.bf16 %v7001_v57, %v7030_v43  ;;  %v1731_v40 = vmul.bf16 %v7001_v57, %v7033_v30  ;;  %v5254_v57 = vld [vmem:[#allocation6 + $0x8] ss:$28 sps:$4 sm:$0xff]  }
 0x2a5   : > { %v2984_v7 = vpop.permute.xlu0 %2983 }
 0x2a6   : > { %1685 = vrot.lane.b32.xlu1 %v4627_v32, %s5457_s9  ;;  %v2988_v35 = vsel %vm1342_vm13, %v2982_v11, %v2984_v7  ;;  %v4633_v32 = vcombine.low %v1725_v8, %v1727_v3  ;;  %v7072_v8 = vld [vmem:[%s5634_s20 + $0xc] sm:$0xff]  ;;  %v1784_v3 = vld [vmem:[%s5634_s20 + $0x8] sm:$0xf] }
 0x2a7   : > { %3295 = vrot.lane.b32.xlu0 %v4931_v37, %s5457_s9  ;;  %4249 = vmatprep.subr.bf16.mxu1 %v2988_v35  ;;  %v4945_v37 = vcombine.low %v3327_v29, %v3329_v22  ;;  %v4942_v35 = vld [vmem:[%s5634_s20 + $0x50] sm:$0xf]  ;;  %v4952_v29 = vld [vmem:[%s5634_s20 + $0x38] sm:$0xf]  ;;  %v4954_v22 = vld [vmem:[%s5634_s20 + $0x44] sm:$0xf] }
 0x2a8   : > { %v1337_v51 = vpop.permute.xlu1 %1336  ;;  %v3332_v28 = vmul.bf16 %v4942_v35, %v6989_v26 }
 0x2a9   : > { %v2980_v25 = vpop.permute.xlu0 %2979  ;;  %v1345_v56 = vsel %vm1342_vm13, %v1337_v51, %v1339_v19 }
 0x2aa   : > { %v2987_v14 = vsel %vm1342_vm13, %v2980_v25, %v2982_v11  ;;  %1693 = vrot.lane.b32.xlu1 %v4631_v44, %s5457_s9  ;;  %4038 = vmatpush1.bf16.msra.mxu0 %v1345_v56  ;;  %v4637_v44 = vcombine.high %v1729_v63, %v1731_v40  ;;  %v7056_v25 = vrot.slane %v6856_v41, 4 }
 0x2ab   : > { %1695 = vrot.lane.b32.xlu0 %v4632_v4, %s5457_s9  ;;  %4250 = vmatpush1.bf16.msra.mxu1 %v2987_v14  ;;  %v4638_v4 = vcombine.low %v1730_v0, %v1732_v10  ;;  %v3334_v14 = vmul.bf16 %v4944_v50, %v6989_v26 }
 0x2ac   : > { %v6996_v18 = vpop.permute.xlu1 %1924  ;;  %v7065_v21 = vsel %vm1794_vm0, %v7056_v25, %v6856_v41 }
 0x2ad   : > { %v1407_v45 = vpop.permute.xlu0 %1406  ;;  %v1800_v5 = vmul.bf16 %v7065_v21, %v7072_v8  ;;  %v3395_v2 = vmul.bf16 %v6884_v42, %v7065_v21  ;;  %v1804_v0 = vmul.bf16 %v7065_v21, %v7033_v30 }
 0x2ae   : > { %3303 = vrot.lane.b32.xlu1 %v4935_v15, %s5457_s9 }
 0x2af   : > { %3305 = vrot.lane.b32.xlu0 %v4936_v58, %s5457_s9  ;;  %v4949_v58 = vcombine.high %v3331_v13, %v3333_v39  ;;  %v4958_v13 = vld [vmem:[%s5634_s20 + $0x5c] sm:$0xf] }
 0x2b0   : > { %v1409_v24 = vpop.permute.xlu1 %1408 }
 0x2b1   : > { %v3042_v55 = vpop.permute.xlu0 %3041  ;;  %v1418_v31 = vsel %vm1416_vm15, %v1407_v45, %v1409_v24  ;;  %v4950_v24 = vcombine.low %v3332_v28, %v3334_v14  ;;  %v4956_v28 = vld [vmem:[%s5634_s20 + $0x50] sm:$0xf] }
 0x2b2   : > { %1691 = vrot.lane.b32.xlu1 %v4630_v48, %s5457_s9  ;;  %4039 = vmatprep.subr.bf16.mxu0 %v1418_v31  ;;  %v7069_v48 = vld [vmem:[%s5634_s20] sm:$0xff] }
 0x2b3   : > { %3301 = vrot.lane.b32.xlu0 %v4934_v9, %s5457_s9  ;;  %v4636_v9 = vcombine.low %v1729_v63, %v1731_v40  ;;  %v1798_v31 = vmul.bf16 %v7065_v21, %v7069_v48  ;;  %v1788_v63 = vld [vmem:[%s5634_s20 + $0x20] sm:$0xf]  ;;  %v1790_v40 = vld [vmem:[%s5634_s20 + $0x2c] sm:$0xf]  ;;  %s5030_s9 = sshll.u32 %s5512_s19, 9 }
 0x2b4   : > { %v3044_v1 = vpop.permute.xlu1 %3043 }
 0x2b5   : > { %v1405_v49 = vpop.permute.xlu0 %1404  ;;  %v3052_v52 = vsel %vm1416_vm15, %v3042_v55, %v3044_v1  ;;  %v1799_v1 = vmul.bf16 %v7056_v25, %v1784_v3 }
 0x2b6   : > { %v1417_v23 = vsel %vm1416_vm15, %v1405_v49, %v1407_v45  ;;  %1761 = vrot.lane.b32.xlu1 %v4634_v47, %s5446_s29  ;;  %4251 = vmatprep.subr.bf16.mxu1 %v3052_v52  ;;  %v3393_v52 = vmul.bf16 %v6881_v54, %v7065_v21 }
 0x2b7   : > { %1763 = vrot.lane.b32.xlu0 %v4635_v27, %s5446_s29  ;;  %4040 = vmatpush1.bf16.msra.mxu0 %v1417_v23  ;;  %v4640_v27 = vcombine.high %v1798_v31, %v1800_v5 }
 0x2b8   : > { %v3040_v61 = vpop.permute.xlu1 %3039  ;;  %v4960_v60 = vcombine.high %v3393_v52, %v3395_v2  ;;  %v4959_v35 = vcombine.low %v3393_v52, %v3395_v2 }
 0x2b9   : > { %v1413_v19 = vpop.permute.xlu0 %1412  ;;  %v3051_v59 = vsel %vm1416_vm15, %v3040_v61, %v3042_v55  ;;  %v1786_v55 = vld [vmem:[%s5634_s20 + $0x14] sm:$0xf] }
 0x2ba   : > { %3363 = vrot.lane.b32.xlu1 %v4946_v33, %s5446_s29  ;;  %4252 = vmatpush1.bf16.msra.mxu1 %v3051_v59  ;;  %v1801_v47 = vmul.bf16 %v7056_v25, %v1786_v55  ;;  %v3394_v33 = vmul.bf16 %v4952_v29, %v7056_v25  ;;  %v4974_v29 = vcombine.high %v6881_v54, %v6884_v42 }
 0x2bb   : > { %3365 = vrot.lane.b32.xlu0 %v4947_v12, %s5446_s29 }
 0x2bc   : > { %v1415_v11 = vpop.permute.xlu1 %1414  ;;  %v4641_v23 = vcombine.low %v1799_v1, %v1801_v47 }
 0x2bd   : > { %v3048_v7 = vpop.permute.xlu0 %3047  ;;  %v1420_v16 = vsel %vm1416_vm15, %v1413_v19, %v1415_v11 }
 0x2be   : > { %1759 = vrot.lane.b32.xlu1 %v4633_v32, %s5446_s29  ;;  %4041 = vmatprep.subr.bf16.mxu0 %v1420_v16  ;;  %v1802_v16 = vmul.bf16 %v7065_v21, %v7030_v43 }
 0x2bf   : > { %3361 = vrot.lane.b32.xlu0 %v4945_v37, %s5446_s29  ;;  %v4639_v37 = vcombine.low %v1798_v31, %v1800_v5 }
 0x2c0   : > { %v3050_v51 = vpop.permute.xlu1 %3049 }
 0x2c1   : > { %v1411_v56 = vpop.permute.xlu0 %1410  ;;  %v3054_v6 = vsel %vm1416_vm15, %v3048_v7, %v3050_v51  ;;  %v1803_v51 = vmul.bf16 %v7056_v25, %v1788_v63  ;;  %v4977_v63 = vcombine.high %v6915_v36, %v6918_v53 }
 0x2c2   : > { %v1419_v15 = vsel %vm1416_vm15, %v1411_v56, %v1413_v19  ;;  %1767 = vrot.lane.b32.xlu1 %v4637_v44, %s5446_s29  ;;  %4253 = vmatprep.subr.bf16.mxu1 %v3054_v6  ;;  %v3396_v19 = vmul.bf16 %v4954_v22, %v7056_v25  ;;  %v1805_v44 = vmul.bf16 %v7056_v25, %v1790_v40  ;;  %v5259_v22 = vld [vmem:[%s5634_s20 + $0x38] ss:$12 sps:$4 sm:$0xff]   ;;  %v5265_v40 = vld [vmem:[%s5634_s20 + $0x50] ss:$12 sps:$4 sm:$0xff]  }
 0x2c3   : > { %1769 = vrot.lane.b32.xlu0 %v4638_v4, %s5446_s29  ;;  %4042 = vmatpush1.bf16.msra.mxu0 %v1419_v15  ;;  %v4643_v56 = vcombine.high %v1802_v16, %v1804_v0  ;;  %v3397_v4 = vmul.bf16 %v6915_v36, %v7065_v21  ;;  %v3399_v6 = vmul.bf16 %v6918_v53, %v7065_v21 }
 0x2c4   : > { %v3046_v45 = vpop.permute.xlu1 %3045  ;;  %v4961_v32 = vcombine.low %v3394_v33, %v3396_v19  ;;  %v4644_v15 = vcombine.low %v1803_v51, %v1805_v44  ;;  %v1919_v51 = vld [vmem:[%s5634_s20 + $0x14] sm:$0xf] }
 0x2c5   : > { %v1481_v20 = vpop.permute.xlu0 %1480  ;;  %v3053_v26 = vsel %vm1416_vm15, %v3046_v45, %v3048_v7  ;;  %v3398_v45 = vmul.bf16 %v4956_v28, %v7056_v25  ;;  %v4962_v31 = vcombine.low %v3397_v4, %v3399_v6 }
 0x2c6   : > { %3369 = vrot.lane.b32.xlu1 %v4949_v58, %s5446_s29  ;;  %4254 = vmatpush1.bf16.msra.mxu1 %v3053_v26  ;;  %v3400_v58 = vmul.bf16 %v4958_v13, %v7056_v25 }
 0x2c7   : > { %3371 = vrot.lane.b32.xlu0 %v4950_v24, %s5446_s29  ;;  %4044 = vmatmul.mubr.bf16.vlgmr.msra.gmra.mrb[0].mxu0 %v5254_v57  ;;  %v4963_v24 = vcombine.high %v3397_v4, %v3399_v6 }
 0x2c8   : > { %v1483_v41 = vpop.permute.xlu1 %1482  ;;  %v4964_v55 = vcombine.low %v3398_v45, %v3400_v58 }
 0x2c9   : > { %v3108_v34 = vpop.permute.xlu0 %3107  ;;  %v1492_v62 = vsel %vm1490_vm1, %v1481_v20, %v1483_v41  ;;  %4256 = vmatmul.mubr.bf16.vlgmr.msra.gmra.mrb[0].mxu1 %v5254_v57  ;;  %v4642_v41 = vcombine.low %v1802_v16, %v1804_v0 }
 0x2ca   : > { %1765 = vrot.lane.b32.xlu1 %v4636_v9, %s5446_s29  ;;  %4064 = vmatprep.subr.bf16.mxu0 %v1492_v62 }
 0x2cb   : > { %3367 = vrot.lane.b32.xlu0 %v4948_v46, %s5446_s29  ;;  %v5257_v46 = vld [vmem:[%s5634_s20 + $0x8] ss:$12 sps:$4 sm:$0xff]   ;;  %s5460_s29 = smov 61  }
 0x2cc   : > { %v3110_v49 = vpop.permute.xlu1 %3109 }
 0x2cd   : > { %v1479_v17 = vpop.permute.xlu0 %1478  ;;  %v3118_v61 = vsel %vm1490_vm1, %v3108_v34, %v3110_v49 }
 0x2ce   : > { %v1491_v59 = vsel %vm1490_vm1, %v1479_v17, %v1481_v20  ;;  %1834 = vrot.lane.b32.xlu1 %v4640_v27, %s5458_s11  ;;  %4276 = vmatprep.subr.bf16.mxu1 %v3118_v61  ;;  %v4645_v17 = vcombine.low %v7069_v48, %v7072_v8 }
 0x2cf   : > { %1836 = vrot.lane.b32.xlu0 %v4641_v23, %s5458_s11  ;;  %4065 = vmatpush1.bf16.msra.mxu0 %v1491_v59  ;;  %v4973_v23 = vcombine.low %v6881_v54, %v6884_v42  ;;  %v4649_v59 = vcombine.high %v7030_v43, %v7033_v30 }
 0x2d0   : > { %v3106_v12 = vpop.permute.xlu1 %3105 }
 0x2d1   : > { %v1487_v38 = vpop.permute.xlu0 %1486  ;;  %v3117_v11 = vsel %vm1490_vm1, %v3106_v12, %v3108_v34  ;;  %v4646_v34 = vcombine.high %v7069_v48, %v7072_v8  ;;  %v5263_v12 = vld [vmem:[%s5634_s20 + $0x20] ss:$12 sps:$4 sm:$0xff]  }
 0x2d2   : > { %3429 = vrot.lane.b32.xlu1 %v4960_v60, %s5458_s11  ;;  %4277 = vmatpush1.bf16.msra.mxu1 %v3117_v11 }
 0x2d3   : > { %3431 = vrot.lane.b32.xlu0 %v4961_v32, %s5458_s11 }
 0x2d4   : > { %v1489_v7 = vpop.permute.xlu1 %1488 }
 0x2d5   : > { %v3114_v10 = vpop.permute.xlu0 %3113  ;;  %v1494_v50 = vsel %vm1490_vm1, %v1487_v38, %v1489_v7 }
 0x2d6   : > { %1832 = vrot.lane.b32.xlu1 %v4639_v37, %s5458_s11  ;;  %4066 = vmatprep.subr.bf16.mxu0 %v1494_v50  ;;  %v1917_v50 = vld [vmem:[%s5634_s20 + $0x8] sm:$0xf] }
 0x2d7   : > { %3427 = vrot.lane.b32.xlu0 %v4959_v35, %s5458_s11  ;;  %v4648_v35 = vcombine.low %v7030_v43, %v7033_v30 }
 0x2d8   : > { %v3116_v39 = vpop.permute.xlu1 %3115 }
 0x2d9   : > { %v1485_v14 = vpop.permute.xlu0 %1484  ;;  %v3120_v57 = vsel %vm1490_vm1, %v3114_v10, %v3116_v39 }
 0x2da   : > { %v1493_v20 = vsel %vm1490_vm1, %v1485_v14, %v1487_v38  ;;  %1840 = vrot.lane.b32.xlu1 %v4643_v56, %s5458_s11  ;;  %4278 = vmatprep.subr.bf16.mxu1 %v3120_v57  ;;  %v7157_v38 = vrot.slane %v6996_v18, 4  ;;  %v4980_v14 = vld [vmem:[%s5634_s20 + $0x38] sm:$0xf] }
 0x2db   : > { %1842 = vrot.lane.b32.xlu0 %v4644_v15, %s5458_s11  ;;  %4067 = vmatpush1.bf16.msra.mxu0 %v1493_v20  ;;  %v4982_v15 = vld [vmem:[%s5634_s20 + $0x44] sm:$0xf] }
 0x2dc   : > { %v3112_v26 = vpop.permute.xlu1 %3111  ;;  %v7167_v37 = vsel %vm1927_vm4, %v7157_v38, %v6996_v18  ;;  %v4976_v18 = vcombine.low %v6915_v36, %v6918_v53  ;;  %v1932_v56 = vmul.bf16 %v7157_v38, %v1917_v50  ;;  %v1934_v4 = vmul.bf16 %v7157_v38, %v1919_v51  ;;  %v1991_v50 = vld [vmem:[%s5634_s20 + $0x8] sm:$0xf]  ;;  %v1993_v51 = vld [vmem:[%s5634_s20 + $0x14] sm:$0xf] }
 0x2dd   : > { %v7125_v3 = vpop.permute.xlu0 %1998  ;;  %v3119_v21 = vsel %vm1490_vm1, %v3112_v26, %v3114_v10  ;;  %v1931_v28 = vmul.bf16 %v7167_v37, %v7069_v48  ;;  %v1933_v13 = vmul.bf16 %v7167_v37, %v7072_v8  ;;  %v3517_v58 = vmul.bf16 %v6881_v54, %v7167_v37 }
 0x2de   : > { %3435 = vrot.lane.b32.xlu1 %v4963_v24, %s5458_s11  ;;  %4279 = vmatpush1.bf16.msra.mxu1 %v3119_v21  ;;  %v3519_v20 = vmul.bf16 %v6884_v42, %v7167_v37  ;;  %v4653_v24 = vcombine.low %v1932_v56, %v1934_v4  ;;  %v3518_v21 = vmul.bf16 %v4980_v14, %v7157_v38  ;;  %v4995_v14 = vld [vmem:[%s5634_s20 + $0x3c] sm:$0xff] }
 0x2df   : > { %3437 = vrot.lane.b32.xlu0 %v4964_v55, %s5458_s11  ;;  %v4652_v45 = vcombine.high %v1931_v28, %v1933_v13  ;;  %v3520_v55 = vmul.bf16 %v4982_v15, %v7157_v38 }
 0x2e0   : > { %v1540_v25 = vpop.permute.xlu1 %1539 }
 0x2e1   : > { %v1542_v9 = vpop.permute.xlu0 %1541 }
 0x2e2   : > { %1838 = vrot.lane.b32.xlu1 %v4642_v41, %s5458_s11  ;;  %v1551_v5 = vsel %vm1549_vm2, %v1540_v25, %v1542_v9  ;;  %v4988_v41 = vcombine.high %v3517_v58, %v3519_v20 }
 0x2e3   : > { %3433 = vrot.lane.b32.xlu0 %v4962_v31, %s5458_s11  ;;  %4068 = vmatprep.subr.bf16.mxu0 %v1551_v5  ;;  %v4989_v31 = vcombine.low %v3518_v21, %v3520_v55  ;;  %s4412_s11 = sshll.u32 %s7353_s14, 4  ;;  %s7373_s11 = int_to_ptr.vmem [resolvable:$true] %s4412_s11 }
 0x2e4   : > { %v3166_v62 = vpop.permute.xlu1 %3165  ;;  %p5349_p10 = scmp.lt.s32.totalorder %s7373_s11, %s5347_s5 }
 0x2e5   : > { %v3168_v1 = vpop.permute.xlu0 %3167 }
 0x2e6   : > { %1893 = vrot.lane.b32.xlu1 %v4646_v34, %s5459_s25  ;;  %v3176_v47 = vsel %vm1549_vm2, %v3166_v62, %v3168_v1  ;;  %v1921_v34 = vld [vmem:[%s5634_s20 + $0x20] sm:$0xf]  ;;  %v4651_v1 = vcombine.low %v1931_v28, %v1933_v13 }
 0x2e7   : > { %1895 = vrot.lane.b32.xlu0 %v5257_v46, %s5459_s25  ;;  %4280 = vmatprep.subr.bf16.mxu1 %v3176_v47  ;;  %v1923_v46 = vld [vmem:[%s5634_s20 + $0x2c] sm:$0xf]  ;;  %v1935_v47 = vmul.bf16 %v7167_v37, %v7030_v43 }
 0x2e8   : > { %v1538_v49 = vpop.permute.xlu1 %1537 }
 0x2e9   : > { %v3164_v27 = vpop.permute.xlu0 %3163  ;;  %v1550_v52 = vsel %vm1549_vm2, %v1538_v49, %v1540_v25  ;;  %v4987_v49 = vcombine.low %v3517_v58, %v3519_v20  ;;  %v5274_v58 = vld [vmem:[#allocation6 + $0x14] ss:$28 sps:$4 sm:$0xff]  }
 0x2ea   : > { %v3175_v2 = vsel %vm1549_vm2, %v3164_v27, %v3166_v62  ;;  %3487 = vrot.lane.b32.xlu1 %v4974_v29, %s5459_s25  ;;  %4069 = vmatpush1.bf16.msra.mxu0 %v1550_v52  ;;  %v1937_v29 = vmul.bf16 %v7167_v37, %v7033_v30  ;;  %v1936_v27 = vmul.bf16 %v7157_v38, %v1921_v34 }
 0x2eb   : > { %3489 = vrot.lane.b32.xlu0 %v5259_v22, %s5459_s25  ;;  %4281 = vmatpush1.bf16.msra.mxu1 %v3175_v2  ;;  %v1938_v52 = vmul.bf16 %v7157_v38, %v1923_v46  ;;  %v1995_v46 = vld [vmem:[%s5634_s20 + $0x20] sm:$0xf] }
 0x2ec   : > { %v1546_v61 = vpop.permute.xlu1 %1545 }
 0x2ed   : > { %v1548_v33 = vpop.permute.xlu0 %1547 }
 0x2ee   : > { %1891 = vrot.lane.b32.xlu1 %v4645_v17, %s5459_s25  ;;  %v1553_v19 = vsel %vm1549_vm2, %v1546_v61, %v1548_v33  ;;  %v4984_v17 = vld [vmem:[%s5634_s20 + $0x50] sm:$0xf]  ;;  %v4655_v33 = vcombine.high %v1935_v47, %v1937_v29 }
 0x2ef   : > { %3485 = vrot.lane.b32.xlu0 %v4973_v23, %s5459_s25  ;;  %4070 = vmatprep.subr.bf16.mxu0 %v1553_v19  ;;  %v4986_v23 = vld [vmem:[%s5634_s20 + $0x5c] sm:$0xf]  ;;  %v3521_v19 = vmul.bf16 %v6915_v36, %v7167_v37 }
 0x2f0   : > { %v3172_v60 = vpop.permute.xlu1 %3171 }
 0x2f1   : > { %v3174_v11 = vpop.permute.xlu0 %3173 }
 0x2f2   : > { %1899 = vrot.lane.b32.xlu1 %v4649_v59, %s5459_s25  ;;  %v3178_v32 = vsel %vm1549_vm2, %v3172_v60, %v3174_v11  ;;  %v3523_v59 = vmul.bf16 %v6918_v53, %v7167_v37  ;;  %v4656_v11 = vcombine.low %v1936_v27, %v1938_v52 }
 0x2f3   : > { %1901 = vrot.lane.b32.xlu0 %v5263_v12, %s5459_s25  ;;  %4282 = vmatprep.subr.bf16.mxu1 %v3178_v32  ;;  %v7221_v12 = vrot.slane %v7125_v3, 4  ;;  %v3522_v32 = vmul.bf16 %v4984_v17, %v7157_v38  ;;  %v4997_v17 = vld [vmem:[%s5634_s20 + $0x48] sm:$0xff] }
 0x2f4   : > { %v1544_v7 = vpop.permute.xlu1 %1543  ;;  %v4991_v53 = vcombine.high %v3521_v19, %v3523_v59 }
 0x2f5   : > { %v3170_v16 = vpop.permute.xlu0 %3169  ;;  %v1552_v0 = vsel %vm1549_vm2, %v1544_v7, %v1546_v61  ;;  %v5271_v7 = vld [vmem:[#allocation6 + $0x40] ss:$28 sps:$4 sm:$0xff]   ;;  %v7230_v37 = vsel %vm2001_vm6, %v7221_v12, %v7125_v3  ;;  %v2006_v56 = vmul.bf16 %v7221_v12, %v1991_v50  ;;  %v2008_v4 = vmul.bf16 %v7221_v12, %v1993_v51 }
 0x2f6   : > { %v3177_v10 = vsel %vm1549_vm2, %v3170_v16, %v3172_v60  ;;  %3493 = vrot.lane.b32.xlu1 %v4977_v63, %s5459_s25  ;;  %4071 = vmatpush1.bf16.msra.mxu0 %v1552_v0  ;;  %v3524_v63 = vmul.bf16 %v4986_v23, %v7157_v38  ;;  %v2007_v28 = vmul.bf16 %v7230_v37, %v7072_v8  ;;  %v4999_v23 = vld [vmem:[%s5634_s20 + $0x54] sm:$0xff] }
 0x2f7   : > { %3495 = vrot.lane.b32.xlu0 %v5265_v40, %s5459_s25  ;;  %4283 = vmatpush1.bf16.msra.mxu1 %v3177_v10  ;;  %v5269_v40 = vld [vmem:[#allocation6 + $0x44] ss:$28 sps:$4 sm:$0xff]   ;;  %v4659_v21 = vcombine.low %v2006_v56, %v2008_v4  ;;  %v2010_v52 = vmul.bf16 %v7221_v12, %v1995_v46  ;;  %v3859_v56 = vld [vmem:[%s7425_s2 + $0x10] sm:$0xff] }
 0x2f8   : > { %v1614_v44 = vpop.permute.xlu1 %1613  ;;  %4053 = vmatprep.mubr.bf16.mxu0 %v5269_v40  ;;  %4265 = vmatprep.mubr.bf16.mxu1 %v5269_v40  ;;  %v4992_v10 = vcombine.low %v3522_v32, %v3524_v63 }
 0x2f9   : > { %v1616_v39 = vpop.permute.xlu0 %1615  ;;  %4054 = vmatmul.mubr.bf16.gmra.mrb[4].mxu0 %v5271_v7  ;;  %4266 = vmatmul.mubr.bf16.gmra.mrb[4].mxu1 %v5271_v7 }
 0x2fa   : > { %1897 = vrot.lane.b32.xlu1 %v4648_v35, %s5459_s25  ;;  %v1625_v6 = vsel %vm1623_vm5, %v1614_v44, %v1616_v39  ;;  %v4990_v39 = vcombine.low %v3521_v19, %v3523_v59  ;;  %4096 = vmatprep.mubr.bf16.mxu0 %v5274_v58  ;;  %v5000_v19 = vld [vmem:[%s5634_s20 + $0x5c] sm:$0xf] }
 0x2fb   : > { %3491 = vrot.lane.b32.xlu0 %v4976_v18, %s5459_s25  ;;  %4072 = vmatprep.subr.bf16.mxu0 %v1625_v6  ;;  %v4654_v18 = vcombine.low %v1935_v47, %v1937_v29  ;;  %v4993_v6 = vld [vmem:[%s5634_s20 + $0x30] sm:$0xff]  ;;  %v2009_v29 = vmul.bf16 %v7230_v37, %v7030_v43  ;;  %v3590_v7 = vmul.bf16 %v5000_v19, %v7221_v12 }
 0x2fc   : > { %v3232_v57 = vpop.permute.xlu1 %3231  ;;  %v3583_v20 = vmul.bf16 %v4993_v6, %v7230_v37  ;;  %4308 = vmatprep.mubr.bf16.mxu1 %v5274_v58 }
 0x2fd   : > { %v3234_v26 = vpop.permute.xlu0 %3233 }
 0x2fe   : > { %1967 = vrot.lane.b32.xlu1 %v4652_v45, %s5460_s29  ;;  %v3242_v25 = vsel %vm1623_vm5, %v3232_v57, %v3234_v26  ;;  %v4996_v45 = vld [vmem:[%s5634_s20 + $0x44] sm:$0xf]  ;;  %v3585_v26 = vmul.bf16 %v4995_v14, %v7230_v37 }
 0x2ff   : > { %1969 = vrot.lane.b32.xlu0 %v4653_v24, %s5460_s29  ;;  %4284 = vmatprep.subr.bf16.mxu1 %v3242_v25  ;;  %v3586_v25 = vmul.bf16 %v4996_v45, %v7221_v12 }
 0x300   : > { %v1612_v54 = vpop.permute.xlu1 %1611  ;;  %v5001_v27 = vcombine.low %v3583_v20, %v3585_v26 }
 0x301   : > { %v3230_v9 = vpop.permute.xlu0 %3229  ;;  %v1624_v42 = vsel %vm1623_vm5, %v1612_v54, %v1614_v44  ;;  %v2005_v44 = vmul.bf16 %v7230_v37, %v7069_v48 }
 0x302   : > { %v3241_v5 = vsel %vm1623_vm5, %v3230_v9, %v3232_v57  ;;  %3553 = vrot.lane.b32.xlu1 %v4988_v41, %s5460_s29  ;;  %4073 = vmatpush1.bf16.msra.mxu0 %v1624_v42  ;;  %v4994_v57 = vld [vmem:[%s5634_s20 + $0x38] sm:$0xf]  ;;  %v5002_v9 = vcombine.high %v3583_v20, %v3585_v26 }
 0x303   : > { %3555 = vrot.lane.b32.xlu0 %v4989_v31, %s5460_s29  ;;  %4285 = vmatpush1.bf16.msra.mxu1 %v3241_v5  ;;  %v4658_v8 = vcombine.high %v2005_v44, %v2007_v28  ;;  %v3584_v55 = vmul.bf16 %v4994_v57, %v7221_v12  ;;  %v4657_v47 = vcombine.low %v2005_v44, %v2007_v28  ;;  %v3858_v28 = vld [vmem:[%s7425_s2 + $0x8] sm:$0xff]  ;;  %v3860_v57 = vld [vmem:[%s7425_s2 + $0x18] sm:$0xff] }
 0x304   : > { %v1620_v62 = vpop.permute.xlu1 %1619 }
 0x305   : > { %v1622_v22 = vpop.permute.xlu0 %1621  ;;  %v5003_v5 = vcombine.low %v3584_v55, %v3586_v25 }
 0x306   : > { %1965 = vrot.lane.b32.xlu1 %v4651_v1, %s5460_s29  ;;  %v1627_v2 = vsel %vm1623_vm5, %v1620_v62, %v1622_v22  ;;  %v2011_v22 = vmul.bf16 %v7230_v37, %v7033_v30  ;;  %v3587_v30 = vmul.bf16 %v4997_v17, %v7230_v37 }
 0x307   : > { %3551 = vrot.lane.b32.xlu0 %v4987_v49, %s5460_s29  ;;  %4074 = vmatprep.subr.bf16.mxu0 %v1627_v2 }
 0x308   : > { %v3238_v61 = vpop.permute.xlu1 %3237  ;;  %v4661_v59 = vcombine.high %v2009_v29, %v2011_v22 }
 0x309   : > { %v3240_v60 = vpop.permute.xlu0 %3239 }
 0x30a   : > { %1973 = vrot.lane.b32.xlu1 %v4655_v33, %s5460_s29  ;;  %v3244_v16 = vsel %vm1623_vm5, %v3238_v61, %v3240_v60  ;;  %v4998_v33 = vld [vmem:[%s5634_s20 + $0x50] sm:$0xf]  ;;  %v3589_v60 = vmul.bf16 %v4999_v23, %v7230_v37 }
 0x30b   : > { %1975 = vrot.lane.b32.xlu0 %v4656_v11, %s5460_s29  ;;  %4286 = vmatprep.subr.bf16.mxu1 %v3244_v16  ;;  %v5462_v11 = vmov 0   ;;  %v3588_v40 = vmul.bf16 %v4998_v33, %v7221_v12 }
 0x30c   : > { %v1618_v36 = vpop.permute.xlu1 %1617  ;;  %5204 = vset.pattern.permute.xlu1 %v5462_v11  ;;  %5205 = vset.pattern.permute.xlu0 %v5462_v11  ;;  %v5004_v51 = vcombine.low %v3587_v30, %v3589_v60 }
 0x30d   : > { %v3236_v38 = vpop.permute.xlu0 %3235  ;;  %v1626_v0 = vsel %vm1623_vm5, %v1618_v36, %v1620_v62  ;;  %v1997_v62 = vld [vmem:[%s5634_s20 + $0x2c] sm:$0xf]  ;;  %s5342_s20 = scalar_lea.vmem %s7373_s11, 2048 }
 0x30e   : > { %v3243_v35 = vsel %vm1623_vm5, %v3236_v38, %v3238_v61  ;;  %3559 = vrot.lane.b32.xlu1 %v4991_v53, %s5460_s29  ;;  %4075 = vmatpush1.bf16.msra.mxu0 %v1626_v0  ;;  %v2012_v2 = vmul.bf16 %v7221_v12, %v1997_v62  ;;  %v5005_v53 = vcombine.high %v3587_v30, %v3589_v60  ;;  %p5343_p4 = scmp.ne.s32.totalorder %s7373_s11, %s5342_s20  ;;  %p5350_p13 = scmp.lt.s32.totalorder %s5348_s7, %s5342_s20 }
 0x30f   : > { %3561 = vrot.lane.b32.xlu0 %v4992_v10, %s5460_s29  ;;  %4287 = vmatpush1.bf16.msra.mxu1 %v3243_v35  ;;  %v5006_v0 = vcombine.low %v3588_v40, %v3590_v7  ;;  %v4660_v35 = vcombine.low %v2009_v29, %v2011_v22 }
 0x310   : > { %v1688_v3 = vpop.permute.xlu1 %1687  ;;  %v4662_v63 = vcombine.low %v2010_v52, %v2012_v2  ;;  %p5344_p6 = pnand %p5343_p4, %p5582_p12  ;;  %p5351_p3 = por %p5350_p13, %p5349_p10 }
 0x311   : > { %v1690_v13 = vpop.permute.xlu0 %1689 }
 0x312   : > { %1971 = vrot.lane.b32.xlu1 %v4654_v18, %s5460_s29  ;;  %v1699_v15 = vsel %vm1697_vm7, %v1688_v3, %v1690_v13  ;;  %v3857_v18 = vld [vmem:[%s7425_s2] sm:$0xff]  ;;  %p5345_p8 = pneg %p5344_p6 }
 0x313   : > { %3557 = vrot.lane.b32.xlu0 %v4990_v39, %s5460_s29  ;;  %4076 = vmatprep.subr.bf16.mxu0 %v1699_v15  ;;  %s7371_s29 = scalar_lea.hbm %s7427_s4, %s5030_s9 }
 0x314   : > { %v3298_v48 = vpop.permute.xlu1 %3297  ;;  %p5352_p7 = pnand %p5351_p3, %p5345_p8 }
 0x315   : > { %v3300_v24 = vpop.permute.xlu0 %3299 }
 0x316   : > { %2041 = vrot.lane.b32.xlu1 %v4658_v8, %s5461_s10  ;;  %v3308_v54 = vsel %vm1697_vm7, %v3298_v48, %v3300_v24 }
 0x317   : > { %2043 = vrot.lane.b32.xlu0 %v4659_v21, %s5461_s10  ;;  %4288 = vmatprep.subr.bf16.mxu1 %v3308_v54 }
 0x318   : > { %v1686_v41 = vpop.permute.xlu1 %1685 }
 0x319   : > { %v3296_v42 = vpop.permute.xlu0 %3295  ;;  %v1698_v31 = vsel %vm1697_vm7, %v1686_v41, %v1688_v3 }
 0x31a   : > { %v3307_v34 = vsel %vm1697_vm7, %v3296_v42, %v3298_v48  ;;  %3619 = vrot.lane.b32.xlu1 %v5002_v9, %s5461_s10  ;;  %4077 = vmatpush1.bf16.msra.mxu0 %v1698_v31 }
 0x31b   : > { %3621 = vrot.lane.b32.xlu0 %v5003_v5, %s5461_s10  ;;  %4289 = vmatpush1.bf16.msra.mxu1 %v3307_v34 }
 0x31c   : > { %v1694_v1 = vpop.permute.xlu1 %1693 }
 0x31d   : > { %v1696_v49 = vpop.permute.xlu0 %1695 }
 0x31e   : > { %2039 = vrot.lane.b32.xlu1 %v4657_v47, %s5461_s10  ;;  %v1701_v61 = vsel %vm1697_vm7, %v1694_v1, %v1696_v49 }
 0x31f   : > { %3617 = vrot.lane.b32.xlu0 %v5001_v27, %s5461_s10  ;;  %4078 = vmatprep.subr.bf16.mxu0 %v1701_v61 }
 0x320   : > { %v3304_v43 = vpop.permute.xlu1 %3303 }
 0x321   : > { %v3306_v32 = vpop.permute.xlu0 %3305 }
 0x322   : > { %2047 = vrot.lane.b32.xlu1 %v4661_v59, %s5461_s10  ;;  %v3310_v16 = vsel %vm1697_vm7, %v3304_v43, %v3306_v32 }
 0x323   : > { %2049 = vrot.lane.b32.xlu0 %v4662_v63, %s5461_s10  ;;  %4290 = vmatprep.subr.bf16.mxu1 %v3310_v16 }
 0x324   : > { %v1692_v36 = vpop.permute.xlu1 %1691 }
 0x325   : > { %v3302_v37 = vpop.permute.xlu0 %3301  ;;  %v1700_v38 = vsel %vm1697_vm7, %v1692_v36, %v1694_v1 }
 0x326   : > { %v3309_v10 = vsel %vm1697_vm7, %v3302_v37, %v3304_v43  ;;  %3625 = vrot.lane.b32.xlu1 %v5005_v53, %s5461_s10  ;;  %4079 = vmatpush1.bf16.msra.mxu0 %v1700_v38 }
 0x327   : > { %3627 = vrot.lane.b32.xlu0 %v5006_v0, %s5461_s10  ;;  %4291 = vmatpush1.bf16.msra.mxu1 %v3309_v10 }
 0x328   : > { %v1762_v12 = vpop.permute.xlu1 %1761 }
 0x329   : > { %v1764_v50 = vpop.permute.xlu0 %1763 }
 0x32a   : > { %2045 = vrot.lane.b32.xlu1 %v4660_v35, %s5461_s10  ;;  %v1772_v3 = vsel %vm1721_vm14, %v1762_v12, %v1764_v50 }
 0x32b   : > { %3623 = vrot.lane.b32.xlu0 %v5004_v51, %s5461_s10  ;;  %4080 = vmatprep.subr.bf16.mxu0 %v1772_v3  ;;  %s4399_s10 = scalar_lea.sflag [#allocation5], %s5630_s12 }
 0x32c   : > { %v3364_v44 = vpop.permute.xlu1 %3363 }
 0x32d   : > { %v3366_v13 = vpop.permute.xlu0 %3365 }
 0x32e   : > { %v3374_v39 = vsel %vm1721_vm14, %v3364_v44, %v3366_v13  ;;  %3863 = vperm.xlu1 %5204, %v3857_v18  }
 0x32f   : > { %4292 = vmatprep.subr.bf16.mxu1 %v3374_v39  ;;  %3868 = vperm.xlu0 %5205, %v3858_v28  }
 0x330   : > { %v1760_v4 = vpop.permute.xlu1 %1759 }
 0x331   : > { %v3362_v6 = vpop.permute.xlu0 %3361  ;;  %v1771_v14 = vsel %vm1721_vm14, %v1760_v4, %v1762_v12 }
 0x332   : > { %v3373_v15 = vsel %vm1721_vm14, %v3362_v6, %v3364_v44  ;;  %4081 = vmatpush1.bf16.msra.mxu0 %v1771_v14  ;;  %3873 = vperm.xlu1 %5204, %v3859_v56  }
 0x333   : > { %4293 = vmatpush1.bf16.msra.mxu1 %v3373_v15 }
 0x334   : > { %v1768_v45 = vpop.permute.xlu1 %1767 }
 0x335   : > { %v1770_v58 = vpop.permute.xlu0 %1769 }
 0x336   : > { %v1774_v48 = vsel %vm1721_vm14, %v1768_v45, %v1770_v58  ;;  %3878 = vperm.xlu1 %5204, %v3860_v57  }
 0x337   : > { %4082 = vmatprep.subr.bf16.mxu0 %v1774_v48 }
 0x338   : > { %v3370_v8 = vpop.permute.xlu1 %3369 }
 0x339   : > { %v3372_v20 = vpop.permute.xlu0 %3371 }
 0x33a   : > { %v3376_v26 = vsel %vm1721_vm14, %v3370_v8, %v3372_v20 }
 0x33b   : > { %4294 = vmatprep.subr.bf16.mxu1 %v3376_v26 }
 0x33c   : > { %v1766_v24 = vpop.permute.xlu1 %1765 }
 0x33d   : > { %v3368_v21 = vpop.permute.xlu0 %3367  ;;  %v1773_v55 = vsel %vm1721_vm14, %v1766_v24, %v1768_v45  ;;  %v5272_v24 = vld [vmem:[#allocation6 + $0x10] ss:$28 sps:$4 sm:$0xff]  }
 0x33e   : > { %v3375_v25 = vsel %vm1721_vm14, %v3368_v21, %v3370_v8  ;;  %4083 = vmatpush1.bf16.msra.mxu0 %v1773_v55  ;;  %v5275_v55 = vld [vmem:[#allocation6 + $0x4c] ss:$28 sps:$4 sm:$0xff]  }
 0x33f   : > { %4295 = vmatpush1.bf16.msra.mxu1 %v3375_v25 }
 0x340   : > { %v1835_v54 = vpop.permute.xlu1 %1834 }
 0x341   : > { %v1837_v41 = vpop.permute.xlu0 %1836 }
 0x342   : > { %v1846_v9 = vsel %vm1844_vm8, %v1835_v54, %v1837_v41 }
 0x343   : > { %4084 = vmatprep.subr.bf16.mxu0 %v1846_v9 }
 0x344   : > { %v3430_v42 = vpop.permute.xlu1 %3429 }
 0x345   : > { %v3432_v31 = vpop.permute.xlu0 %3431 }
 0x346   : > { %v3440_v5 = vsel %vm1844_vm8, %v3430_v42, %v3432_v31  ;;  %v5277_v31 = vld [vmem:[#allocation6 + $0x48] ss:$28 sps:$4 sm:$0xff]  }
 0x347   : > { %4296 = vmatprep.subr.bf16.mxu1 %v3440_v5 }
 0x348   : > { %v1833_v34 = vpop.permute.xlu1 %1832 }
 0x349   : > { %v3428_v46 = vpop.permute.xlu0 %3427  ;;  %v1845_v62 = vsel %vm1844_vm8, %v1833_v34, %v1835_v54 }
 0x34a   : > { %v3439_v1 = vsel %vm1844_vm8, %v3428_v46, %v3430_v42  ;;  %4085 = vmatpush1.bf16.msra.mxu0 %v1845_v62 }
 0x34b   : > { %4297 = vmatpush1.bf16.msra.mxu1 %v3439_v1 }
 0x34c   : > { %v1841_v47 = vpop.permute.xlu1 %1840 }
 0x34d   : > { %v1843_v29 = vpop.permute.xlu0 %1842 }
 0x34e   : > { %v1848_v22 = vsel %vm1844_vm8, %v1841_v47, %v1843_v29 }
 0x34f   : > { %4086 = vmatprep.subr.bf16.mxu0 %v1848_v22 }
 0x350   : > { %v3436_v49 = vpop.permute.xlu1 %3435 }
 0x351   : > { %v3438_v27 = vpop.permute.xlu0 %3437 }
 0x352   : > { %v3442_v52 = vsel %vm1844_vm8, %v3436_v49, %v3438_v27 }
 0x353   : > { %4298 = vmatprep.subr.bf16.mxu1 %v3442_v52 }
 0x354   : > { %v1839_v2 = vpop.permute.xlu1 %1838 }
 0x355   : > { %v3434_v17 = vpop.permute.xlu0 %3433  ;;  %v1847_v23 = vsel %vm1844_vm8, %v1839_v2, %v1841_v47 }
 0x356   : > { %v3441_v61 = vsel %vm1844_vm8, %v3434_v17, %v3436_v49  ;;  %4087 = vmatpush1.bf16.msra.mxu0 %v1847_v23 }
 0x357   : > { %4299 = vmatpush1.bf16.msra.mxu1 %v3441_v61  ;;  %v5278_v61 = vld [vmem:[#allocation6 + $0x18] ss:$28 sps:$4 sm:$0xff]  }
 0x358   : > { %v1894_v33 = vpop.permute.xlu1 %1893 }
 0x359   : > { %v1896_v19 = vpop.permute.xlu0 %1895 }
 0x35a   : > { %v1905_v43 = vsel %vm1903_vm9, %v1894_v33, %v1896_v19  ;;  %v5279_v19 = vld [vmem:[#allocation6 + $0x50] ss:$28 sps:$4 sm:$0xff]  }
 0x35b   : > { %4088 = vmatprep.subr.bf16.mxu0 %v1905_v43 }
 0x35c   : > { %v3488_v59 = vpop.permute.xlu1 %3487 }
 0x35d   : > { %v3490_v30 = vpop.permute.xlu0 %3489 }
 0x35e   : > { %v3498_v60 = vsel %vm1903_vm9, %v3488_v59, %v3490_v30 }
 0x35f   : > { %4300 = vmatprep.subr.bf16.mxu1 %v3498_v60 }
 0x360   : > { %v1892_v32 = vpop.permute.xlu1 %1891 }
 0x361   : > { %v3486_v63 = vpop.permute.xlu0 %3485  ;;  %v1904_v40 = vsel %vm1903_vm9, %v1892_v32, %v1894_v33 }
 0x362   : > { %v3497_v7 = vsel %vm1903_vm9, %v3486_v63, %v3488_v59  ;;  %4089 = vmatpush1.bf16.msra.mxu0 %v1904_v40 }
 0x363   : > { %4301 = vmatpush1.bf16.msra.mxu1 %v3497_v7 }
 0x364   : > { %v1900_v16 = vpop.permute.xlu1 %1899 }
 0x365   : > { %v1902_v36 = vpop.permute.xlu0 %1901 }
 0x366   : > { %v1907_v53 = vsel %vm1903_vm9, %v1900_v16, %v1902_v36 }
 0x367   : > { %4090 = vmatprep.subr.bf16.mxu0 %v1907_v53 }
 0x368   : > { %v3494_v37 = vpop.permute.xlu1 %3493 }
 0x369   : > { %v3496_v38 = vpop.permute.xlu0 %3495 }
 0x36a   : > { %v3500_v0 = vsel %vm1903_vm9, %v3494_v37, %v3496_v38 }
 0x36b   : > { %4302 = vmatprep.subr.bf16.mxu1 %v3500_v0 }
 0x36c   : > { %v1898_v10 = vpop.permute.xlu1 %1897 }
 0x36d   : > { %v3492_v12 = vpop.permute.xlu0 %3491  ;;  %v1906_v35 = vsel %vm1903_vm9, %v1898_v10, %v1900_v16 }
 0x36e   : > { %v3499_v50 = vsel %vm1903_vm9, %v3492_v12, %v3494_v37  ;;  %4091 = vmatpush1.bf16.msra.mxu0 %v1906_v35 }
 0x36f   : > { %4303 = vmatpush1.bf16.msra.mxu1 %v3499_v50 }
 0x370   : > { %v1968_v51 = vpop.permute.xlu1 %1967 }
 0x371   : > { %v1970_v3 = vpop.permute.xlu0 %1969 }
 0x372   : > { %v1979_v18 = vsel %vm1977_vm10, %v1968_v51, %v1970_v3 }
 0x373   : > { %4092 = vmatprep.subr.bf16.mxu0 %v1979_v18 }
 0x374   : > { %v3554_v44 = vpop.permute.xlu1 %3553 }
 0x375   : > { %v3556_v28 = vpop.permute.xlu0 %3555 }
 0x376   : > { %v3564_v13 = vsel %vm1977_vm10, %v3554_v44, %v3556_v28 }
 0x377   : > { %4304 = vmatprep.subr.bf16.mxu1 %v3564_v13 }
 0x378   : > { %v1966_v39 = vpop.permute.xlu1 %1965 }
 0x379   : > { %v3552_v56 = vpop.permute.xlu0 %3551  ;;  %v1978_v4 = vsel %vm1977_vm10, %v1966_v39, %v1968_v51 }
 0x37a   : > { %v3563_v6 = vsel %vm1977_vm10, %v3552_v56, %v3554_v44  ;;  %4093 = vmatpush1.bf16.msra.mxu0 %v1978_v4 }
 0x37b   : > { %4305 = vmatpush1.bf16.msra.mxu1 %v3563_v6 }
 0x37c   : > { %v1974_v14 = vpop.permute.xlu1 %1973 }
 0x37d   : > { %v1976_v15 = vpop.permute.xlu0 %1975 }
 0x37e   : > { %v1981_v57 = vsel %vm1977_vm10, %v1974_v14, %v1976_v15 }
 0x37f   : > { %4094 = vmatprep.subr.bf16.mxu0 %v1981_v57 }
 0x380   : > { %v3560_v45 = vpop.permute.xlu1 %3559 }
 0x381   : > { %v3562_v58 = vpop.permute.xlu0 %3561 }
 0x382   : > { %v3566_v48 = vsel %vm1977_vm10, %v3560_v45, %v3562_v58 }
 0x383   : > { %4306 = vmatprep.subr.bf16.mxu1 %v3566_v48 }
 0x384   : > { %v1972_v8 = vpop.permute.xlu1 %1971 }
 0x385   : > { %v3558_v20 = vpop.permute.xlu0 %3557  ;;  %v1980_v26 = vsel %vm1977_vm10, %v1972_v8, %v1974_v14 }
 0x386   : > { %v3565_v21 = vsel %vm1977_vm10, %v3558_v20, %v3560_v45  ;;  %4095 = vmatpush1.bf16.msra.mxu0 %v1980_v26 }
 0x387   : > { %4307 = vmatpush1.bf16.msra.mxu1 %v3565_v21 }
 0x388   : > { %v2042_v25 = vpop.permute.xlu1 %2041 }
 0x389   : > { %v2044_v54 = vpop.permute.xlu0 %2043  ;;  %4097 = vmatmul.mubr.bf16.vlgmr.msra.gmra.mrb[0].mxu0 %v5272_v24 }
 0x38a   : > { %v2053_v41 = vsel %vm2051_vm11, %v2042_v25, %v2044_v54  ;;  %4309 = vmatmul.mubr.bf16.vlgmr.msra.gmra.mrb[0].mxu1 %v5272_v24  ;;  %4106 = vmatprep.mubr.bf16.mxu0 %v5275_v55 }
 0x38b   : > { %4117 = vmatprep.subr.bf16.mxu0 %v2053_v41  ;;  %4318 = vmatprep.mubr.bf16.mxu1 %v5275_v55 }
 0x38c   : > { %v3620_v9 = vpop.permute.xlu1 %3619 }
 0x38d   : > { %v3622_v42 = vpop.permute.xlu0 %3621 }
 0x38e   : > { %v3630_v5 = vsel %vm2051_vm11, %v3620_v9, %v3622_v42 }
 0x38f   : > { %4329 = vmatprep.subr.bf16.mxu1 %v3630_v5 }
 0x390   : > { %v2040_v34 = vpop.permute.xlu1 %2039 }
 0x391   : > { %v3618_v46 = vpop.permute.xlu0 %3617  ;;  %v2052_v62 = vsel %vm2051_vm11, %v2040_v34, %v2042_v25  ;;  %4107 = vmatmul.mubr.bf16.gmra.mrb[4].mxu0 %v5277_v31 }
 0x392   : > { %v3629_v1 = vsel %vm2051_vm11, %v3618_v46, %v3620_v9  ;;  %4118 = vmatpush1.bf16.msra.mxu0 %v2052_v62  ;;  %4319 = vmatmul.mubr.bf16.gmra.mrb[4].mxu1 %v5277_v31 }
 0x393   : > { %4330 = vmatpush1.bf16.msra.mxu1 %v3629_v1  ;;  %4149 = vmatprep.mubr.bf16.mxu0 %v5462_v11 }
 0x394   : > { %v2048_v47 = vpop.permute.xlu1 %2047  ;;  %4361 = vmatprep.mubr.bf16.mxu1 %v5462_v11 }
 0x395   : > { %v2050_v29 = vpop.permute.xlu0 %2049 }
 0x396   : > { %v2055_v22 = vsel %vm2051_vm11, %v2048_v47, %v2050_v29 }
 0x397   : > { %4119 = vmatprep.subr.bf16.mxu0 %v2055_v22 }
 0x398   : > { %v3626_v49 = vpop.permute.xlu1 %3625 }
 0x399   : > { %v3628_v27 = vpop.permute.xlu0 %3627 }
 0x39a   : > { %v3632_v52 = vsel %vm2051_vm11, %v3626_v49, %v3628_v27 }
 0x39b   : > { %4331 = vmatprep.subr.bf16.mxu1 %v3632_v52 }
 0x39c   : > { %v2046_v2 = vpop.permute.xlu1 %2045 }
 0x39d   : > { %v3624_v17 = vpop.permute.xlu0 %3623  ;;  %v2054_v23 = vsel %vm2051_vm11, %v2046_v2, %v2048_v47 }
 0x39e   : > { %v3631_v33 = vsel %vm2051_vm11, %v3624_v17, %v3626_v49  ;;  %4120 = vmatpush1.bf16.msra.mxu0 %v2054_v23 }
 0x39f   : > { %4332 = vmatpush1.bf16.msra.mxu1 %v3631_v33 }
 0x3a1   : > { %5021 = vmatmul.mubr.msk.bf16.vlgmr.msra.gmra.mrb[0].mxu0 %vm1011_vm3, %v5278_v61 }
 0x3a2   : > { %5023 = vmatmul.mubr.msk.bf16.vlgmr.msra.gmra.mrb[0].mxu1 %vm1011_vm3, %v5278_v61  ;;  %4159 = vmatprep.mubr.bf16.mxu0 %v5462_v11 }
 0x3a3   : > { %4371 = vmatprep.mubr.bf16.mxu1 %v5462_v11 }
 0x3a9   : > { %5022 = vmatmul.mubr.msk.bf16.gmra.mrb[4].mxu0 %vm1011_vm3, %v5279_v19 }
 0x3aa   : > { %5024 = vmatmul.mubr.msk.bf16.gmra.mrb[4].mxu1 %vm1011_vm3, %v5279_v19 }
 0x3ad   : > { %v3864_v43 = vpop.permute.xlu1 %3863 }
 0x3ae   : > { %v3869_v59 = vpop.permute.xlu0 %3868 }
 0x3b1   : > { %v3874_v60 = vpop.permute.xlu1 %3873 }
 0x3b5   : > { %v3879_v51 = vpop.permute.xlu1 %3878 }
 0x474   : > { %v4151_v30 = vpop.f32.mrb[0].mxu0 }
 0x475   : > { %v5031_v32 = vadd.f32 %v4151_v30, %v3864_v43  ;;  %v4363_v63 = vpop.f32.mrb[0].mxu1  ;;  %v4153_v40 = vpop.f32.mrb[1].mxu0 }
 0x476   : > { %v5039_v7 = vadd.f32 %v4363_v63, %v3864_v43  ;;  %v5032_v16 = vadd.f32 %v4153_v40, %v3864_v43  ;;  %v4365_v36 = vpop.f32.mrb[1].mxu1  ;;  %v4155_v53 = vpop.f32.mrb[2].mxu0 }
 0x477   : > { %4382 = vst [vmem:[%s7353_s14] sm:$0xff] %v5031_v32  ;;  %v5040_v11 = vadd.f32 %v4365_v36, %v3864_v43  ;;  %v5033_v37 = vadd.f32 %v4155_v53, %v3869_v59  ;;  %v4367_v38 = vpop.f32.mrb[2].mxu1  ;;  %v4157_v0 = vpop.f32.mrb[3].mxu0 }
 0x478   : > { %4384 = vst [vmem:[%s7353_s14 + $0x10] sm:$0xff] %v5039_v7  ;;  %4383 = vst [vmem:[%s7353_s14 + $0x8] sm:$0xff] %v5032_v16  ;;  %v5041_v10 = vadd.f32 %v4367_v38, %v3869_v59  ;;  %v5034_v12 = vadd.f32 %v4157_v0, %v3869_v59  ;;  %v4369_v35 = vpop.f32.mrb[3].mxu1 }
 0x479   : > { %4385 = vst [vmem:[%s7353_s14 + $0x18] sm:$0xff] %v5040_v11  ;;  %4386 = vst [vmem:[%s7353_s14 + $0x20] sm:$0xff] %v5033_v37  ;;  %v5042_v50 = vadd.f32 %v4369_v35, %v3869_v59 }
 0x47a   : > { %4388 = vst [vmem:[%s7353_s14 + $0x30] sm:$0xff] %v5041_v10  ;;  %4387 = vst [vmem:[%s7353_s14 + $0x28] sm:$0xff] %v5034_v12 }
 0x47b   : > { %4389 = vst [vmem:[%s7353_s14 + $0x38] sm:$0xff] %v5042_v50 }
 0x47c   : > { %v4161_v3 = vpop.f32.mrb[4].mxu0 }
 0x47d   : > { %v5035_v18 = vadd.f32 %v4161_v3, %v3874_v60  ;;  %v4373_v44 = vpop.f32.mrb[4].mxu1  ;;  %v4163_v28 = vpop.f32.mrb[5].mxu0 }
 0x47e   : > { %v5043_v13 = vadd.f32 %v4373_v44, %v3874_v60  ;;  %v5036_v39 = vadd.f32 %v4163_v28, %v3874_v60  ;;  %v4375_v56 = vpop.f32.mrb[5].mxu1  ;;  %v4165_v4 = vpop.f32.mrb[6].mxu0 }
 0x47f   : > { %4390 = vst [vmem:[%s7353_s14 + $0x40] sm:$0xff] %v5035_v18  ;;  %v5044_v6 = vadd.f32 %v4375_v56, %v3874_v60  ;;  %v5037_v14 = vadd.f32 %v4165_v4, %v3879_v51  ;;  %v4377_v15 = vpop.f32.mrb[6].mxu1  ;;  %v4167_v57 = vpop.f32.mrb[7].mxu0 }
 0x480   : > { %4392 = vst [vmem:[%s7353_s14 + $0x50] sm:$0xff] %v5043_v13  ;;  %4391 = vst [vmem:[%s7353_s14 + $0x48] sm:$0xff] %v5036_v39  ;;  %v5045_v45 = vadd.f32 %v4377_v15, %v3879_v51  ;;  %v5038_v58 = vadd.f32 %v4167_v57, %v3879_v51  ;;  %v4379_v48 = vpop.f32.mrb[7].mxu1 }
 0x481   : > { %4393 = vst [vmem:[%s7353_s14 + $0x58] sm:$0xff] %v5044_v6  ;;  %4394 = vst [vmem:[%s7353_s14 + $0x60] sm:$0xff] %v5037_v14  ;;  %v5046_v8 = vadd.f32 %v4379_v48, %v3879_v51 }
 0x482   : > { %4396 = vst [vmem:[%s7353_s14 + $0x70] sm:$0xff] %v5045_v45  ;;  %4395 = vst [vmem:[%s7353_s14 + $0x68] sm:$0xff] %v5038_v58 }
 0x483   : > { %4397 = vst [vmem:[%s7353_s14 + $0x78] sm:$0xff] %v5046_v8 }
 0x484   : > { %5355 = shalt.err (!%p5352_p7)
}
 0x485   : > { %s5356_s26 = scalar_lea.hbm %s7371_s29, 2048  ;;  %s5360_s21 = scalar_lea.hbm %s7427_s4, 4096 }
 0x486   : > { %p5357_p9 = scmp.ne.s32.totalorder %s7371_s29, %s5356_s26  ;;  %p5361_p5 = scmp.lt.u32.totalorder %s7371_s29, %s7427_s4 }
 0x487   : > { %p5362_p11 = scmp.lt.u32.totalorder %s5360_s21, %s5356_s26  ;;  %p5364_p4 = scmp.lt.u32.totalorder %s5356_s26, %s7371_s29 }
 0x488   : > { %p5358_p2 = pnand %p5357_p9, %p5582_p12 }
 0x489   : > { %p5363_p1 = por %p5362_p11, %p5361_p5 }
 0x48a   : > { %p5359_p0 = pneg %p5358_p2 }
 0x48b   : > { %p5365_p6 = por %p5364_p4, %p5363_p1 }
 0x48d   : > { %p5366_p8 = pnand %p5365_p6, %p5359_p0 }
 0x48f   : > { %5369 = shalt.err (!%p5366_p8)
}
 0x490   : > { %s5464_s9 = smov 512   ;;  %s5465_s19 = smov 1024  }
 0x491   : > { %5104 = dma.vmem_to_hbm [thread:$0]  (%p5582_p12), %s7373_s11, 2048, %s7371_s29, %s4399_s10, %s5464_s9, %s5465_s19, %s5429_s23  }
 0x492 PF: > { %s4427_s25 = sand.u32 1, %s5400_s15   ;;  %p7479_p10 = scmp.ne.s32.totalorder %s7438_s22, 0 }
 0x493   : > { %p7480_p13 = scmp.ge.s32.totalorder %s5412_s18, 2  ;;  %s4428_s20 = scalar_lea.sflag [#allocation5], %s4427_s25 }
 0x495   : > { %p5115_p3 = pnand %p7480_p13, %p7479_p10 }
 0x497   : > { %5395 = dma.done.wait (!%p5115_p3), %s4428_s20, 2048  }
 0x498   : > { %5397 = vsyncadd (!%p5115_p3), %s4428_s20, 4294965248  ;;  %p18_p7 = scmp.ge.s32.totalorder %s5547_s27, 4   ;;  %s7481_s15 = smov %s5404_s16 }
 0x499   : > { %s7482_s16 = smov %s5408_s17  ;;  %s7483_s17 = smov %s5578_s24 }
 0x49a   : > { %s7484_s18 = smov %s5547_s27  ;;  %20 = sbr.rel (!%p18_p7) target bundleno = 6 (0x6), region = 86 }
 0x4a1   :  { %4433 = vsyncpa [#allocation4], 1 }
 0x4a2   :  { %4435 = vsyncpa [#allocation4 + $0x1], 1 }
 0x4a3   :  { %4436 = vsyncpa [#allocation7], 1 }
 0x4a4   :  { %4437 = vsyncpa [#allocation5], 1 }
 0x4a5   :  { %4439 = vsyncpa [#allocation5 + $0x1], 1 }

</bundles_post_ra>
